<compile_context>
chip_gen: v7x
topology: tpu7x:2x2x1
jax: 0.10.0
libtpu: 0.0.40
codegen_flags: <defaults>
</compile_context>

<pallas_src>
import math

import jax
import jax.numpy as jnp
from jax.experimental import pallas as pl
from jax.experimental.pallas import tpu as pltpu


def _triple(v):
    if isinstance(v, (tuple, list)):
        return tuple(v)
    return (v, v, v)


def _round_up(x, m):
    return ((x + m - 1) // m) * m


def _pick_rows(total, per_row_bytes, budget=8 << 20, prefer_split=True):
    """Largest sublane-aligned divisor of `total` whose block fits `budget`,
    preferring >= 2 grid steps (megacore / v7x dual TensorCore)."""
    cap = max(8, budget // max(per_row_bytes, 1))
    ok = [r for r in range(8, min(total, cap) + 1, 8) if total % r == 0]
    if not ok:
        return total
    if prefer_split:
        pref = [r for r in ok if total // r >= 2]
        if pref:
            return max(pref)
    return max(ok)


# -----------------------------------------------------------------------------
# Kernel A: spatial (1, kh, kw) conv as one im2col matmul + BN partial stats.
# -----------------------------------------------------------------------------
def _spatial_kernel(x_ref, w_ref, b_ref, y_ref, s_ref, q_ref):
    x = x_ref[...]                                               # (R, K) bf16
    acc = jnp.dot(x, w_ref[...], preferred_element_type=jnp.float32)
    acc = acc + b_ref[...]                                       # (R, Cp) f32
    s_ref[0] = jnp.sum(acc, axis=0, keepdims=True)               # BN partials
    q_ref[0] = jnp.sum(acc * acc, axis=0, keepdims=True)
    y_ref[...] = acc.astype(y_ref.dtype)


def _spatial_conv(xcol, w_s, b_s):
    rows, K = xcol.shape
    Cp = w_s.shape[-1]
    per_row = K * 2 + Cp * 2 + 2 * Cp * 4        # x(bf16) + y(bf16) + f32 acc slack
    R = _pick_rows(rows, per_row)
    G = rows // R
    return pl.pallas_call(
        _spatial_kernel,
        out_shape=(
            jax.ShapeDtypeStruct((rows, Cp), jnp.bfloat16),
            jax.ShapeDtypeStruct((G, 1, Cp), jnp.float32),
            jax.ShapeDtypeStruct((G, 1, Cp), jnp.float32),
        ),
        grid_spec=pltpu.PrefetchScalarGridSpec(
            num_scalar_prefetch=0,
            grid=(G,),
            in_specs=[
                pl.BlockSpec((R, K), lambda g: (g, 0)),
                pl.BlockSpec((K, Cp), lambda g: (0, 0)),         # loaded once
                pl.BlockSpec((1, Cp), lambda g: (0, 0)),
            ],
            out_specs=(
                pl.BlockSpec((R, Cp), lambda g: (g, 0)),
                pl.BlockSpec((1, 1, Cp), lambda g: (g, 0, 0)),
                pl.BlockSpec((1, 1, Cp), lambda g: (g, 0, 0)),
            ),
        ),
        compiler_params=pltpu.CompilerParams(dimension_semantics=("parallel",)),
    )(xcol, w_s, b_s)


# -----------------------------------------------------------------------------
# Kernel B: BN (scale/shift) + ReLU fused with the temporal (kt,1,1) conv.
# Grid = (N, HW blocks); kt and T_out are static in-kernel loops.
# -----------------------------------------------------------------------------
def _make_temporal_kernel(T_in, T_out, kt, st, pt):
    def kernel(y_ref, w_ref, b_ref, sc_ref, sh_ref, o_ref):
        # Normalize every real frame exactly once (BN + ReLU), reuse across
        # all kt taps of all T_out output steps.
        z = jnp.maximum(
            y_ref[0].astype(jnp.float32) * sc_ref[...] + sh_ref[...], 0.0)
        z = z.astype(jnp.bfloat16)                               # (T_in, hwb, Cp)
        b = b_ref[...]                                           # (1, Coutp) f32
        # TODO(synk): for very large T_out switch this static unroll to a
        # lax.fori_loop with masked taps to bound trace/compile time.
        for to in range(T_out):
            acc = None
            for dt in range(kt):
                ti = to * st - pt + dt
                if 0 <= ti < T_in:            # temporal zero-pad => skip tap
                    part = jnp.dot(z[ti], w_ref[dt],
                                   preferred_element_type=jnp.float32)
                    acc = part if acc is None else acc + part
            if acc is None:
                acc = jnp.zeros((z.shape[1], b.shape[-1]), jnp.float32)
            o_ref[0, to] = (acc + b).astype(o_ref.dtype)
    return kernel


def _temporal_conv(y, w_t, b_t, scale, shift, T_out, kt, st, pt):
    N, T_in, HW, Cp = y.shape
    Coutp = w_t.shape[-1]
    per_row = T_in * Cp * (2 + 2 + 4) + T_out * Coutp * 4
    hwb = _pick_rows(HW, per_row)
    Gh = HW // hwb
    kern = _make_temporal_kernel(T_in, T_out, kt, st, pt)
    return pl.pallas_call(
        kern,
        out_shape=jax.ShapeDtypeStruct((N, T_out, HW, Coutp), jnp.float32),
        grid_spec=pltpu.PrefetchScalarGridSpec(
            num_scalar_prefetch=0,
            grid=(N, Gh),
            in_specs=[
                pl.BlockSpec((1, T_in, hwb, Cp), lambda n, h: (n, 0, h, 0)),
                pl.BlockSpec((kt, Cp, Coutp), lambda n, h: (0, 0, 0)),  # once
                pl.BlockSpec((1, Coutp), lambda n, h: (0, 0)),
                pl.BlockSpec((1, Cp), lambda n, h: (0, 0)),
                pl.BlockSpec((1, Cp), lambda n, h: (0, 0)),
            ],
            out_specs=pl.BlockSpec((1, T_out, hwb, Coutp),
                                   lambda n, h: (n, 0, h, 0)),
        ),
        compiler_params=pltpu.CompilerParams(
            dimension_semantics=("parallel", "parallel")),
    )(y, w_t, b_t, scale, shift)


# -----------------------------------------------------------------------------
# Parameter init (deterministic, matches nn.Conv3d / nn.BatchNorm3d shapes).
# -----------------------------------------------------------------------------
def init_params(key, in_channels, out_channels, kernel_size):
    kt, kh, kw = _triple(kernel_size)
    cmid = int(math.floor(
        kt * kh * kw * in_channels * out_channels /
        (kh * kw * in_channels + kt * out_channels)))
    ks = jax.random.split(key, 6)
    bound_s = 1.0 / math.sqrt(kh * kw * in_channels)
    bound_t = 1.0 / math.sqrt(kt * cmid)
    return {
        # spatial conv weight stored HWIO: (kh, kw, Cin, Cmid)
        "w_spatial": jax.random.uniform(ks[0], (kh, kw, in_channels, cmid),
                                        jnp.float32, -bound_s, bound_s),
        "b_spatial": jax.random.uniform(ks[1], (cmid,), jnp.float32,
                                        -bound_s, bound_s),
        "gamma": 1.0 + 0.1 * jax.random.normal(ks[2], (cmid,), jnp.float32),
        "beta": 0.1 * jax.random.normal(ks[3], (cmid,), jnp.float32),
        # temporal conv weight stored WIO: (kt, Cmid, Cout)
        "w_temporal": jax.random.uniform(ks[4], (kt, cmid, out_channels),
                                         jnp.float32, -bound_t, bound_t),
        "b_temporal": jax.random.uniform(ks[5], (out_channels,), jnp.float32,
                                         -bound_t, bound_t),
    }


# -----------------------------------------------------------------------------
# Forward pass: relu(bn(spatial_conv(x))) -> temporal_conv
# -----------------------------------------------------------------------------
def spatio_temporal_conv(x, params, kernel_size, stride=1, padding=0, eps=1e-5):
    kt, kh, kw = _triple(kernel_size)
    st, sh, sw = _triple(stride)
    pt, ph, pw = _triple(padding)
    N, Cin, T, H, W = x.shape

    Cmid = params["w_spatial"].shape[-1]
    Cout = params["w_temporal"].shape[-1]
    Cp = _round_up(Cmid, 128)
    Coutp = _round_up(Cout, 128)

    Ho = (H + 2 * ph - kh) // sh + 1
    Wo = (W + 2 * pw - kw) // sw + 1
    HW = Ho * Wo
    NF = N * T
    K = kh * kw * Cin

    # ---- pad channels to 128 lanes, cast matmul operands to bf16 (once) ----
    w_s = params["w_spatial"].reshape(K, Cmid)
    w_s = jnp.pad(w_s, ((0, 0), (0, Cp - Cmid))).astype(jnp.bfloat16)
    b_s = jnp.pad(params["b_spatial"], (0, Cp - Cmid)).reshape(1, Cp)
    b_s = b_s.astype(jnp.float32)
    gamma = jnp.pad(params["gamma"], (0, Cp - Cmid))
    beta = jnp.pad(params["beta"], (0, Cp - Cmid))
    w_t = jnp.pad(params["w_temporal"],
                  ((0, 0), (0, Cp - Cmid), (0, Coutp - Cout))).astype(jnp.bfloat16)
    b_t = jnp.pad(params["b_temporal"], (0, Coutp - Cout)).reshape(1, Coutp)
    b_t = b_t.astype(jnp.float32)

    # ---- im2col in the wrapper: fold kh*kw taps into one contraction axis ----
    xf = jnp.transpose(x, (0, 2, 3, 4, 1)).reshape(NF, H, W, Cin)
    xf = xf.astype(jnp.bfloat16)
    xp = jnp.pad(xf, ((0, 0), (ph, ph), (pw, pw), (0, 0)))
    cols = []
    for i in range(kh):
        for j in range(kw):
            cols.append(xp[:, i:i + sh * (Ho - 1) + 1:sh,
                           j:j + sw * (Wo - 1) + 1:sw, :])
    xcol = jnp.concatenate(cols, axis=-1).reshape(NF * HW, K)

    # ---- spatial conv (single lane-dense matmul) + BN partial statistics ----
    y1, s_part, q_part = _spatial_conv(xcol, w_s, b_s)          # (NF*HW, Cp) bf16

    # ---- finish BatchNorm3d (training mode, biased variance) in f32 ----
    cnt = float(NF * HW)
    mean = jnp.sum(s_part, axis=(0, 1)) / cnt
    var = jnp.maximum(jnp.sum(q_part, axis=(0, 1)) / cnt - mean * mean, 0.0)
    inv = gamma / jnp.sqrt(var + eps)
    scale = inv.reshape(1, Cp).astype(jnp.float32)
    shift = (beta - mean * inv).reshape(1, Cp).astype(jnp.float32)

    # ---- temporal (kt,1,1) conv fused with BN + ReLU ----
    T_out = (T + 2 * pt - kt) // st + 1
    yt = y1.reshape(N, T, HW, Cp)
    out = _temporal_conv(yt, w_t, b_t, scale, shift, T_out, kt, st, pt)

    # back to PyTorch NCDHW: (N, Cout, T_out, Ho, Wo), drop channel padding
    out = out.reshape(N, T_out, Ho, Wo, Coutp).transpose(0, 4, 1, 2, 3)[:, :Cout]
    return out.astype(x.dtype)


# -----------------------------------------------------------------------------
# Pure-JAX f32 reference (sanity check only)
# -----------------------------------------------------------------------------
def reference_forward(x, params, kernel_size, stride=1, padding=0, eps=1e-5):
    kt, kh, kw = _triple(kernel_size)
    st, sh, sw = _triple(stride)
    pt, ph, pw = _triple(padding)
    N, Cin, T, H, W = x.shape

    xf = jnp.transpose(x, (0, 2, 3, 4, 1)).reshape(N * T, H, W, Cin)
    y = jax.lax.conv_general_dilated(
        xf, params["w_spatial"], (sh, sw), [(ph, ph), (pw, pw)],
        dimension_numbers=("NHWC", "HWIO", "NHWC")) + params["b_spatial"]
    mean = jnp.mean(y, axis=(0, 1, 2))
    var = jnp.var(y, axis=(0, 1, 2))
    y = (y - mean) / jnp.sqrt(var + eps) * params["gamma"] + params["beta"]
    y = jnp.maximum(y, 0.0)
    Ho, Wo, Cmid = y.shape[1], y.shape[2], y.shape[3]
    y = (y.reshape(N, T, Ho, Wo, Cmid)
          .transpose(0, 2, 3, 1, 4)
          .reshape(N * Ho * Wo, T, Cmid))
    z = jax.lax.conv_general_dilated(
        y, params["w_temporal"], (st,), [(pt, pt)],
        dimension_numbers=("NWC", "WIO", "NWC")) + params["b_temporal"]
    T_out, Cout = z.shape[1], z.shape[2]
    z = z.reshape(N, Ho, Wo, T_out, Cout).transpose(0, 4, 3, 1, 2)
    return z


if __name__ == "__main__":
    key = jax.random.PRNGKey(0)
    kx, kp = jax.random.split(key)

    # small shapes consistent with a 3D conv input (N, C_in, T, H, W)
    N, Cin, T, H, W = 2, 4, 8, 16, 16
    Cout = 8
    kernel_size, stride, padding = 3, 1, 1   # -> intermed_channels = 14

    x = jax.random.normal(kx, (N, Cin, T, H, W), jnp.float32)
    params = init_params(kp, Cin, Cout, kernel_size)

    out = spatio_temporal_conv(x, params, kernel_size, stride, padding)
    out = jax.block_until_ready(out)

    ref = reference_forward(x, params, kernel_size, stride, padding)
    assert out.shape == (N, Cout, T, H, W), out.shape
    rel_err = float(jnp.max(jnp.abs(out - ref)) / (jnp.max(jnp.abs(ref)) + 1e-6))
    # bf16 matmul operands (f32 accumulation) vs f32 reference
    assert rel_err < 3e-2, f"mismatch vs reference, rel err = {rel_err}"

    print("KERNEL_OK")
</pallas_src>

<mosaic_0001>
module attributes {stable_mosaic.version = 11 : i64} {
  func.func @_spatial_kernel(%arg0: i32, %arg1: memref<2048x36xbf16, #tpu.memory_space<vmem>>, %arg2: memref<36x128xbf16, #tpu.memory_space<vmem>>, %arg3: memref<1x128xf32, #tpu.memory_space<vmem>>, %arg4: memref<2048x128xbf16, #tpu.memory_space<vmem>>, %arg5: memref<1x1x128xf32, #tpu.memory_space<vmem>>, %arg6: memref<1x1x128xf32, #tpu.memory_space<vmem>>) attributes {dimension_semantics = [#tpu.dimension_semantics<parallel>], iteration_bounds = array<i64: 2>, scalar_prefetch = 0 : i64, scratch_operands = 0 : i64, tpu.core_type = #tpu.core_type<tc>, window_params = [{transform_indices = @transform_0, window_bounds = array<i64: 2048, 36>}, {pipeline_mode = #tpu.pipeline_mode<synchronous>, transform_indices = @transform_1, window_bounds = array<i64: 36, 128>}, {pipeline_mode = #tpu.pipeline_mode<synchronous>, transform_indices = @transform_2, window_bounds = array<i64: 1, 128>}, {transform_indices = @transform_3, window_bounds = array<i64: 2048, 128>}, {transform_indices = @transform_4, window_bounds = array<i64: 1, 1, 128>}, {transform_indices = @transform_5, window_bounds = array<i64: 1, 1, 128>}]} {
    %c0 = arith.constant 0 : index
    %c0_0 = arith.constant 0 : index
    %0 = vector.load %arg1[%c0, %c0_0] : memref<2048x36xbf16, #tpu.memory_space<vmem>>, vector<2048x36xbf16>
    %c0_1 = arith.constant 0 : index
    %c0_2 = arith.constant 0 : index
    %1 = vector.load %arg2[%c0_1, %c0_2] : memref<36x128xbf16, #tpu.memory_space<vmem>>, vector<36x128xbf16>
    %cst = arith.constant dense<0.000000e+00> : vector<2048x128xf32>
    %2 = tpu.matmul %0, %1, %cst {dimension_numbers = #tpu.dot_dimension_numbers<[1], [0], [0], [1], [0, 0, 1, 1], [], []>} : vector<2048x36xbf16>, vector<36x128xbf16>, vector<2048x128xf32> -> vector<2048x128xf32>
    %c0_3 = arith.constant 0 : index
    %c0_4 = arith.constant 0 : index
    %3 = vector.load %arg3[%c0_3, %c0_4] : memref<1x128xf32, #tpu.memory_space<vmem>>, vector<1x128xf32>
    %4 = vector.broadcast %3 : vector<1x128xf32> to vector<2048x128xf32>
    %5 = arith.addf %2, %4 : vector<2048x128xf32>
    %cst_5 = arith.constant dense<0.000000e+00> : vector<128xf32>
    %6 = vector.multi_reduction <add>, %5, %cst_5 [0] : vector<2048x128xf32> to vector<128xf32>
    %7 = vector.shape_cast %6 : vector<128xf32> to vector<1x128xf32>
    %c0_6 = arith.constant 0 : index
    %c0_7 = arith.constant 0 : index
    %c0_8 = arith.constant 0 : index
    %8 = vector.load %arg5[%c0_6, %c0_7, %c0_8] : memref<1x1x128xf32, #tpu.memory_space<vmem>>, vector<1x1x128xf32>
    %9 = vector.shape_cast %8 : vector<1x1x128xf32> to vector<1x128xf32>
    %10 = vector.shape_cast %7 : vector<1x128xf32> to vector<1x1x128xf32>
    tpu.vector_store %arg5[%c0_6, %c0_7, %c0_8], %10 {strides = array<i32>} : memref<1x1x128xf32, #tpu.memory_space<vmem>>, vector<1x1x128xf32>,
    %11 = arith.mulf %5, %5 : vector<2048x128xf32>
    %cst_9 = arith.constant dense<0.000000e+00> : vector<128xf32>
    %12 = vector.multi_reduction <add>, %11, %cst_9 [0] : vector<2048x128xf32> to vector<128xf32>
    %13 = vector.shape_cast %12 : vector<128xf32> to vector<1x128xf32>
    %c0_10 = arith.constant 0 : index
    %c0_11 = arith.constant 0 : index
    %c0_12 = arith.constant 0 : index
    %14 = vector.load %arg6[%c0_10, %c0_11, %c0_12] : memref<1x1x128xf32, #tpu.memory_space<vmem>>, vector<1x1x128xf32>
    %15 = vector.shape_cast %14 : vector<1x1x128xf32> to vector<1x128xf32>
    %16 = vector.shape_cast %13 : vector<1x128xf32> to vector<1x1x128xf32>
    tpu.vector_store %arg6[%c0_10, %c0_11, %c0_12], %16 {strides = array<i32>} : memref<1x1x128xf32, #tpu.memory_space<vmem>>, vector<1x1x128xf32>,
    %17 = arith.truncf %5 : vector<2048x128xf32> to vector<2048x128xbf16>
    %c0_13 = arith.constant 0 : index
    %c0_14 = arith.constant 0 : index
    %18 = vector.load %arg4[%c0_13, %c0_14] : memref<2048x128xbf16, #tpu.memory_space<vmem>>, vector<2048x128xbf16>
    tpu.vector_store %arg4[%c0_13, %c0_14], %17 {strides = array<i32>} : memref<2048x128xbf16, #tpu.memory_space<vmem>>, vector<2048x128xbf16>,
    return
  }
  func.func @transform_0(%arg0: i32) -> (i32, i32) {
    %c0_i32 = arith.constant 0 : i32
    %c0_i32_0 = arith.constant 0 : i32
    return %arg0, %c0_i32 : i32, i32
  }
  func.func @transform_1(%arg0: i32) -> (i32, i32) {
    %c0_i32 = arith.constant 0 : i32
    %c0_i32_0 = arith.constant 0 : i32
    %c0_i32_1 = arith.constant 0 : i32
    return %c0_i32, %c0_i32_0 : i32, i32
  }
  func.func @transform_2(%arg0: i32) -> (i32, i32) {
    %c0_i32 = arith.constant 0 : i32
    %c0_i32_0 = arith.constant 0 : i32
    %c0_i32_1 = arith.constant 0 : i32
    return %c0_i32, %c0_i32_0 : i32, i32
  }
  func.func @transform_3(%arg0: i32) -> (i32, i32) {
    %c0_i32 = arith.constant 0 : i32
    %c0_i32_0 = arith.constant 0 : i32
    return %arg0, %c0_i32 : i32, i32
  }
  func.func @transform_4(%arg0: i32) -> (i32, i32, i32) {
    %c0_i32 = arith.constant 0 : i32
    %c0_i32_0 = arith.constant 0 : i32
    %c0_i32_1 = arith.constant 0 : i32
    return %arg0, %c0_i32, %c0_i32_0 : i32, i32, i32
  }
  func.func @transform_5(%arg0: i32) -> (i32, i32, i32) {
    %c0_i32 = arith.constant 0 : i32
    %c0_i32_0 = arith.constant 0 : i32
    %c0_i32_1 = arith.constant 0 : i32
    return %arg0, %c0_i32, %c0_i32_0 : i32, i32, i32
  }
}

</mosaic_0001>

<bundles_post_ra>
// kernel: tpu_custom_call.1
= control target key start
LH: loop header
LB: loop body
LE: loop exit
PB: predicated region body
PF: predicated region fallthrough
CT: control target
= control target key end

     0   :  { %11 = vsyncpa [#allocation3], 0  ;;  %s8747_s0 = inlined_call_operand.vmem [shape: bf16[4096,36], index: 0, kind: input, shape index: {}]   ;;  %s8748_s1 = inlined_call_operand.vmem [shape: bf16[36,128], index: 1, kind: input, shape index: {}]   ;;  %s8749_s2 = inlined_call_operand.vmem [shape: f32[1,128], index: 2, kind: input, shape index: {}]   ;;  %s8750_s3 = inlined_call_operand.hbm [shape: bf16[4096,128], index: 3, kind: output, shape index: {0}]   ;;  %s8751_s4 = inlined_call_operand.hbm [shape: f32[2,1,128], index: 4, kind: output, shape index: {1}]   ;;  %s8752_s5 = inlined_call_operand.hbm [shape: f32[2,1,128], index: 5, kind: output, shape index: {2}]  }
   0x1   :  { %13 = vsyncpa [#allocation3 + $0x1], 0 }
   0x2   :  { %14 = vsyncpa [#allocation5], 0 }
   0x3   :  { %16 = vsyncpa [#allocation5 + $0x1], 0  ;;  %s7133_s18 = smov 0   ;;  %s7135_s19 = smov 0  }
   0x4   :  { %s7137_s20 = smov 0   ;;  %s7139_s21 = smov 0  }
   0x5 LB: > { %s7154_s22 = sadd.s32 4294967295, %s7096_s21   ;;  %s4835_s23 = sadd.s32 4294967294, %s7096_s21   ;;  %s7096_s21 = sphi %s7139_s21, %s8922_s21   ;;  %s7092_s20 = sphi %s7137_s20, %s8921_s20   ;;  %s7088_s19 = sphi %s7135_s19, %s8920_s19   ;;  %s7084_s18 = sphi %s7133_s18, %s8919_s18  }
   0x6   : > { %s7158_s24 = sadd.s32 1, %s7096_s21   ;;  %s97_s25 = sadd.s32 1, %s7092_s20 }
   0x7   : > { %s94_s26 = ssub.s32 %s7096_s21, %s7158_s24  ;;  %p107_p0 = scmp.ne.s32.totalorder %s7092_s20, %s7088_s19 }
   0x8   : > { %p95_p1 = scmp.eq.s32.totalorder %s94_s26, 0  ;;  %p108_p2 = scmp.eq.s32.totalorder %s7154_s22, 1 }
   0x9   : > { %p113_p3 = scmp.ne.s32.totalorder %s7088_s19, %s7084_s18  ;;  %p114_p4 = scmp.eq.s32.totalorder %s4835_s23, 1 }
   0xa   : > { %s7171_s27 = scalar_select %p95_p1, %s7092_s20, %s97_s25  }
   0xb   : > { %p7173_p5 = por %p108_p2, %p107_p0  ;;  %p7177_p6 = por %p114_p4, %p113_p3 }
   0xc   : > { %p4838_p7 = scmp.ge.s32.totalorder %s7096_s21, 1  ;;  %p199_p8 = scmp.lt.s32.totalorder %s7096_s21, 3 }
   0xe   : > { %p200_p9 = pnand %p4838_p7, %p199_p8 }
  0x10   : > { %203 = sbr.rel (%p200_p9) target bundleno = 822 (0x336), region = 32 }
  0x17   : > { %v6841_v0 = vld [vmem:[%s8748_s1] sm:$0xff]   ;;  %v6842_v1 = vld [vmem:[%s8748_s1 + $0x8] sm:$0xff]   ;;  %s4840_s9 = sshll.u32 %s7154_s22, 8  ;;  %v6843_v2 = vld [vmem:[%s8748_s1 + $0x10] ss:$0 sps:$4 sm:$0x33]  }
  0x18   : > { %6520 = vmatprep.subr.bf16.mxu0 %v6841_v0  ;;  %p236_p10 = scmp.lt.s32.totalorder %s4840_s9, 511  ;;  %6782 = vmatprep.subr.bf16.mxu1 %v6841_v0  ;;  %vm1551_vm0 = vcmask 1041408   ;;  %vm1166_vm1 = vcmask 293888   ;;  %s7352_s16 = sand.u32 1, %s7088_s19  }
  0x19   : > { %6521 = vmatpush3.bf16.msra.mxu0 %v6841_v0  ;;  %6785 = vmatpush3.bf16.msra.mxu1 %v6841_v0  ;;  %v1553_v3 = vsel %vm1551_vm0, %v6843_v2, 0  ;;  %s4839_s26 = sshll.u32 %s7352_s16, 10  ;;  %s5621_s10 = sshll.u32 %s7154_s22, 14 }
  0x1a   : > { %6522 = vmatprep.subr.bf16.mxu0 %v6842_v1  ;;  %s8924_s9 = smov (!%p236_p10, %s4840_s9), 511  ;;  %6783 = vmatprep.subr.bf16.mxu1 %v6842_v1  ;;  %s7373_s30 = scalar_lea.vmem [#allocation2], %s4839_s26 }
  0x1b   : > { %s4841_s12 = sshll.u32 %s8924_s9, 2  ;;  %s4694_s11 = sshll.u32 %s7373_s30, 4  ;;  %s8469_s11 = int_to_ptr.vmem [resolvable:$true] %s4694_s11 }
  0x1c   : > { %s7196_s15 = scalar_lea.vmem %s8747_s0, %s4841_s12  ;;  %s8467_s14 = scalar_lea.hbm %s8750_s3, %s5621_s10 }
  0x1d   : > { %6523 = vmatpush3.bf16.msra.mxu0 %v6842_v1  ;;  %6786 = vmatpush3.bf16.msra.mxu1 %v6842_v1  ;;  %v6844_v4 = vld [vmem:[%s7196_s15] sm:$0xff]   ;;  %v6845_v5 = vld [vmem:[%s7196_s15 + $0x8] sm:$0xff]   ;;  %v6846_v6 = vld [vmem:[%s7196_s15 + $0x10] sm:$0xff]   ;;  %s6974_s17 = scalar_lea.vmem %s8469_s11, 16384  ;;  %s7098_s25 = smov [#allocation2]  }
  0x1e   : > { %6788 = vmatprep.subr.msk.bf16.mxu0 %vm1551_vm0, %v6843_v2  ;;  %6789 = vmatprep.subr.msk.bf16.mxu1 %vm1551_vm0, %v6843_v2  ;;  %v6847_v7 = vld [vmem:[%s7196_s15 + $0x18] sm:$0xff]   ;;  %v6848_v8 = vld [vmem:[%s7196_s15 + $0x20] sm:$0xff]   ;;  %v6849_v9 = vld [vmem:[%s7196_s15 + $0x28] sm:$0xff]   ;;  %p6975_p11 = scmp.ne.s32.totalorder %s8469_s11, %s6974_s17  ;;  %s6978_s26 = sshll.u32 %s7098_s25, 4  ;;  %s6979_s26 = int_to_ptr.vmem [resolvable:$false] %s6978_s26 }
  0x1f   : > { %6526 = vmatprep.mubr.msk.bf16.mxu0 %vm1166_vm1, %v6844_v4  ;;  %v6850_v10 = vld [vmem:[%s7196_s15 + $0x30] sm:$0xff]   ;;  %v6851_v11 = vld [vmem:[%s7196_s15 + $0x38] sm:$0xff]   ;;  %v6852_v12 = vld [vmem:[%s7196_s15 + $0x40] sm:$0xff]   ;;  %p6981_p0 = scmp.lt.s32.totalorder %s8469_s11, %s6979_s26 }
  0x20   : > { %v6853_v13 = vld [vmem:[%s7196_s15 + $0x48] sm:$0xff]   ;;  %v6854_v14 = vld [vmem:[%s7196_s15 + $0x50] sm:$0xff]   ;;  %v6855_v15 = vld [vmem:[%s7196_s15 + $0x58] sm:$0xff]   ;;  %p6976_p12 = pnand %p6975_p11, %p7173_p5 }
  0x21   : > { %6525 = vmatpush3.bf16.msra.mxu0 %v1553_v3  ;;  %6787 = vmatpush3.bf16.msra.mxu1 %v1553_v3  ;;  %v6856_v16 = vld [vmem:[%s7196_s15 + $0x60] sm:$0xff]   ;;  %v6857_v17 = vld [vmem:[%s7196_s15 + $0x68] sm:$0xff]   ;;  %v6858_v18 = vld [vmem:[%s7196_s15 + $0x70] sm:$0xff]  }
  0x22   : > { %v6859_v19 = vld [vmem:[%s7196_s15 + $0x78] sm:$0xff]   ;;  %v6860_v20 = vld [vmem:[%s7196_s15 + $0x80] sm:$0xff]   ;;  %v6861_v21 = vld [vmem:[%s7196_s15 + $0x88] sm:$0xff]   ;;  %p6977_p13 = pneg %p6976_p12 }
  0x23   : > { %v6862_v22 = vld [vmem:[%s7196_s15 + $0x90] sm:$0xff]   ;;  %v6863_v23 = vld [vmem:[%s7196_s15 + $0x98] sm:$0xff]   ;;  %v6864_v24 = vld [vmem:[%s7196_s15 + $0xa0] sm:$0xff]  }
  0x24   : > { %6527 = vmatmul.mubr.msk.bf16.vlgmr.msra.gmra.mrb[0].mxu0 %vm1166_vm1, %v6845_v5  ;;  %v6865_v25 = vld [vmem:[%s7196_s15 + $0xa8] sm:$0xff]   ;;  %v6866_v26 = vld [vmem:[%s7196_s15 + $0xb0] sm:$0xff]   ;;  %v6867_v27 = vld [vmem:[%s7196_s15 + $0xb8] sm:$0xff]  }
  0x25   : > { %6530 = vmatprep.mubr.msk.bf16.mxu0 %vm1166_vm1, %v6846_v6  ;;  %v6868_v28 = vld [vmem:[%s7196_s15 + $0xc0] sm:$0xff]   ;;  %v6869_v29 = vld [vmem:[%s7196_s15 + $0xc8] sm:$0xff]   ;;  %v6870_v30 = vld [vmem:[%s7196_s15 + $0xd0] sm:$0xff]  }
  0x26   : > { %v6871_v31 = vld [vmem:[%s7196_s15 + $0xd8] sm:$0xff]   ;;  %v6872_v32 = vld [vmem:[%s7196_s15 + $0xe0] sm:$0xff]   ;;  %v6873_v33 = vld [vmem:[%s7196_s15 + $0xe8] sm:$0xff]  }
  0x27   : > { %v6874_v34 = vld [vmem:[%s7196_s15 + $0xf0] sm:$0xff]   ;;  %v6875_v35 = vld [vmem:[%s7196_s15 + $0xf8] sm:$0xff]   ;;  %v6876_v36 = vld [vmem:[%s7196_s15 + $0x100] sm:$0xff]  }
  0x28   : > { %v6908_v37 = vld [vmem:[%s7196_s15 + $0x200] sm:$0xff]   ;;  %v6909_v38 = vld [vmem:[%s7196_s15 + $0x208] sm:$0xff]   ;;  %v6878_v40 = vld [vmem:[%s7196_s15 + $0x110] sm:$0xff]  }
  0x29   : > { %v6877_v39 = vld [vmem:[%s7196_s15 + $0x108] sm:$0xff]   ;;  %6654 = vmatprep.mubr.msk.bf16.mxu1 %vm1166_vm1, %v6908_v37  ;;  %v6910_v41 = vld [vmem:[%s7196_s15 + $0x210] sm:$0xff]   ;;  %v6911_v42 = vld [vmem:[%s7196_s15 + $0x218] sm:$0xff]  }
  0x2a   : > { %6655 = vmatmul.mubr.msk.bf16.vlgmr.msra.gmra.mrb[0].mxu1 %vm1166_vm1, %v6909_v38  ;;  %v6879_v43 = vld [vmem:[%s7196_s15 + $0x118] sm:$0xff]   ;;  %v6880_v44 = vld [vmem:[%s7196_s15 + $0x120] sm:$0xff]   ;;  %v6913_v46 = vld [vmem:[%s7196_s15 + $0x228] sm:$0xff]  }
  0x2b   : > { %6658 = vmatprep.mubr.msk.bf16.mxu1 %vm1166_vm1, %v6910_v41  ;;  %v6912_v45 = vld [vmem:[%s7196_s15 + $0x220] sm:$0xff]   ;;  %v6881_v47 = vld [vmem:[%s7196_s15 + $0x128] sm:$0xff]   ;;  %v6882_v48 = vld [vmem:[%s7196_s15 + $0x130] sm:$0xff]  }
  0x2c   : > { %6531 = vmatmul.mubr.msk.bf16.gmra.mrb[4].mxu0 %vm1166_vm1, %v6847_v7  ;;  %v6914_v49 = vld [vmem:[%s7196_s15 + $0x230] sm:$0xff]   ;;  %v6915_v50 = vld [vmem:[%s7196_s15 + $0x238] sm:$0xff]   ;;  %v6884_v52 = vld [vmem:[%s7196_s15 + $0x140] sm:$0xff]  }
  0x2d   : > { %6534 = vmatprep.mubr.msk.bf16.mxu0 %vm1166_vm1, %v6848_v8  ;;  %v6883_v51 = vld [vmem:[%s7196_s15 + $0x138] sm:$0xff]   ;;  %v6916_v53 = vld [vmem:[%s7196_s15 + $0x240] sm:$0xff]   ;;  %v6917_v54 = vld [vmem:[%s7196_s15 + $0x248] sm:$0xff]  }
  0x2e   : > { %v6885_v55 = vld [vmem:[%s7196_s15 + $0x148] sm:$0xff]   ;;  %v6886_v56 = vld [vmem:[%s7196_s15 + $0x150] sm:$0xff]   ;;  %v6919_v58 = vld [vmem:[%s7196_s15 + $0x258] sm:$0xff]  }
  0x2f   : > { %v6918_v57 = vld [vmem:[%s7196_s15 + $0x250] sm:$0xff]   ;;  %v6887_v59 = vld [vmem:[%s7196_s15 + $0x158] sm:$0xff]   ;;  %v6888_v60 = vld [vmem:[%s7196_s15 + $0x160] sm:$0xff]  }
  0x30   : > { %v6920_v61 = vld [vmem:[%s7196_s15 + $0x260] sm:$0xff]   ;;  %v6921_v62 = vld [vmem:[%s7196_s15 + $0x268] sm:$0xff]   ;;  %v6890_v0 = vld [vmem:[%s7196_s15 + $0x170] sm:$0xff]  }
  0x31   : > { %v6889_v63 = vld [vmem:[%s7196_s15 + $0x168] sm:$0xff]   ;;  %v6922_v1 = vld [vmem:[%s7196_s15 + $0x270] sm:$0xff]   ;;  %v6923_v2 = vld [vmem:[%s7196_s15 + $0x278] sm:$0xff]  }
  0x32   : > { %6659 = vmatmul.mubr.msk.bf16.gmra.mrb[4].mxu1 %vm1166_vm1, %v6911_v42  ;;  %v6891_v3 = vld [vmem:[%s7196_s15 + $0x178] sm:$0xff]   ;;  %v6892_v4 = vld [vmem:[%s7196_s15 + $0x180] sm:$0xff]   ;;  %v6925_v6 = vld [vmem:[%s7196_s15 + $0x288] sm:$0xff]  }
  0x33   : > { %6662 = vmatprep.mubr.msk.bf16.mxu1 %vm1166_vm1, %v6912_v45  ;;  %v6924_v5 = vld [vmem:[%s7196_s15 + $0x280] sm:$0xff]   ;;  %v6893_v7 = vld [vmem:[%s7196_s15 + $0x188] sm:$0xff]   ;;  %v6894_v8 = vld [vmem:[%s7196_s15 + $0x190] sm:$0xff]  }
  0x34   : > { %6535 = vmatmul.mubr.msk.bf16.gmra.mrb[8].mxu0 %vm1166_vm1, %v6849_v9  ;;  %v6926_v9 = vld [vmem:[%s7196_s15 + $0x290] sm:$0xff]   ;;  %v6901_v42 = vld [vmem:[%s7196_s15 + $0x1c8] sm:$0xff]  }
  0x35   : > { %6538 = vmatprep.mubr.msk.bf16.mxu0 %vm1166_vm1, %v6850_v10  ;;  %v6927_v10 = vld [vmem:[%s7196_s15 + $0x298] sm:$0xff]  }
  0x3a   : > { %6663 = vmatmul.mubr.msk.bf16.gmra.mrb[8].mxu1 %vm1166_vm1, %v6913_v46 }
  0x3b   : > { %6666 = vmatprep.mubr.msk.bf16.mxu1 %vm1166_vm1, %v6914_v49 }
  0x3c   : > { %6539 = vmatmul.mubr.msk.bf16.gmra.mrb[12].mxu0 %vm1166_vm1, %v6851_v11  ;;  %v6895_v11 = vld [vmem:[%s7196_s15 + $0x198] sm:$0xff]  }
  0x3d   : > { %6542 = vmatprep.mubr.msk.bf16.mxu0 %vm1166_vm1, %v6852_v12  ;;  %v6896_v12 = vld [vmem:[%s7196_s15 + $0x1a0] sm:$0xff]  }
  0x42   : > { %6667 = vmatmul.mubr.msk.bf16.gmra.mrb[12].mxu1 %vm1166_vm1, %v6915_v50 }
  0x43   : > { %6670 = vmatprep.mubr.msk.bf16.mxu1 %vm1166_vm1, %v6916_v53 }
  0x44   : > { %6543 = vmatmul.mubr.msk.bf16.gmra.mrb[16].mxu0 %vm1166_vm1, %v6853_v13  ;;  %v6928_v13 = vld [vmem:[%s7196_s15 + $0x2a0] sm:$0xff]  }
  0x45   : > { %6546 = vmatprep.mubr.msk.bf16.mxu0 %vm1166_vm1, %v6854_v14  ;;  %v6929_v14 = vld [vmem:[%s7196_s15 + $0x2a8] sm:$0xff]  }
  0x4a   : > { %6671 = vmatmul.mubr.msk.bf16.gmra.mrb[16].mxu1 %vm1166_vm1, %v6917_v54 }
  0x4b   : > { %6674 = vmatprep.mubr.msk.bf16.mxu1 %vm1166_vm1, %v6918_v57 }
  0x4c   : > { %6547 = vmatmul.mubr.msk.bf16.gmra.mrb[20].mxu0 %vm1166_vm1, %v6855_v15  ;;  %v6897_v15 = vld [vmem:[%s7196_s15 + $0x1a8] sm:$0xff]  }
  0x4d   : > { %6550 = vmatprep.mubr.msk.bf16.mxu0 %vm1166_vm1, %v6856_v16  ;;  %v6898_v16 = vld [vmem:[%s7196_s15 + $0x1b0] sm:$0xff]  }
  0x52   : > { %6675 = vmatmul.mubr.msk.bf16.gmra.mrb[20].mxu1 %vm1166_vm1, %v6919_v58 }
  0x53   : > { %6678 = vmatprep.mubr.msk.bf16.mxu1 %vm1166_vm1, %v6920_v61  ;;  %v6934_v61 = vld [vmem:[%s7196_s15 + $0x2d0] sm:$0xff]  }
  0x54   : > { %6551 = vmatmul.mubr.msk.bf16.gmra.mrb[24].mxu0 %vm1166_vm1, %v6857_v17  ;;  %v7358_v17 = vld [vmem:[%s8749_s2] ss:$0 sm:$0xff] }
  0x55   : > { %6554 = vmatprep.mubr.msk.bf16.mxu0 %vm1166_vm1, %v6858_v18  ;;  %v6930_v18 = vld [vmem:[%s7196_s15 + $0x2b0] sm:$0xff]  }
  0x5a   : > { %6679 = vmatmul.mubr.msk.bf16.gmra.mrb[24].mxu1 %vm1166_vm1, %v6921_v62 }
  0x5b   : > { %6682 = vmatprep.mubr.msk.bf16.mxu1 %vm1166_vm1, %v6922_v1 }
  0x5c   : > { %6555 = vmatmul.mubr.msk.bf16.gmra.mrb[28].mxu0 %vm1166_vm1, %v6859_v19 }
  0x5d   : > { %6558 = vmatprep.mubr.msk.bf16.mxu0 %vm1166_vm1, %v6860_v20  ;;  %v6931_v20 = vld [vmem:[%s7196_s15 + $0x2b8] sm:$0xff]  }
  0x62   : > { %6683 = vmatmul.mubr.msk.bf16.gmra.mrb[28].mxu1 %vm1166_vm1, %v6923_v2  ;;  %v6935_v2 = vld [vmem:[%s7196_s15 + $0x2d8] sm:$0xff]  }
  0x63   : > { %6686 = vmatprep.mubr.msk.bf16.mxu1 %vm1166_vm1, %v6924_v5 }
  0x64   : > { %6559 = vmatmul.mubr.msk.bf16.gmra.mrb[32].mxu0 %vm1166_vm1, %v6861_v21 }
  0x65   : > { %6562 = vmatprep.mubr.msk.bf16.mxu0 %vm1166_vm1, %v6862_v22  ;;  %v6899_v22 = vld [vmem:[%s7196_s15 + $0x1b8] sm:$0xff]  }
  0x6a   : > { %6687 = vmatmul.mubr.msk.bf16.gmra.mrb[32].mxu1 %vm1166_vm1, %v6925_v6 }
  0x6b   : > { %6690 = vmatprep.mubr.msk.bf16.mxu1 %vm1166_vm1, %v6926_v9 }
  0x6c   : > { %6563 = vmatmul.mubr.msk.bf16.gmra.mrb[36].mxu0 %vm1166_vm1, %v6863_v23 }
  0x6d   : > { %6566 = vmatprep.mubr.msk.bf16.mxu0 %vm1166_vm1, %v6864_v24 }
  0x72   : > { %6691 = vmatmul.mubr.msk.bf16.gmra.mrb[36].mxu1 %vm1166_vm1, %v6927_v10  ;;  %v6904_v10 = vld [vmem:[%s7196_s15 + $0x1e0] sm:$0xff]  }
  0x73   : > { %6694 = vmatprep.mubr.msk.bf16.mxu1 %vm1166_vm1, %v6928_v13 }
  0x74   : > { %6567 = vmatmul.mubr.msk.bf16.gmra.mrb[40].mxu0 %vm1166_vm1, %v6865_v25  ;;  %v6900_v25 = vld [vmem:[%s7196_s15 + $0x1c0] sm:$0xff]  }
  0x75   : > { %6570 = vmatprep.mubr.msk.bf16.mxu0 %vm1166_vm1, %v6866_v26 }
  0x7a   : > { %6695 = vmatmul.mubr.msk.bf16.gmra.mrb[40].mxu1 %vm1166_vm1, %v6929_v14 }
  0x7b   : > { %6698 = vmatprep.mubr.msk.bf16.mxu1 %vm1166_vm1, %v6930_v18 }
  0x7c   : > { %6571 = vmatmul.mubr.msk.bf16.gmra.mrb[44].mxu0 %vm1166_vm1, %v6867_v27 }
  0x7d   : > { %6574 = vmatprep.mubr.msk.bf16.mxu0 %vm1166_vm1, %v6868_v28 }
  0x82   : > { %6699 = vmatmul.mubr.msk.bf16.gmra.mrb[44].mxu1 %vm1166_vm1, %v6931_v20 }
  0x84   : > { %6575 = vmatmul.mubr.msk.bf16.gmra.mrb[48].mxu0 %vm1166_vm1, %v6869_v29 }
  0x85   : > { %6578 = vmatprep.mubr.msk.bf16.mxu0 %vm1166_vm1, %v6870_v30 }
  0x8c   : > { %6579 = vmatmul.mubr.msk.bf16.gmra.mrb[52].mxu0 %vm1166_vm1, %v6871_v31 }
  0x8d   : > { %6582 = vmatprep.mubr.msk.bf16.mxu0 %vm1166_vm1, %v6872_v32 }
  0x94   : > { %6583 = vmatmul.mubr.msk.bf16.gmra.mrb[56].mxu0 %vm1166_vm1, %v6873_v33 }
  0x95   : > { %6586 = vmatprep.mubr.msk.bf16.mxu0 %vm1166_vm1, %v6874_v34 }
  0x9c   : > { %6587 = vmatmul.mubr.msk.bf16.gmra.mrb[60].mxu0 %vm1166_vm1, %v6875_v35  ;;  %v6932_v35 = vld [vmem:[%s7196_s15 + $0x2c0] sm:$0xff]  }
  0x9d   : > { %6590 = vmatprep.mubr.msk.bf16.mxu0 %vm1166_vm1, %v6876_v36  ;;  %6702 = vmatprep.mubr.msk.bf16.mxu1 %vm1166_vm1, %v6932_v35 }
  0xa4   : > { %6591 = vmatmul.mubr.msk.bf16.gmra.mrb[64].mxu0 %vm1166_vm1, %v6877_v39 }
  0xa5   : > { %6594 = vmatprep.mubr.msk.bf16.mxu0 %vm1166_vm1, %v6878_v40  ;;  %v6933_v40 = vld [vmem:[%s7196_s15 + $0x2c8] sm:$0xff]  }
  0xa6   : > { %6703 = vmatmul.mubr.msk.bf16.gmra.mrb[48].mxu1 %vm1166_vm1, %v6933_v40 }
  0xa7   : > { %6706 = vmatprep.mubr.msk.bf16.mxu1 %vm1166_vm1, %v6934_v61 }
  0xac   : > { %6595 = vmatmul.mubr.msk.bf16.gmra.mrb[68].mxu0 %vm1166_vm1, %v6879_v43 }
  0xad   : > { %6598 = vmatprep.mubr.msk.bf16.mxu0 %vm1166_vm1, %v6880_v44 }
  0xae   : > { %6707 = vmatmul.mubr.msk.bf16.gmra.mrb[52].mxu1 %vm1166_vm1, %v6935_v2 }
  0xb4   : > { %6599 = vmatmul.mubr.msk.bf16.gmra.mrb[72].mxu0 %vm1166_vm1, %v6881_v47 }
  0xb5   : > { %6602 = vmatprep.mubr.msk.bf16.mxu0 %vm1166_vm1, %v6882_v48  ;;  %v6902_v48 = vld [vmem:[%s7196_s15 + $0x1d0] sm:$0xff]  }
  0xbc   : > { %6603 = vmatmul.mubr.msk.bf16.gmra.mrb[76].mxu0 %vm1166_vm1, %v6883_v51 }
  0xbd   : > { %6606 = vmatprep.mubr.msk.bf16.mxu0 %vm1166_vm1, %v6884_v52 }
  0xc4   : > { %6607 = vmatmul.mubr.msk.bf16.gmra.mrb[80].mxu0 %vm1166_vm1, %v6885_v55 }
  0xc5   : > { %6610 = vmatprep.mubr.msk.bf16.mxu0 %vm1166_vm1, %v6886_v56 }
  0xcc   : > { %6611 = vmatmul.mubr.msk.bf16.gmra.mrb[84].mxu0 %vm1166_vm1, %v6887_v59 }
  0xcd   : > { %6614 = vmatprep.mubr.msk.bf16.mxu0 %vm1166_vm1, %v6888_v60 }
  0xd4   : > { %6615 = vmatmul.mubr.msk.bf16.gmra.mrb[88].mxu0 %vm1166_vm1, %v6889_v63 }
  0xd5   : > { %6618 = vmatprep.mubr.msk.bf16.mxu0 %vm1166_vm1, %v6890_v0 }
  0xdc   : > { %6619 = vmatmul.mubr.msk.bf16.gmra.mrb[92].mxu0 %vm1166_vm1, %v6891_v3 }
  0xdd   : > { %6622 = vmatprep.mubr.msk.bf16.mxu0 %vm1166_vm1, %v6892_v4  ;;  %v6903_v4 = vld [vmem:[%s7196_s15 + $0x1d8] sm:$0xff]  }
  0xe4   : > { %6623 = vmatmul.mubr.msk.bf16.gmra.mrb[96].mxu0 %vm1166_vm1, %v6893_v7 }
  0xe5   : > { %6626 = vmatprep.mubr.msk.bf16.mxu0 %vm1166_vm1, %v6894_v8 }
  0xec   : > { %6627 = vmatmul.mubr.msk.bf16.gmra.mrb[100].mxu0 %vm1166_vm1, %v6895_v11 }
  0xed   : > { %6630 = vmatprep.mubr.msk.bf16.mxu0 %vm1166_vm1, %v6896_v12 }
  0xf4   : > { %6631 = vmatmul.mubr.msk.bf16.gmra.mrb[104].mxu0 %vm1166_vm1, %v6897_v15 }
  0xf5   : > { %6634 = vmatprep.mubr.msk.bf16.mxu0 %vm1166_vm1, %v6898_v16 }
  0xf7   : > { %v6528_v19 = vpop.f32.mrb[0].mxu0 }
  0xf8   : > { %v1589_v21 = vpop.f32.mrb[1].mxu0  ;;  %v1598_v26 = vadd.f32 %v6528_v19, %v7358_v17 }
  0xf9   : > { %v1590_v23 = vadd.f32 %v7358_v17, %v1589_v21  ;;  %v6529_v24 = vpop.f32.mrb[2].mxu0 }
  0xfa   : > { %v1601_v27 = vadd.f32 %v6529_v24, %v7358_v17  ;;  %v1592_v28 = vpop.f32.mrb[3].mxu0  ;;  %v2876_v36 = vmul.f32 %v1598_v26, %v1598_v26  ;;  %v6936_v24 = vld [vmem:[%s7196_s15 + $0x2e0] sm:$0xff]  }
  0xfb   : > { %v1593_v29 = vadd.f32 %v7358_v17, %v1592_v28  ;;  %v2874_v31 = vmul.f32 %v1590_v23, %v1590_v23  ;;  %6710 = vmatprep.mubr.msk.bf16.mxu1 %vm1166_vm1, %v6936_v24 }
  0xfc   : > { %v5630_v30 = vpack.c.bf16 %v1601_v27, %v1598_v26  ;;  %6635 = vmatmul.mubr.msk.bf16.gmra.mrb[108].mxu0 %vm1166_vm1, %v6899_v22  ;;  %v2877_v43 = vmul.f32 %v1601_v27, %v1601_v27 }
  0xfd   : > { %v2612_v32 = vadd.f32 %v1593_v29, %v1590_v23  ;;  %v2875_v33 = vmul.f32 %v1593_v29, %v1593_v29  ;;  %v5625_v34 = vpack.c.bf16 %v1593_v29, %v1590_v23  ;;  %6638 = vmatprep.mubr.msk.bf16.mxu0 %vm1166_vm1, %v6900_v25  ;;  %v6937_v29 = vld [vmem:[%s7196_s15 + $0x2e8] sm:$0xff]  }
  0xfe   : > { %6262 = vst [vmem:[%s7373_s30 + $0x8] sm:$0xff] %v5630_v30   ;;  %6711 = vmatmul.mubr.msk.bf16.gmra.mrb[56].mxu1 %vm1166_vm1, %v6937_v29 }
  0xff   : > { %v2613_v37 = vadd.f32 %v2612_v32, %v1598_v26  ;;  %v3130_v38 = vadd.f32 %v2875_v33, %v2874_v31  ;;  %5626 = vst [vmem:[%s7373_s30] sm:$0xff] %v5625_v34   ;;  %v6532_v39 = vpop.f32.mrb[4].mxu0  ;;  %v6905_v31 = vld [vmem:[%s7196_s15 + $0x1e8] sm:$0xff]  }
 0x100   : > { %v1605_v41 = vpop.f32.mrb[5].mxu0  ;;  %v1614_v49 = vadd.f32 %v6532_v39, %v7358_v17 }
 0x101   : > { %v2614_v44 = vadd.f32 %v2613_v37, %v1601_v27  ;;  %v3131_v45 = vadd.f32 %v3130_v38, %v2876_v36  ;;  %v1606_v46 = vadd.f32 %v7358_v17, %v1605_v41  ;;  %v6533_v47 = vpop.f32.mrb[6].mxu0  ;;  %v6906_v37 = vld [vmem:[%s7196_s15 + $0x1f0] sm:$0xff]  }
 0x102   : > { %v1617_v50 = vadd.f32 %v6533_v47, %v7358_v17  ;;  %v1608_v51 = vpop.f32.mrb[7].mxu0  ;;  %v2880_v62 = vmul.f32 %v1614_v49, %v1614_v49 }
 0x103   : > { %v3132_v52 = vadd.f32 %v3131_v45, %v2877_v43  ;;  %v2615_v53 = vadd.f32 %v2614_v44, %v1606_v46  ;;  %v2878_v54 = vmul.f32 %v1606_v46, %v1606_v46  ;;  %v1609_v55 = vadd.f32 %v7358_v17, %v1608_v51 }
 0x104   : > { %v5640_v56 = vpack.c.bf16 %v1617_v50, %v1614_v49  ;;  %6639 = vmatmul.mubr.msk.bf16.gmra.mrb[112].mxu0 %vm1166_vm1, %v6901_v42  ;;  %v2881_v5 = vmul.f32 %v1617_v50, %v1617_v50 }
 0x105   : > { %v3133_v57 = vadd.f32 %v3132_v52, %v2878_v54  ;;  %v2616_v58 = vadd.f32 %v2615_v53, %v1609_v55  ;;  %v2879_v59 = vmul.f32 %v1609_v55, %v1609_v55  ;;  %v5635_v60 = vpack.c.bf16 %v1609_v55, %v1606_v46  ;;  %6642 = vmatprep.mubr.msk.bf16.mxu0 %vm1166_vm1, %v6902_v48  ;;  %v6939_v55 = vld [vmem:[%s7196_s15 + $0x2f8] sm:$0xff]  }
 0x106   : > { %6264 = vst [vmem:[%s7373_s30 + $0x18] sm:$0xff] %v5640_v56  }
 0x107   : > { %v2617_v63 = vadd.f32 %v2616_v58, %v1614_v49  ;;  %v3134_v0 = vadd.f32 %v3133_v57, %v2879_v59  ;;  %6263 = vst [vmem:[%s7373_s30 + $0x10] sm:$0xff] %v5635_v60   ;;  %v6536_v1 = vpop.f32.mrb[8].mxu0  ;;  %v6907_v57 = vld [vmem:[%s7196_s15 + $0x1f8] sm:$0xff]  }
 0x108   : > { %v1621_v3 = vpop.f32.mrb[9].mxu0  ;;  %v1630_v11 = vadd.f32 %v6536_v1, %v7358_v17 }
 0x109   : > { %v2618_v6 = vadd.f32 %v2617_v63, %v1617_v50  ;;  %v3135_v7 = vadd.f32 %v3134_v0, %v2880_v62  ;;  %v1622_v8 = vadd.f32 %v7358_v17, %v1621_v3  ;;  %v6537_v9 = vpop.f32.mrb[10].mxu0  ;;  %v6938_v50 = vld [vmem:[%s7196_s15 + $0x2f0] sm:$0xff]  }
 0x10a   : > { %v1633_v12 = vadd.f32 %v6537_v9, %v7358_v17  ;;  %v1624_v13 = vpop.f32.mrb[11].mxu0  ;;  %v2884_v25 = vmul.f32 %v1630_v11, %v1630_v11  ;;  %6714 = vmatprep.mubr.msk.bf16.mxu1 %vm1166_vm1, %v6938_v50 }
 0x10b   : > { %v3136_v14 = vadd.f32 %v3135_v7, %v2881_v5  ;;  %v2619_v15 = vadd.f32 %v2618_v6, %v1622_v8  ;;  %v2882_v16 = vmul.f32 %v1622_v8, %v1622_v8  ;;  %v1625_v18 = vadd.f32 %v7358_v17, %v1624_v13  ;;  %6715 = vmatmul.mubr.msk.bf16.gmra.mrb[60].mxu1 %vm1166_vm1, %v6939_v55 }
 0x10c   : > { %v5650_v19 = vpack.c.bf16 %v1633_v12, %v1630_v11  ;;  %6643 = vmatmul.mubr.msk.bf16.gmra.mrb[116].mxu0 %vm1166_vm1, %v6903_v4  ;;  %v2885_v32 = vmul.f32 %v1633_v12, %v1633_v12 }
 0x10d   : > { %v3137_v20 = vadd.f32 %v3136_v14, %v2882_v16  ;;  %v2620_v21 = vadd.f32 %v2619_v15, %v1625_v18  ;;  %v2883_v22 = vmul.f32 %v1625_v18, %v1625_v18  ;;  %v5645_v23 = vpack.c.bf16 %v1625_v18, %v1622_v8  ;;  %6646 = vmatprep.mubr.msk.bf16.mxu0 %vm1166_vm1, %v6904_v10  ;;  %v6941_v16 = vld [vmem:[%s7196_s15 + $0x308] sm:$0xff]  }
 0x10e   : > { %6266 = vst [vmem:[%s7373_s30 + $0x28] sm:$0xff] %v5650_v19  }
 0x10f   : > { %v2621_v26 = vadd.f32 %v2620_v21, %v1630_v11  ;;  %v3138_v27 = vadd.f32 %v3137_v20, %v2883_v22  ;;  %6265 = vst [vmem:[%s7373_s30 + $0x20] sm:$0xff] %v5645_v23   ;;  %v6540_v28 = vpop.f32.mrb[12].mxu0  ;;  %v6940_v11 = vld [vmem:[%s7196_s15 + $0x300] sm:$0xff]  }
 0x110   : > { %v1637_v30 = vpop.f32.mrb[13].mxu0  ;;  %v1646_v38 = vadd.f32 %v6540_v28, %v7358_v17  ;;  %6718 = vmatprep.mubr.msk.bf16.mxu1 %vm1166_vm1, %v6940_v11 }
 0x111   : > { %v2622_v33 = vadd.f32 %v2621_v26, %v1633_v12  ;;  %v3139_v34 = vadd.f32 %v3138_v27, %v2884_v25  ;;  %v1638_v35 = vadd.f32 %v7358_v17, %v1637_v30  ;;  %v6541_v36 = vpop.f32.mrb[14].mxu0 }
 0x112   : > { %v1649_v39 = vadd.f32 %v6541_v36, %v7358_v17  ;;  %v1640_v40 = vpop.f32.mrb[15].mxu0  ;;  %v2888_v51 = vmul.f32 %v1646_v38, %v1646_v38  ;;  %v6942_v36 = vld [vmem:[%s7196_s15 + $0x310] sm:$0xff]  }
 0x113   : > { %v3140_v41 = vadd.f32 %v3139_v34, %v2885_v32  ;;  %v2623_v42 = vadd.f32 %v2622_v33, %v1638_v35  ;;  %v2886_v43 = vmul.f32 %v1638_v35, %v1638_v35  ;;  %v1641_v44 = vadd.f32 %v7358_v17, %v1640_v40  ;;  %6719 = vmatmul.mubr.msk.bf16.gmra.mrb[64].mxu1 %vm1166_vm1, %v6941_v16 }
 0x114   : > { %v5660_v45 = vpack.c.bf16 %v1649_v39, %v1646_v38  ;;  %6647 = vmatmul.mubr.msk.bf16.gmra.mrb[120].mxu0 %vm1166_vm1, %v6905_v31  ;;  %v2889_v58 = vmul.f32 %v1649_v39, %v1649_v39  ;;  %6722 = vmatprep.mubr.msk.bf16.mxu1 %vm1166_vm1, %v6942_v36 }
 0x115   : > { %v3141_v46 = vadd.f32 %v3140_v41, %v2886_v43  ;;  %v2624_v47 = vadd.f32 %v2623_v42, %v1641_v44  ;;  %v2887_v48 = vmul.f32 %v1641_v44, %v1641_v44  ;;  %v5655_v49 = vpack.c.bf16 %v1641_v44, %v1638_v35  ;;  %6650 = vmatprep.mubr.msk.bf16.mxu0 %vm1166_vm1, %v6906_v37  ;;  %v6943_v41 = vld [vmem:[%s7196_s15 + $0x318] sm:$0xff]  }
 0x116   : > { %6268 = vst [vmem:[%s7373_s30 + $0x38] sm:$0xff] %v5660_v45  }
 0x117   : > { %v2625_v52 = vadd.f32 %v2624_v47, %v1646_v38  ;;  %v3142_v53 = vadd.f32 %v3141_v46, %v2887_v48  ;;  %6267 = vst [vmem:[%s7373_s30 + $0x30] sm:$0xff] %v5655_v49   ;;  %v6544_v54 = vpop.f32.mrb[16].mxu0 }
 0x118   : > { %v1653_v56 = vpop.f32.mrb[17].mxu0  ;;  %v1662_v63 = vadd.f32 %v6544_v54, %v7358_v17 }
 0x119   : > { %v2626_v59 = vadd.f32 %v2625_v52, %v1649_v39  ;;  %v3143_v60 = vadd.f32 %v3142_v53, %v2888_v51  ;;  %v1654_v61 = vadd.f32 %v7358_v17, %v1653_v56  ;;  %v6545_v62 = vpop.f32.mrb[18].mxu0 }
 0x11a   : > { %v1665_v0 = vadd.f32 %v6545_v62, %v7358_v17  ;;  %v1656_v1 = vpop.f32.mrb[19].mxu0  ;;  %v2892_v12 = vmul.f32 %v1662_v63, %v1662_v63 }
 0x11b   : > { %v3144_v2 = vadd.f32 %v3143_v60, %v2889_v58  ;;  %v2627_v3 = vadd.f32 %v2626_v59, %v1654_v61  ;;  %v2890_v4 = vmul.f32 %v1654_v61, %v1654_v61  ;;  %v1657_v5 = vadd.f32 %v7358_v17, %v1656_v1  ;;  %6723 = vmatmul.mubr.msk.bf16.gmra.mrb[68].mxu1 %vm1166_vm1, %v6943_v41  ;;  %v6944_v60 = vld [vmem:[%s7196_s15 + $0x320] sm:$0xff]   ;;  %v6945_v1 = vld [vmem:[%s7196_s15 + $0x328] sm:$0xff]  }
 0x11c   : > { %v5670_v6 = vpack.c.bf16 %v1665_v0, %v1662_v63  ;;  %6651 = vmatmul.mubr.msk.bf16.gmra.mrb[124].mxu0 %vm1166_vm1, %v6907_v57  ;;  %v2893_v19 = vmul.f32 %v1665_v0, %v1665_v0  ;;  %6726 = vmatprep.mubr.msk.bf16.mxu1 %vm1166_vm1, %v6944_v60 }
 0x11d   : > { %v3145_v7 = vadd.f32 %v3144_v2, %v2890_v4  ;;  %v2628_v8 = vadd.f32 %v2627_v3, %v1657_v5  ;;  %v2891_v9 = vmul.f32 %v1657_v5, %v1657_v5  ;;  %v5665_v10 = vpack.c.bf16 %v1657_v5, %v1654_v61 }
 0x11e   : > { %6270 = vst [vmem:[%s7373_s30 + $0x48] sm:$0xff] %v5670_v6  }
 0x11f   : > { %v2629_v13 = vadd.f32 %v2628_v8, %v1662_v63  ;;  %v3146_v14 = vadd.f32 %v3145_v7, %v2891_v9  ;;  %6269 = vst [vmem:[%s7373_s30 + $0x40] sm:$0xff] %v5665_v10   ;;  %v6548_v15 = vpop.f32.mrb[20].mxu0 }
 0x120   : > { %v1669_v18 = vpop.f32.mrb[21].mxu0  ;;  %v1678_v24 = vadd.f32 %v6548_v15, %v7358_v17 }
 0x121   : > { %v2630_v20 = vadd.f32 %v2629_v13, %v1665_v0  ;;  %v3147_v21 = vadd.f32 %v3146_v14, %v2892_v12  ;;  %v1670_v22 = vadd.f32 %v7358_v17, %v1669_v18  ;;  %v6549_v23 = vpop.f32.mrb[22].mxu0 }
 0x122   : > { %v1681_v25 = vadd.f32 %v6549_v23, %v7358_v17  ;;  %v1672_v26 = vpop.f32.mrb[23].mxu0  ;;  %v2896_v37 = vmul.f32 %v1678_v24, %v1678_v24 }
 0x123   : > { %v3148_v27 = vadd.f32 %v3147_v21, %v2893_v19  ;;  %v2631_v28 = vadd.f32 %v2630_v20, %v1670_v22  ;;  %v2894_v29 = vmul.f32 %v1670_v22, %v1670_v22  ;;  %v1673_v30 = vadd.f32 %v7358_v17, %v1672_v26  ;;  %6727 = vmatmul.mubr.msk.bf16.gmra.mrb[72].mxu1 %vm1166_vm1, %v6945_v1  ;;  %v6946_v21 = vld [vmem:[%s7196_s15 + $0x330] sm:$0xff]   ;;  %v6947_v26 = vld [vmem:[%s7196_s15 + $0x338] sm:$0xff]  }
 0x124   : > { %v5680_v31 = vpack.c.bf16 %v1681_v25, %v1678_v24  ;;  %v2897_v43 = vmul.f32 %v1681_v25, %v1681_v25  ;;  %6730 = vmatprep.mubr.msk.bf16.mxu1 %vm1166_vm1, %v6946_v21 }
 0x125   : > { %v3149_v32 = vadd.f32 %v3148_v27, %v2894_v29  ;;  %v2632_v33 = vadd.f32 %v2631_v28, %v1673_v30  ;;  %v2895_v34 = vmul.f32 %v1673_v30, %v1673_v30  ;;  %v5675_v35 = vpack.c.bf16 %v1673_v30, %v1670_v22 }
 0x126   : > { %6272 = vst [vmem:[%s7373_s30 + $0x58] sm:$0xff] %v5680_v31  }
 0x127   : > { %v2633_v38 = vadd.f32 %v2632_v33, %v1678_v24  ;;  %v3150_v39 = vadd.f32 %v3149_v32, %v2895_v34  ;;  %6271 = vst [vmem:[%s7373_s30 + $0x50] sm:$0xff] %v5675_v35   ;;  %v6552_v40 = vpop.f32.mrb[24].mxu0 }
 0x128   : > { %v1685_v42 = vpop.f32.mrb[25].mxu0  ;;  %v1694_v48 = vadd.f32 %v6552_v40, %v7358_v17 }
 0x129   : > { %v2634_v44 = vadd.f32 %v2633_v38, %v1681_v25  ;;  %v3151_v45 = vadd.f32 %v3150_v39, %v2896_v37  ;;  %v1686_v46 = vadd.f32 %v7358_v17, %v1685_v42  ;;  %v6553_v47 = vpop.f32.mrb[26].mxu0 }
 0x12a   : > { %v1697_v49 = vadd.f32 %v6553_v47, %v7358_v17  ;;  %v1688_v50 = vpop.f32.mrb[27].mxu0  ;;  %v2900_v61 = vmul.f32 %v1694_v48, %v1694_v48 }
 0x12b   : > { %v3152_v51 = vadd.f32 %v3151_v45, %v2897_v43  ;;  %v2635_v52 = vadd.f32 %v2634_v44, %v1686_v46  ;;  %v2898_v53 = vmul.f32 %v1686_v46, %v1686_v46  ;;  %v1689_v54 = vadd.f32 %v7358_v17, %v1688_v50  ;;  %6731 = vmatmul.mubr.msk.bf16.gmra.mrb[76].mxu1 %vm1166_vm1, %v6947_v26  ;;  %v6948_v45 = vld [vmem:[%s7196_s15 + $0x340] sm:$0xff]   ;;  %v6949_v50 = vld [vmem:[%s7196_s15 + $0x348] sm:$0xff]  }
 0x12c   : > { %v5690_v55 = vpack.c.bf16 %v1697_v49, %v1694_v48  ;;  %v2901_v3 = vmul.f32 %v1697_v49, %v1697_v49  ;;  %6734 = vmatprep.mubr.msk.bf16.mxu1 %vm1166_vm1, %v6948_v45 }
 0x12d   : > { %v3153_v56 = vadd.f32 %v3152_v51, %v2898_v53  ;;  %v2636_v57 = vadd.f32 %v2635_v52, %v1689_v54  ;;  %v2899_v58 = vmul.f32 %v1689_v54, %v1689_v54  ;;  %v5685_v59 = vpack.c.bf16 %v1689_v54, %v1686_v46 }
 0x12e   : > { %6274 = vst [vmem:[%s7373_s30 + $0x68] sm:$0xff] %v5690_v55  }
 0x12f   : > { %v2637_v62 = vadd.f32 %v2636_v57, %v1694_v48  ;;  %v3154_v63 = vadd.f32 %v3153_v56, %v2899_v58  ;;  %6273 = vst [vmem:[%s7373_s30 + $0x60] sm:$0xff] %v5685_v59   ;;  %v6556_v0 = vpop.f32.mrb[28].mxu0 }
 0x130   : > { %v1701_v2 = vpop.f32.mrb[29].mxu0  ;;  %v1710_v8 = vadd.f32 %v6556_v0, %v7358_v17 }
 0x131   : > { %v2638_v4 = vadd.f32 %v2637_v62, %v1697_v49  ;;  %v3155_v5 = vadd.f32 %v3154_v63, %v2900_v61  ;;  %v1702_v6 = vadd.f32 %v7358_v17, %v1701_v2  ;;  %v6557_v7 = vpop.f32.mrb[30].mxu0 }
 0x132   : > { %v1713_v9 = vadd.f32 %v6557_v7, %v7358_v17  ;;  %v1704_v10 = vpop.f32.mrb[31].mxu0  ;;  %v2904_v22 = vmul.f32 %v1710_v8, %v1710_v8 }
 0x133   : > { %v3156_v11 = vadd.f32 %v3155_v5, %v2901_v3  ;;  %v2639_v12 = vadd.f32 %v2638_v4, %v1702_v6  ;;  %v2902_v13 = vmul.f32 %v1702_v6, %v1702_v6  ;;  %v1705_v14 = vadd.f32 %v7358_v17, %v1704_v10  ;;  %6735 = vmatmul.mubr.msk.bf16.gmra.mrb[80].mxu1 %vm1166_vm1, %v6949_v50  ;;  %v6950_v5 = vld [vmem:[%s7196_s15 + $0x350] sm:$0xff]   ;;  %v6951_v10 = vld [vmem:[%s7196_s15 + $0x358] sm:$0xff]  }
 0x134   : > { %v5700_v15 = vpack.c.bf16 %v1713_v9, %v1710_v8  ;;  %v2905_v28 = vmul.f32 %v1713_v9, %v1713_v9  ;;  %6738 = vmatprep.mubr.msk.bf16.mxu1 %vm1166_vm1, %v6950_v5 }
 0x135   : > { %v3157_v16 = vadd.f32 %v3156_v11, %v2902_v13  ;;  %v2640_v18 = vadd.f32 %v2639_v12, %v1705_v14  ;;  %v2903_v19 = vmul.f32 %v1705_v14, %v1705_v14  ;;  %v5695_v20 = vpack.c.bf16 %v1705_v14, %v1702_v6 }
 0x136   : > { %6276 = vst [vmem:[%s7373_s30 + $0x78] sm:$0xff] %v5700_v15  }
 0x137   : > { %v2641_v23 = vadd.f32 %v2640_v18, %v1710_v8  ;;  %v3158_v24 = vadd.f32 %v3157_v16, %v2903_v19  ;;  %6275 = vst [vmem:[%s7373_s30 + $0x70] sm:$0xff] %v5695_v20   ;;  %v6560_v25 = vpop.f32.mrb[32].mxu0 }
 0x138   : > { %v1717_v27 = vpop.f32.mrb[33].mxu0  ;;  %v1726_v33 = vadd.f32 %v6560_v25, %v7358_v17 }
 0x139   : > { %v2642_v29 = vadd.f32 %v2641_v23, %v1713_v9  ;;  %v3159_v30 = vadd.f32 %v3158_v24, %v2904_v22  ;;  %v1718_v31 = vadd.f32 %v7358_v17, %v1717_v27  ;;  %v6561_v32 = vpop.f32.mrb[34].mxu0 }
 0x13a   : > { %v1729_v34 = vadd.f32 %v6561_v32, %v7358_v17  ;;  %v1720_v35 = vpop.f32.mrb[35].mxu0  ;;  %v2908_v46 = vmul.f32 %v1726_v33, %v1726_v33 }
 0x13b   : > { %v3160_v36 = vadd.f32 %v3159_v30, %v2905_v28  ;;  %v2643_v37 = vadd.f32 %v2642_v29, %v1718_v31  ;;  %v2906_v38 = vmul.f32 %v1718_v31, %v1718_v31  ;;  %v1721_v39 = vadd.f32 %v7358_v17, %v1720_v35  ;;  %6739 = vmatmul.mubr.msk.bf16.gmra.mrb[84].mxu1 %vm1166_vm1, %v6951_v10  ;;  %v6952_v30 = vld [vmem:[%s7196_s15 + $0x360] sm:$0xff]   ;;  %v6953_v35 = vld [vmem:[%s7196_s15 + $0x368] sm:$0xff]  }
 0x13c   : > { %v5710_v40 = vpack.c.bf16 %v1729_v34, %v1726_v33  ;;  %v2909_v52 = vmul.f32 %v1729_v34, %v1729_v34  ;;  %6742 = vmatprep.mubr.msk.bf16.mxu1 %vm1166_vm1, %v6952_v30 }
 0x13d   : > { %v3161_v41 = vadd.f32 %v3160_v36, %v2906_v38  ;;  %v2644_v42 = vadd.f32 %v2643_v37, %v1721_v39  ;;  %v2907_v43 = vmul.f32 %v1721_v39, %v1721_v39  ;;  %v5705_v44 = vpack.c.bf16 %v1721_v39, %v1718_v31 }
 0x13e   : > { %6278 = vst [vmem:[%s7373_s30 + $0x88] sm:$0xff] %v5710_v40  }
 0x13f   : > { %v2645_v47 = vadd.f32 %v2644_v42, %v1726_v33  ;;  %v3162_v48 = vadd.f32 %v3161_v41, %v2907_v43  ;;  %6277 = vst [vmem:[%s7373_s30 + $0x80] sm:$0xff] %v5705_v44   ;;  %v6564_v49 = vpop.f32.mrb[36].mxu0 }
 0x140   : > { %v1733_v51 = vpop.f32.mrb[37].mxu0  ;;  %v1742_v57 = vadd.f32 %v6564_v49, %v7358_v17 }
 0x141   : > { %v2646_v53 = vadd.f32 %v2645_v47, %v1729_v34  ;;  %v3163_v54 = vadd.f32 %v3162_v48, %v2908_v46  ;;  %v1734_v55 = vadd.f32 %v7358_v17, %v1733_v51  ;;  %v6565_v56 = vpop.f32.mrb[38].mxu0 }
 0x142   : > { %v1745_v58 = vadd.f32 %v6565_v56, %v7358_v17  ;;  %v1736_v59 = vpop.f32.mrb[39].mxu0  ;;  %v2912_v6 = vmul.f32 %v1742_v57, %v1742_v57 }
 0x143   : > { %v3164_v60 = vadd.f32 %v3163_v54, %v2909_v52  ;;  %v2647_v61 = vadd.f32 %v2646_v53, %v1734_v55  ;;  %v2910_v62 = vmul.f32 %v1734_v55, %v1734_v55  ;;  %v1737_v63 = vadd.f32 %v7358_v17, %v1736_v59  ;;  %6743 = vmatmul.mubr.msk.bf16.gmra.mrb[88].mxu1 %vm1166_vm1, %v6953_v35  ;;  %v6954_v54 = vld [vmem:[%s7196_s15 + $0x370] sm:$0xff]   ;;  %v6955_v59 = vld [vmem:[%s7196_s15 + $0x378] sm:$0xff]  }
 0x144   : > { %v5720_v0 = vpack.c.bf16 %v1745_v58, %v1742_v57  ;;  %v2913_v12 = vmul.f32 %v1745_v58, %v1745_v58  ;;  %6746 = vmatprep.mubr.msk.bf16.mxu1 %vm1166_vm1, %v6954_v54 }
 0x145   : > { %v3165_v1 = vadd.f32 %v3164_v60, %v2910_v62  ;;  %v2648_v2 = vadd.f32 %v2647_v61, %v1737_v63  ;;  %v2911_v3 = vmul.f32 %v1737_v63, %v1737_v63  ;;  %v5715_v4 = vpack.c.bf16 %v1737_v63, %v1734_v55 }
 0x146   : > { %6280 = vst [vmem:[%s7373_s30 + $0x98] sm:$0xff] %v5720_v0  }
 0x147   : > { %v2649_v7 = vadd.f32 %v2648_v2, %v1742_v57  ;;  %v3166_v8 = vadd.f32 %v3165_v1, %v2911_v3  ;;  %6279 = vst [vmem:[%s7373_s30 + $0x90] sm:$0xff] %v5715_v4   ;;  %v6568_v9 = vpop.f32.mrb[40].mxu0 }
 0x148   : > { %v1749_v11 = vpop.f32.mrb[41].mxu0  ;;  %v1758_v18 = vadd.f32 %v6568_v9, %v7358_v17 }
 0x149   : > { %v2650_v13 = vadd.f32 %v2649_v7, %v1745_v58  ;;  %v3167_v14 = vadd.f32 %v3166_v8, %v2912_v6  ;;  %v1750_v15 = vadd.f32 %v7358_v17, %v1749_v11  ;;  %v6569_v16 = vpop.f32.mrb[42].mxu0 }
 0x14a   : > { %v1761_v19 = vadd.f32 %v6569_v16, %v7358_v17  ;;  %v1752_v20 = vpop.f32.mrb[43].mxu0  ;;  %v2916_v31 = vmul.f32 %v1758_v18, %v1758_v18 }
 0x14b   : > { %v3168_v21 = vadd.f32 %v3167_v14, %v2913_v12  ;;  %v2651_v22 = vadd.f32 %v2650_v13, %v1750_v15  ;;  %v2914_v23 = vmul.f32 %v1750_v15, %v1750_v15  ;;  %v1753_v24 = vadd.f32 %v7358_v17, %v1752_v20  ;;  %6747 = vmatmul.mubr.msk.bf16.gmra.mrb[92].mxu1 %vm1166_vm1, %v6955_v59  ;;  %v6956_v14 = vld [vmem:[%s7196_s15 + $0x380] sm:$0xff]   ;;  %v6957_v20 = vld [vmem:[%s7196_s15 + $0x388] sm:$0xff]  }
 0x14c   : > { %v5730_v25 = vpack.c.bf16 %v1761_v19, %v1758_v18  ;;  %v2917_v37 = vmul.f32 %v1761_v19, %v1761_v19  ;;  %6750 = vmatprep.mubr.msk.bf16.mxu1 %vm1166_vm1, %v6956_v14 }
 0x14d   : > { %v3169_v26 = vadd.f32 %v3168_v21, %v2914_v23  ;;  %v2652_v27 = vadd.f32 %v2651_v22, %v1753_v24  ;;  %v2915_v28 = vmul.f32 %v1753_v24, %v1753_v24  ;;  %v5725_v29 = vpack.c.bf16 %v1753_v24, %v1750_v15 }
 0x14e   : > { %6282 = vst [vmem:[%s7373_s30 + $0xa8] sm:$0xff] %v5730_v25  }
 0x14f   : > { %v2653_v32 = vadd.f32 %v2652_v27, %v1758_v18  ;;  %v3170_v33 = vadd.f32 %v3169_v26, %v2915_v28  ;;  %6281 = vst [vmem:[%s7373_s30 + $0xa0] sm:$0xff] %v5725_v29   ;;  %v6572_v34 = vpop.f32.mrb[44].mxu0 }
 0x150   : > { %v1765_v36 = vpop.f32.mrb[45].mxu0  ;;  %v1774_v42 = vadd.f32 %v6572_v34, %v7358_v17 }
 0x151   : > { %v2654_v38 = vadd.f32 %v2653_v32, %v1761_v19  ;;  %v3171_v39 = vadd.f32 %v3170_v33, %v2916_v31  ;;  %v1766_v40 = vadd.f32 %v7358_v17, %v1765_v36  ;;  %v6573_v41 = vpop.f32.mrb[46].mxu0 }
 0x152   : > { %v1777_v43 = vadd.f32 %v6573_v41, %v7358_v17  ;;  %v1768_v44 = vpop.f32.mrb[47].mxu0  ;;  %v2920_v55 = vmul.f32 %v1774_v42, %v1774_v42 }
 0x153   : > { %v3172_v45 = vadd.f32 %v3171_v39, %v2917_v37  ;;  %v2655_v46 = vadd.f32 %v2654_v38, %v1766_v40  ;;  %v2918_v47 = vmul.f32 %v1766_v40, %v1766_v40  ;;  %v1769_v48 = vadd.f32 %v7358_v17, %v1768_v44  ;;  %6751 = vmatmul.mubr.msk.bf16.gmra.mrb[96].mxu1 %vm1166_vm1, %v6957_v20  ;;  %v6958_v39 = vld [vmem:[%s7196_s15 + $0x390] sm:$0xff]   ;;  %v6959_v44 = vld [vmem:[%s7196_s15 + $0x398] sm:$0xff]   ;;  %v6656_v20 = vpop.f32.mrb[0].mxu1 }
 0x154   : > { %v5740_v49 = vpack.c.bf16 %v1777_v43, %v1774_v42  ;;  %v2921_v61 = vmul.f32 %v1777_v43, %v1777_v43  ;;  %6754 = vmatprep.mubr.msk.bf16.mxu1 %vm1166_vm1, %v6958_v39 }
 0x155   : > { %v3173_v50 = vadd.f32 %v3172_v45, %v2918_v47  ;;  %v2656_v51 = vadd.f32 %v2655_v46, %v1769_v48  ;;  %v2919_v52 = vmul.f32 %v1769_v48, %v1769_v48  ;;  %v5735_v53 = vpack.c.bf16 %v1769_v48, %v1766_v40 }
 0x156   : > { %6284 = vst [vmem:[%s7373_s30 + $0xb8] sm:$0xff] %v5740_v49  }
 0x157   : > { %v2657_v56 = vadd.f32 %v2656_v51, %v1774_v42  ;;  %v3174_v57 = vadd.f32 %v3173_v50, %v2919_v52  ;;  %6283 = vst [vmem:[%s7373_s30 + $0xb0] sm:$0xff] %v5735_v53   ;;  %v6576_v58 = vpop.f32.mrb[48].mxu0 }
 0x158   : > { %v1781_v60 = vpop.f32.mrb[49].mxu0  ;;  %v1790_v2 = vadd.f32 %v6576_v58, %v7358_v17 }
 0x159   : > { %v2658_v62 = vadd.f32 %v2657_v56, %v1777_v43  ;;  %v3175_v63 = vadd.f32 %v3174_v57, %v2920_v55  ;;  %v1782_v0 = vadd.f32 %v7358_v17, %v1781_v60  ;;  %v6577_v1 = vpop.f32.mrb[50].mxu0 }
 0x15a   : > { %v1793_v3 = vadd.f32 %v6577_v1, %v7358_v17  ;;  %v1784_v4 = vpop.f32.mrb[51].mxu0  ;;  %v2924_v15 = vmul.f32 %v1790_v2, %v1790_v2 }
 0x15b   : > { %v3176_v5 = vadd.f32 %v3175_v63, %v2921_v61  ;;  %v2659_v6 = vadd.f32 %v2658_v62, %v1782_v0  ;;  %v2922_v7 = vmul.f32 %v1782_v0, %v1782_v0  ;;  %v1785_v8 = vadd.f32 %v7358_v17, %v1784_v4  ;;  %6755 = vmatmul.mubr.msk.bf16.gmra.mrb[100].mxu1 %vm1166_vm1, %v6959_v44  ;;  %v6960_v63 = vld [vmem:[%s7196_s15 + $0x3a0] sm:$0xff]   ;;  %v6961_v4 = vld [vmem:[%s7196_s15 + $0x3a8] sm:$0xff]  }
 0x15c   : > { %v5750_v9 = vpack.c.bf16 %v1793_v3, %v1790_v2  ;;  %v2925_v22 = vmul.f32 %v1793_v3, %v1793_v3  ;;  %6758 = vmatprep.mubr.msk.bf16.mxu1 %vm1166_vm1, %v6960_v63 }
 0x15d   : > { %v3177_v10 = vadd.f32 %v3176_v5, %v2922_v7  ;;  %v2660_v11 = vadd.f32 %v2659_v6, %v1785_v8  ;;  %v2923_v12 = vmul.f32 %v1785_v8, %v1785_v8  ;;  %v5745_v13 = vpack.c.bf16 %v1785_v8, %v1782_v0 }
 0x15e   : > { %6286 = vst [vmem:[%s7373_s30 + $0xc8] sm:$0xff] %v5750_v9  }
 0x15f   : > { %v2661_v16 = vadd.f32 %v2660_v11, %v1790_v2  ;;  %v3178_v18 = vadd.f32 %v3177_v10, %v2923_v12  ;;  %6285 = vst [vmem:[%s7373_s30 + $0xc0] sm:$0xff] %v5745_v13   ;;  %v6580_v19 = vpop.f32.mrb[52].mxu0 }
 0x160   : > { %v1797_v21 = vpop.f32.mrb[53].mxu0  ;;  %v1806_v27 = vadd.f32 %v6580_v19, %v7358_v17 }
 0x161   : > { %v2662_v23 = vadd.f32 %v2661_v16, %v1793_v3  ;;  %v3179_v24 = vadd.f32 %v3178_v18, %v2924_v15  ;;  %v1798_v25 = vadd.f32 %v7358_v17, %v1797_v21  ;;  %v6581_v26 = vpop.f32.mrb[54].mxu0 }
 0x162   : > { %v1809_v28 = vadd.f32 %v6581_v26, %v7358_v17  ;;  %v1800_v29 = vpop.f32.mrb[55].mxu0  ;;  %v2928_v40 = vmul.f32 %v1806_v27, %v1806_v27 }
 0x163   : > { %v3180_v30 = vadd.f32 %v3179_v24, %v2925_v22  ;;  %v2663_v31 = vadd.f32 %v2662_v23, %v1798_v25  ;;  %v2926_v32 = vmul.f32 %v1798_v25, %v1798_v25  ;;  %v1801_v33 = vadd.f32 %v7358_v17, %v1800_v29  ;;  %6759 = vmatmul.mubr.msk.bf16.gmra.mrb[104].mxu1 %vm1166_vm1, %v6961_v4 }
 0x164   : > { %v5760_v34 = vpack.c.bf16 %v1809_v28, %v1806_v27  ;;  %v2929_v46 = vmul.f32 %v1809_v28, %v1809_v28 }
 0x165   : > { %v3181_v35 = vadd.f32 %v3180_v30, %v2926_v32  ;;  %v2664_v36 = vadd.f32 %v2663_v31, %v1801_v33  ;;  %v2927_v37 = vmul.f32 %v1801_v33, %v1801_v33  ;;  %v5755_v38 = vpack.c.bf16 %v1801_v33, %v1798_v25  ;;  %v2101_v25 = vpop.f32.mrb[1].mxu1  ;;  %v6963_v33 = vld [vmem:[%s7196_s15 + $0x3b8] sm:$0xff]  }
 0x166   : > { %6288 = vst [vmem:[%s7373_s30 + $0xd8] sm:$0xff] %v5760_v34   ;;  %v6657_v26 = vpop.f32.mrb[2].mxu1 }
 0x167   : > { %v2665_v41 = vadd.f32 %v2664_v36, %v1806_v27  ;;  %v3182_v42 = vadd.f32 %v3181_v35, %v2927_v37  ;;  %6287 = vst [vmem:[%s7373_s30 + $0xd0] sm:$0xff] %v5755_v38   ;;  %v6584_v43 = vpop.f32.mrb[56].mxu0  ;;  %v6962_v27 = vld [vmem:[%s7196_s15 + $0x3b0] sm:$0xff]   ;;  %v2104_v32 = vpop.f32.mrb[3].mxu1  ;;  %v7544_v35 = vadd.f32 %v6656_v20, %v7358_v17  ;;  %v7547_v36 = vadd.f32 %v6657_v26, %v7358_v17 }
 0x168   : > { %v1813_v45 = vpop.f32.mrb[57].mxu0  ;;  %v1822_v51 = vadd.f32 %v6584_v43, %v7358_v17  ;;  %6762 = vmatprep.mubr.msk.bf16.mxu1 %vm1166_vm1, %v6962_v27 }
 0x169   : > { %v2666_v47 = vadd.f32 %v2665_v41, %v1809_v28  ;;  %v3183_v48 = vadd.f32 %v3182_v42, %v2928_v40  ;;  %v1814_v49 = vadd.f32 %v7358_v17, %v1813_v45  ;;  %v6585_v50 = vpop.f32.mrb[58].mxu0  ;;  %v7555_v45 = vadd.f32 %v7358_v17, %v2101_v25 }
 0x16a   : > { %v1825_v52 = vadd.f32 %v6585_v50, %v7358_v17  ;;  %v1816_v53 = vpop.f32.mrb[59].mxu0  ;;  %v2932_v0 = vmul.f32 %v1822_v51, %v1822_v51 }
 0x16b   : > { %v3184_v54 = vadd.f32 %v3183_v48, %v2929_v46  ;;  %v2667_v55 = vadd.f32 %v2666_v47, %v1814_v49  ;;  %v2930_v56 = vmul.f32 %v1814_v49, %v1814_v49  ;;  %v1817_v57 = vadd.f32 %v7358_v17, %v1816_v53  ;;  %6763 = vmatmul.mubr.msk.bf16.gmra.mrb[108].mxu1 %vm1166_vm1, %v6963_v33  ;;  %v6660_v53 = vpop.f32.mrb[4].mxu1 }
 0x16c   : > { %v5770_v58 = vpack.c.bf16 %v1825_v52, %v1822_v51  ;;  %v2933_v6 = vmul.f32 %v1825_v52, %v1825_v52  ;;  %v7558_v46 = vadd.f32 %v7358_v17, %v2104_v32  ;;  %v6966_v32 = vld [vmem:[%s7196_s15 + $0x3d0] sm:$0xff]  }
 0x16d   : > { %v3185_v59 = vadd.f32 %v3184_v54, %v2930_v56  ;;  %v2668_v60 = vadd.f32 %v2667_v55, %v1817_v57  ;;  %v2931_v61 = vmul.f32 %v1817_v57, %v1817_v57  ;;  %v5765_v62 = vpack.c.bf16 %v1817_v57, %v1814_v49 }
 0x16e   : > { %6290 = vst [vmem:[%s7373_s30 + $0xe8] sm:$0xff] %v5770_v58   ;;  %v2117_v58 = vpop.f32.mrb[5].mxu1 }
 0x16f   : > { %v2669_v1 = vadd.f32 %v2668_v60, %v1822_v51  ;;  %v3186_v2 = vadd.f32 %v3185_v59, %v2931_v61  ;;  %6289 = vst [vmem:[%s7373_s30 + $0xe0] sm:$0xff] %v5765_v62   ;;  %v6588_v3 = vpop.f32.mrb[60].mxu0  ;;  %v5945_v59 = vpack.c.bf16 %v7558_v46, %v7555_v45  ;;  %v6661_v60 = vpop.f32.mrb[6].mxu1  ;;  %v6964_v61 = vld [vmem:[%s7196_s15 + $0x3c0] sm:$0xff]  }
 0x170   : > { %v1829_v5 = vpop.f32.mrb[61].mxu0  ;;  %v1838_v11 = vadd.f32 %v6588_v3, %v7358_v17  ;;  %v6965_v3 = vld [vmem:[%s7196_s15 + $0x3c8] sm:$0xff]   ;;  %6766 = vmatprep.mubr.msk.bf16.mxu1 %vm1166_vm1, %v6964_v61 }
 0x171   : > { %v2670_v7 = vadd.f32 %v2669_v1, %v1825_v52  ;;  %v3187_v8 = vadd.f32 %v3186_v2, %v2932_v0  ;;  %v1830_v9 = vadd.f32 %v7358_v17, %v1829_v5  ;;  %v6589_v10 = vpop.f32.mrb[62].mxu0  ;;  %v5950_v52 = vpack.c.bf16 %v7547_v36, %v7544_v35  ;;  %v2120_v2 = vpop.f32.mrb[7].mxu1  ;;  %6325 = vst [vmem:[%s7373_s30 + $0x200] sm:$0xff] %v5945_v59  }
 0x172   : > { %v1841_v12 = vadd.f32 %v6589_v10, %v7358_v17  ;;  %v1832_v13 = vpop.f32.mrb[63].mxu0  ;;  %v2936_v28 = vmul.f32 %v1838_v11, %v1838_v11  ;;  %v7572_v5 = vadd.f32 %v6660_v53, %v7358_v17 }
 0x173   : > { %v3188_v14 = vadd.f32 %v3187_v8, %v2933_v6  ;;  %v2671_v15 = vadd.f32 %v2670_v7, %v1830_v9  ;;  %v2934_v16 = vmul.f32 %v1830_v9, %v1830_v9  ;;  %v1833_v18 = vadd.f32 %v7358_v17, %v1832_v13  ;;  %6326 = vst [vmem:[%s7373_s30 + $0x208] sm:$0xff] %v5950_v52   ;;  %v7577_v6 = vld [vmem:[%s8749_s2] ss:$0 sm:$0xff] }
 0x174   : > { %v5780_v19 = vpack.c.bf16 %v1841_v12, %v1838_v11  ;;  %v2937_v37 = vmul.f32 %v1841_v12, %v1841_v12  ;;  %v7580_v7 = vadd.f32 %v7577_v6, %v6661_v60  ;;  %6767 = vmatmul.mubr.msk.bf16.gmra.mrb[112].mxu1 %vm1166_vm1, %v6965_v3 }
 0x175   : > { %v3189_v21 = vadd.f32 %v3188_v14, %v2934_v16  ;;  %v2672_v22 = vadd.f32 %v2671_v15, %v1833_v18  ;;  %v2935_v23 = vmul.f32 %v1833_v18, %v1833_v18  ;;  %v5775_v24 = vpack.c.bf16 %v1833_v18, %v1830_v9  ;;  %6770 = vmatprep.mubr.msk.bf16.mxu1 %vm1166_vm1, %v6966_v32 }
 0x176   : > { %6292 = vst [vmem:[%s7373_s30 + $0xf8] sm:$0xff] %v5780_v19   ;;  %v7588_v15 = vadd.f32 %v7577_v6, %v2117_v58  ;;  %v7591_v16 = vadd.f32 %v7577_v6, %v2120_v2 }
 0x177   : > { %v2673_v29 = vadd.f32 %v2672_v22, %v1838_v11  ;;  %v3190_v30 = vadd.f32 %v3189_v21, %v2935_v23  ;;  %6291 = vst [vmem:[%s7373_s30 + $0xf0] sm:$0xff] %v5775_v24   ;;  %v6592_v31 = vpop.f32.mrb[64].mxu0  ;;  %v5960_v23 = vpack.c.bf16 %v7580_v7, %v7572_v5  ;;  %v6664_v24 = vpop.f32.mrb[8].mxu1 }
 0x178   : > { %v1845_v34 = vpop.f32.mrb[65].mxu0  ;;  %v1854_v42 = vadd.f32 %v6592_v31, %v7358_v17 }
 0x179   : > { %v2674_v38 = vadd.f32 %v2673_v29, %v1841_v12  ;;  %v3191_v39 = vadd.f32 %v3190_v30, %v2936_v28  ;;  %v1846_v40 = vadd.f32 %v7358_v17, %v1845_v34  ;;  %v6593_v41 = vpop.f32.mrb[66].mxu0  ;;  %v2133_v29 = vpop.f32.mrb[9].mxu1  ;;  %6328 = vst [vmem:[%s7373_s30 + $0x218] sm:$0xff] %v5960_v23   ;;  %v5955_v30 = vpack.c.bf16 %v7591_v16, %v7588_v15 }
 0x17a   : > { %v1857_v43 = vadd.f32 %v6593_v41, %v7358_v17  ;;  %v1848_v44 = vpop.f32.mrb[67].mxu0  ;;  %v2940_v62 = vmul.f32 %v1854_v42, %v1854_v42  ;;  %v6665_v31 = vpop.f32.mrb[10].mxu1 }
 0x17b   : > { %v3192_v47 = vadd.f32 %v3191_v39, %v2937_v37  ;;  %v2675_v48 = vadd.f32 %v2674_v38, %v1846_v40  ;;  %v2938_v49 = vmul.f32 %v1846_v40, %v1846_v40  ;;  %v1849_v50 = vadd.f32 %v7358_v17, %v1848_v44  ;;  %v2136_v39 = vpop.f32.mrb[11].mxu1  ;;  %6327 = vst [vmem:[%s7373_s30 + $0x210] sm:$0xff] %v5955_v30  }
 0x17c   : > { %v5790_v51 = vpack.c.bf16 %v1857_v43, %v1854_v42  ;;  %v2941_v8 = vmul.f32 %v1857_v43, %v1857_v43 }
 0x17d   : > { %v3193_v54 = vadd.f32 %v3192_v47, %v2938_v49  ;;  %v2676_v55 = vadd.f32 %v2675_v48, %v1849_v50  ;;  %v2939_v56 = vmul.f32 %v1849_v50, %v1849_v50  ;;  %v5785_v57 = vpack.c.bf16 %v1849_v50, %v1846_v40  ;;  %v6967_v40 = vld [vmem:[%s7196_s15 + $0x3d8] sm:$0xff]  }
 0x17e   : > { %6294 = vst [vmem:[%s7373_s30 + $0x108] sm:$0xff] %v5790_v51   ;;  %6771 = vmatmul.mubr.msk.bf16.gmra.mrb[116].mxu1 %vm1166_vm1, %v6967_v40 }
 0x17f   : > { %v2677_v63 = vadd.f32 %v2676_v55, %v1854_v42  ;;  %v3194_v0 = vadd.f32 %v3193_v54, %v2939_v56  ;;  %6293 = vst [vmem:[%s7373_s30 + $0x100] sm:$0xff] %v5785_v57   ;;  %v6596_v1 = vpop.f32.mrb[68].mxu0  ;;  %v7605_v42 = vadd.f32 %v7577_v6, %v6664_v24  ;;  %v7616_v54 = vadd.f32 %v7577_v6, %v2133_v29 }
 0x180   : > { %v1861_v4 = vpop.f32.mrb[69].mxu0  ;;  %v1870_v17 = vadd.f32 %v7577_v6, %v6596_v1  ;;  %v7619_v55 = vadd.f32 %v7577_v6, %v2136_v39 }
 0x181   : > { %v2678_v9 = vadd.f32 %v2677_v63, %v1857_v43  ;;  %v3195_v10 = vadd.f32 %v3194_v0, %v2940_v62  ;;  %v1862_v11 = vadd.f32 %v7577_v6, %v1861_v4  ;;  %v6597_v12 = vpop.f32.mrb[70].mxu0  ;;  %v7608_v43 = vadd.f32 %v7577_v6, %v6665_v31  ;;  %v6668_v62 = vpop.f32.mrb[12].mxu1 }
 0x182   : > { %v1873_v13 = vadd.f32 %v7577_v6, %v6597_v12  ;;  %v1864_v14 = vpop.f32.mrb[71].mxu0  ;;  %v2944_v33 = vmul.f32 %v1870_v17, %v1870_v17  ;;  %v2149_v3 = vpop.f32.mrb[13].mxu1  ;;  %v5965_v4 = vpack.c.bf16 %v7619_v55, %v7616_v54 }
 0x183   : > { %v3196_v18 = vadd.f32 %v3195_v10, %v2941_v8  ;;  %v2679_v19 = vadd.f32 %v2678_v9, %v1862_v11  ;;  %v2942_v20 = vmul.f32 %v1862_v11, %v1862_v11  ;;  %v1865_v21 = vadd.f32 %v7577_v6, %v1864_v14  ;;  %v6669_v8 = vpop.f32.mrb[14].mxu1  ;;  %v6968_v9 = vld [vmem:[%s7196_s15 + $0x3e0] sm:$0xff]   ;;  %v6969_v14 = vld [vmem:[%s7196_s15 + $0x3e8] sm:$0xff]  }
 0x184   : > { %v5800_v22 = vpack.c.bf16 %v1873_v13, %v1870_v17  ;;  %v2945_v44 = vmul.f32 %v1873_v13, %v1873_v13  ;;  %v5970_v61 = vpack.c.bf16 %v7608_v43, %v7605_v42  ;;  %6329 = vst [vmem:[%s7373_s30 + $0x220] sm:$0xff] %v5965_v4   ;;  %6774 = vmatprep.mubr.msk.bf16.mxu1 %vm1166_vm1, %v6968_v9 }
 0x185   : > { %v3197_v25 = vadd.f32 %v3196_v18, %v2942_v20  ;;  %v2680_v26 = vadd.f32 %v2679_v19, %v1865_v21  ;;  %v2943_v27 = vmul.f32 %v1865_v21, %v1865_v21  ;;  %v5795_v28 = vpack.c.bf16 %v1865_v21, %v1862_v11 }
 0x186   : > { %6296 = vst [vmem:[%s7373_s30 + $0x118] sm:$0xff] %v5800_v22   ;;  %6330 = vst [vmem:[%s7373_s30 + $0x228] sm:$0xff] %v5970_v61   ;;  %v7633_v19 = vadd.f32 %v7577_v6, %v6668_v62  ;;  %v7636_v20 = vadd.f32 %v7577_v6, %v6669_v8  ;;  %6775 = vmatmul.mubr.msk.bf16.gmra.mrb[120].mxu1 %vm1166_vm1, %v6969_v14  ;;  %v7644_v29 = vadd.f32 %v7577_v6, %v2149_v3 }
 0x187   : > { %v2681_v34 = vadd.f32 %v2680_v26, %v1870_v17  ;;  %v3198_v37 = vadd.f32 %v3197_v25, %v2943_v27  ;;  %6295 = vst [vmem:[%s7373_s30 + $0x110] sm:$0xff] %v5795_v28   ;;  %v6600_v38 = vpop.f32.mrb[72].mxu0 }
 0x188   : > { %v1877_v41 = vpop.f32.mrb[73].mxu0  ;;  %v1886_v51 = vadd.f32 %v7577_v6, %v6600_v38  ;;  %v5980_v38 = vpack.c.bf16 %v7636_v20, %v7633_v19 }
 0x189   : > { %v2682_v47 = vadd.f32 %v2681_v34, %v1873_v13  ;;  %v3199_v48 = vadd.f32 %v3198_v37, %v2944_v33  ;;  %v1878_v49 = vadd.f32 %v7577_v6, %v1877_v41  ;;  %v6601_v50 = vpop.f32.mrb[74].mxu0  ;;  %v2152_v13 = vpop.f32.mrb[15].mxu1 }
 0x18a   : > { %v1889_v52 = vadd.f32 %v7577_v6, %v6601_v50  ;;  %v1880_v53 = vpop.f32.mrb[75].mxu0  ;;  %v2948_v10 = vmul.f32 %v1886_v51, %v1886_v51  ;;  %v7647_v30 = vadd.f32 %v7577_v6, %v2152_v13  ;;  %v6672_v39 = vpop.f32.mrb[16].mxu1  ;;  %6332 = vst [vmem:[%s7373_s30 + $0x238] sm:$0xff] %v5980_v38  }
 0x18b   : > { %v3200_v56 = vadd.f32 %v3199_v48, %v2945_v44  ;;  %v2683_v57 = vadd.f32 %v2682_v47, %v1878_v49  ;;  %v2946_v58 = vmul.f32 %v1878_v49, %v1878_v49  ;;  %v1881_v59 = vadd.f32 %v7577_v6, %v1880_v53  ;;  %v2165_v48 = vpop.f32.mrb[17].mxu1 }
 0x18c   : > { %v5810_v60 = vpack.c.bf16 %v1889_v52, %v1886_v51  ;;  %v2949_v21 = vmul.f32 %v1889_v52, %v1889_v52  ;;  %v6673_v50 = vpop.f32.mrb[18].mxu1  ;;  %v7661_v61 = vadd.f32 %v7577_v6, %v6672_v39 }
 0x18d   : > { %v3201_v63 = vadd.f32 %v3200_v56, %v2946_v58  ;;  %v2684_v0 = vadd.f32 %v2683_v57, %v1881_v59  ;;  %v2947_v1 = vmul.f32 %v1881_v59, %v1881_v59  ;;  %v5805_v2 = vpack.c.bf16 %v1881_v59, %v1878_v49  ;;  %v2168_v58 = vpop.f32.mrb[19].mxu1  ;;  %v6971_v59 = vld [vmem:[%s7196_s15 + $0x3f8] sm:$0xff]  }
 0x18e   : > { %6298 = vst [vmem:[%s7373_s30 + $0x128] sm:$0xff] %v5810_v60   ;;  %v5975_v49 = vpack.c.bf16 %v7647_v30, %v7644_v29  ;;  %v7664_v62 = vadd.f32 %v7577_v6, %v6673_v50 }
 0x18f   : > { %v2685_v11 = vadd.f32 %v2684_v0, %v1886_v51  ;;  %v3202_v12 = vadd.f32 %v3201_v63, %v2947_v1  ;;  %6297 = vst [vmem:[%s7373_s30 + $0x120] sm:$0xff] %v5805_v2   ;;  %v6604_v17 = vpop.f32.mrb[76].mxu0  ;;  %v6970_v51 = vld [vmem:[%s7196_s15 + $0x3f0] sm:$0xff]   ;;  %s4673_s15 = scalar_lea.sflag [#allocation3], %s7352_s16 }
 0x190   : > { %v1893_v18 = vpop.f32.mrb[77].mxu0  ;;  %v1902_v26 = vadd.f32 %v7577_v6, %v6604_v17  ;;  %6331 = vst [vmem:[%s7373_s30 + $0x230] sm:$0xff] %v5975_v49   ;;  %6778 = vmatprep.mubr.msk.bf16.mxu1 %vm1166_vm1, %v6970_v51 }
 0x191   : > { %v2686_v22 = vadd.f32 %v2685_v11, %v1889_v52  ;;  %v3203_v23 = vadd.f32 %v3202_v12, %v2948_v10  ;;  %v1894_v24 = vadd.f32 %v7577_v6, %v1893_v18  ;;  %v6605_v25 = vpop.f32.mrb[78].mxu0  ;;  %6779 = vmatmul.mubr.msk.bf16.gmra.mrb[124].mxu1 %vm1166_vm1, %v6971_v59  ;;  %v7672_v10 = vadd.f32 %v7577_v6, %v2165_v48 }
 0x192   : > { %v1905_v27 = vadd.f32 %v7577_v6, %v6605_v25  ;;  %v1896_v28 = vpop.f32.mrb[79].mxu0  ;;  %v2952_v52 = vmul.f32 %v1902_v26, %v1902_v26  ;;  %v7675_v11 = vadd.f32 %v7577_v6, %v2168_v58 }
 0x193   : > { %v3204_v31 = vadd.f32 %v3203_v23, %v2949_v21  ;;  %v2687_v32 = vadd.f32 %v2686_v22, %v1894_v24  ;;  %v2950_v33 = vmul.f32 %v1894_v24, %v1894_v24  ;;  %v1897_v34 = vadd.f32 %v7577_v6, %v1896_v28  ;;  %v6676_v22 = vpop.f32.mrb[20].mxu1 }
 0x194   : > { %v5820_v37 = vpack.c.bf16 %v1905_v27, %v1902_v26  ;;  %v2953_v63 = vmul.f32 %v1905_v27, %v1905_v27  ;;  %v5990_v21 = vpack.c.bf16 %v7664_v62, %v7661_v61  ;;  %v5985_v28 = vpack.c.bf16 %v7675_v11, %v7672_v10 }
 0x195   : > { %v3205_v40 = vadd.f32 %v3204_v31, %v2950_v33  ;;  %v2688_v41 = vadd.f32 %v2687_v32, %v1897_v34  ;;  %v2951_v44 = vmul.f32 %v1897_v34, %v1897_v34  ;;  %v5815_v47 = vpack.c.bf16 %v1897_v34, %v1894_v24 }
 0x196   : > { %6300 = vst [vmem:[%s7373_s30 + $0x138] sm:$0xff] %v5820_v37   ;;  %6334 = vst [vmem:[%s7373_s30 + $0x248] sm:$0xff] %v5990_v21  }
 0x197   : > { %v2689_v53 = vadd.f32 %v2688_v41, %v1902_v26  ;;  %v3206_v56 = vadd.f32 %v3205_v40, %v2951_v44  ;;  %6299 = vst [vmem:[%s7373_s30 + $0x130] sm:$0xff] %v5815_v47   ;;  %v6608_v57 = vpop.f32.mrb[80].mxu0  ;;  %6333 = vst [vmem:[%s7373_s30 + $0x240] sm:$0xff] %v5985_v28   ;;  %v7687_v40 = vadd.f32 %v7577_v6, %v6676_v22 }
 0x198   : > { %v1909_v60 = vpop.f32.mrb[81].mxu0  ;;  %v1918_v4 = vadd.f32 %v7577_v6, %v6608_v57 }
 0x199   : > { %v2690_v0 = vadd.f32 %v2689_v53, %v1905_v27  ;;  %v3207_v1 = vadd.f32 %v3206_v56, %v2952_v52  ;;  %v1910_v2 = vadd.f32 %v7577_v6, %v1909_v60  ;;  %v6609_v3 = vpop.f32.mrb[82].mxu0  ;;  %v2181_v27 = vpop.f32.mrb[21].mxu1 }
 0x19a   : > { %v1921_v8 = vadd.f32 %v7577_v6, %v6609_v3  ;;  %v1912_v9 = vpop.f32.mrb[83].mxu0  ;;  %v6677_v31 = vpop.f32.mrb[22].mxu1  ;;  %v2956_v32 = vmul.f32 %v1918_v4, %v1918_v4  ;;  %v7696_v56 = vadd.f32 %v7577_v6, %v2181_v27 }
 0x19b   : > { %v3208_v12 = vadd.f32 %v3207_v1, %v2953_v63  ;;  %v2691_v17 = vadd.f32 %v2690_v0, %v1910_v2  ;;  %v2954_v13 = vmul.f32 %v1910_v2, %v1910_v2  ;;  %v1913_v14 = vadd.f32 %v7577_v6, %v1912_v9  ;;  %v2184_v38 = vpop.f32.mrb[23].mxu1 }
 0x19c   : > { %v5830_v18 = vpack.c.bf16 %v1921_v8, %v1918_v4  ;;  %v7690_v41 = vadd.f32 %v7577_v6, %v6677_v31  ;;  %v2957_v44 = vmul.f32 %v1921_v8, %v1921_v8  ;;  %v7699_v57 = vadd.f32 %v7577_v6, %v2184_v38 }
 0x19d   : > { %v3209_v23 = vadd.f32 %v3208_v12, %v2954_v13  ;;  %v2692_v24 = vadd.f32 %v2691_v17, %v1913_v14  ;;  %v2955_v25 = vmul.f32 %v1913_v14, %v1913_v14  ;;  %v5825_v26 = vpack.c.bf16 %v1913_v14, %v1910_v2  ;;  %v6680_v2 = vpop.f32.mrb[24].mxu1 }
 0x19e   : > { %6302 = vst [vmem:[%s7373_s30 + $0x148] sm:$0xff] %v5830_v18   ;;  %v6000_v1 = vpack.c.bf16 %v7690_v41, %v7687_v40  ;;  %v2197_v12 = vpop.f32.mrb[25].mxu1  ;;  %v5995_v17 = vpack.c.bf16 %v7699_v57, %v7696_v56 }
 0x19f   : > { %v2693_v33 = vadd.f32 %v2692_v24, %v1918_v4  ;;  %v3210_v34 = vadd.f32 %v3209_v23, %v2955_v25  ;;  %6301 = vst [vmem:[%s7373_s30 + $0x140] sm:$0xff] %v5825_v26   ;;  %v6612_v37 = vpop.f32.mrb[84].mxu0  ;;  %v6681_v13 = vpop.f32.mrb[26].mxu1  ;;  %v7711_v25 = vadd.f32 %v7577_v6, %v6680_v2 }
 0x1a0   : > { %v1925_v39 = vpop.f32.mrb[85].mxu0  ;;  %v1934_v51 = vadd.f32 %v7577_v6, %v6612_v37  ;;  %6336 = vst [vmem:[%s7373_s30 + $0x258] sm:$0xff] %v6000_v1   ;;  %v2200_v23 = vpop.f32.mrb[27].mxu1  ;;  %6335 = vst [vmem:[%s7373_s30 + $0x250] sm:$0xff] %v5995_v17   ;;  %v7714_v26 = vadd.f32 %v7577_v6, %v6681_v13 }
 0x1a1   : > { %v2694_v47 = vadd.f32 %v2693_v33, %v1921_v8  ;;  %v3211_v48 = vadd.f32 %v3210_v34, %v2956_v32  ;;  %v1926_v49 = vadd.f32 %v7577_v6, %v1925_v39  ;;  %v6613_v50 = vpop.f32.mrb[86].mxu0  ;;  %v7720_v39 = vadd.f32 %v7577_v6, %v2197_v12 }
 0x1a2   : > { %v1937_v52 = vadd.f32 %v7577_v6, %v6613_v50  ;;  %v1928_v53 = vpop.f32.mrb[87].mxu0  ;;  %v2960_v14 = vmul.f32 %v1934_v51, %v1934_v51 }
 0x1a3   : > { %v3212_v58 = vadd.f32 %v3211_v48, %v2957_v44  ;;  %v2695_v59 = vadd.f32 %v2694_v47, %v1926_v49  ;;  %v2958_v60 = vmul.f32 %v1926_v49, %v1926_v49  ;;  %v1929_v63 = vadd.f32 %v7577_v6, %v1928_v53  ;;  %v6684_v53 = vpop.f32.mrb[28].mxu1 }
 0x1a4   : > { %v5840_v0 = vpack.c.bf16 %v1937_v52, %v1934_v51  ;;  %v2961_v27 = vmul.f32 %v1937_v52, %v1937_v52  ;;  %v7723_v44 = vadd.f32 %v7577_v6, %v2200_v23  ;;  %v7735_v13 = vadd.f32 %v7577_v6, %v6684_v53 }
 0x1a5   : > { %v3213_v3 = vadd.f32 %v3212_v58, %v2958_v60  ;;  %v2696_v4 = vadd.f32 %v2695_v59, %v1929_v63  ;;  %v2959_v8 = vmul.f32 %v1929_v63, %v1929_v63  ;;  %v5835_v9 = vpack.c.bf16 %v1929_v63, %v1926_v49 }
 0x1a6   : > { %6304 = vst [vmem:[%s7373_s30 + $0x158] sm:$0xff] %v5840_v0   ;;  %v2213_v0 = vpop.f32.mrb[29].mxu1  ;;  %v6005_v1 = vpack.c.bf16 %v7723_v44, %v7720_v39 }
 0x1a7   : > { %v2697_v18 = vadd.f32 %v2696_v4, %v1934_v51  ;;  %v3214_v21 = vadd.f32 %v3213_v3, %v2959_v8  ;;  %6303 = vst [vmem:[%s7373_s30 + $0x150] sm:$0xff] %v5835_v9   ;;  %v6616_v22 = vpop.f32.mrb[88].mxu0  ;;  %v6685_v2 = vpop.f32.mrb[30].mxu1 }
 0x1a8   : > { %v1941_v24 = vpop.f32.mrb[89].mxu0  ;;  %v1950_v34 = vadd.f32 %v7577_v6, %v6616_v22  ;;  %v2216_v12 = vpop.f32.mrb[31].mxu1  ;;  %6337 = vst [vmem:[%s7373_s30 + $0x260] sm:$0xff] %v6005_v1  }
 0x1a9   : > { %v2698_v28 = vadd.f32 %v2697_v18, %v1937_v52  ;;  %v3215_v31 = vadd.f32 %v3214_v21, %v2960_v14  ;;  %v1942_v32 = vadd.f32 %v7577_v6, %v1941_v24  ;;  %v6617_v33 = vpop.f32.mrb[90].mxu0  ;;  %v6010_v52 = vpack.c.bf16 %v7714_v26, %v7711_v25 }
 0x1aa   : > { %v1953_v37 = vadd.f32 %v7577_v6, %v6617_v33  ;;  %v1944_v38 = vpop.f32.mrb[91].mxu0  ;;  %v2964_v3 = vmul.f32 %v1950_v34, %v1950_v34  ;;  %v7738_v14 = vadd.f32 %v7577_v6, %v6685_v2  ;;  %v7747_v33 = vadd.f32 %v7577_v6, %v2216_v12 }
 0x1ab   : > { %v3216_v47 = vadd.f32 %v3215_v31, %v2961_v27  ;;  %v2699_v48 = vadd.f32 %v2698_v28, %v1942_v32  ;;  %v2962_v49 = vmul.f32 %v1942_v32, %v1942_v32  ;;  %v1945_v50 = vadd.f32 %v7577_v6, %v1944_v38  ;;  %6338 = vst [vmem:[%s7373_s30 + $0x268] sm:$0xff] %v6010_v52  }
 0x1ac   : > { %v5850_v51 = vpack.c.bf16 %v1953_v37, %v1950_v34  ;;  %v2965_v18 = vmul.f32 %v1953_v37, %v1953_v37 }
 0x1ad   : > { %v3217_v58 = vadd.f32 %v3216_v47, %v2962_v49  ;;  %v2700_v59 = vadd.f32 %v2699_v48, %v1945_v50  ;;  %v2963_v60 = vmul.f32 %v1945_v50, %v1945_v50  ;;  %v5845_v63 = vpack.c.bf16 %v1945_v50, %v1942_v32  ;;  %v6688_v50 = vpop.f32.mrb[32].mxu1 }
 0x1ae   : > { %6306 = vst [vmem:[%s7373_s30 + $0x168] sm:$0xff] %v5850_v51   ;;  %v7744_v32 = vadd.f32 %v7577_v6, %v2213_v0  ;;  %v6020_v49 = vpack.c.bf16 %v7738_v14, %v7735_v13 }
 0x1af   : > { %v2701_v4 = vadd.f32 %v2700_v59, %v1950_v34  ;;  %v3218_v8 = vadd.f32 %v3217_v58, %v2963_v60  ;;  %6305 = vst [vmem:[%s7373_s30 + $0x160] sm:$0xff] %v5845_v63   ;;  %v6620_v9 = vpop.f32.mrb[92].mxu0  ;;  %v2229_v59 = vpop.f32.mrb[33].mxu1 }
 0x1b0   : > { %v1957_v17 = vpop.f32.mrb[93].mxu0  ;;  %v1966_v27 = vadd.f32 %v7577_v6, %v6620_v9  ;;  %6340 = vst [vmem:[%s7373_s30 + $0x278] sm:$0xff] %v6020_v49   ;;  %v6015_v60 = vpack.c.bf16 %v7747_v33, %v7744_v32  ;;  %v6689_v63 = vpop.f32.mrb[34].mxu1  ;;  %v7759_v9 = vadd.f32 %v7577_v6, %v6688_v50 }
 0x1b1   : > { %v2702_v21 = vadd.f32 %v2701_v4, %v1953_v37  ;;  %v3219_v22 = vadd.f32 %v3218_v8, %v2964_v3  ;;  %v1958_v23 = vadd.f32 %v7577_v6, %v1957_v17  ;;  %v6621_v24 = vpop.f32.mrb[94].mxu0  ;;  %v2232_v4 = vpop.f32.mrb[35].mxu1  ;;  %v7762_v12 = vadd.f32 %v7577_v6, %v6689_v63 }
 0x1b2   : > { %v1969_v28 = vadd.f32 %v7577_v6, %v6621_v24  ;;  %v1960_v31 = vpop.f32.mrb[95].mxu0  ;;  %v2968_v0 = vmul.f32 %v1966_v27, %v1966_v27  ;;  %6339 = vst [vmem:[%s7373_s30 + $0x270] sm:$0xff] %v6015_v60  }
 0x1b3   : > { %v3220_v34 = vadd.f32 %v3219_v22, %v2965_v18  ;;  %v2703_v38 = vadd.f32 %v2702_v21, %v1958_v23  ;;  %v2966_v37 = vmul.f32 %v1958_v23, %v1958_v23  ;;  %v1961_v47 = vadd.f32 %v7577_v6, %v1960_v31 }
 0x1b4   : > { %v5860_v48 = vpack.c.bf16 %v1969_v28, %v1966_v27  ;;  %v2969_v17 = vmul.f32 %v1969_v28, %v1969_v28  ;;  %v6030_v50 = vpack.c.bf16 %v7762_v12, %v7759_v9 }
 0x1b5   : > { %v3221_v51 = vadd.f32 %v3220_v34, %v2966_v37  ;;  %v2704_v52 = vadd.f32 %v2703_v38, %v1961_v47  ;;  %v2967_v53 = vmul.f32 %v1961_v47, %v1961_v47  ;;  %v5855_v58 = vpack.c.bf16 %v1961_v47, %v1958_v23 }
 0x1b6   : > { %6308 = vst [vmem:[%s7373_s30 + $0x178] sm:$0xff] %v5860_v48   ;;  %v7768_v34 = vadd.f32 %v7577_v6, %v2229_v59  ;;  %v7771_v38 = vadd.f32 %v7577_v6, %v2232_v4  ;;  %6342 = vst [vmem:[%s7373_s30 + $0x288] sm:$0xff] %v6030_v50  }
 0x1b7   : > { %v2705_v1 = vadd.f32 %v2704_v52, %v1966_v27  ;;  %v3222_v2 = vadd.f32 %v3221_v51, %v2967_v53  ;;  %6307 = vst [vmem:[%s7373_s30 + $0x170] sm:$0xff] %v5855_v58   ;;  %v6624_v3 = vpop.f32.mrb[96].mxu0  ;;  %v6692_v51 = vpop.f32.mrb[36].mxu1 }
 0x1b8   : > { %v1973_v8 = vpop.f32.mrb[97].mxu0  ;;  %v1982_v24 = vadd.f32 %v7577_v6, %v6624_v3  ;;  %v2245_v60 = vpop.f32.mrb[37].mxu1  ;;  %v6025_v63 = vpack.c.bf16 %v7771_v38, %v7768_v34 }
 0x1b9   : > { %v2706_v18 = vadd.f32 %v2705_v1, %v1969_v28  ;;  %v3223_v21 = vadd.f32 %v3222_v2, %v2968_v0  ;;  %v1974_v22 = vadd.f32 %v7577_v6, %v1973_v8  ;;  %v6625_v23 = vpop.f32.mrb[98].mxu0  ;;  %v6693_v0 = vpop.f32.mrb[38].mxu1 }
 0x1ba   : > { %v1985_v27 = vadd.f32 %v7577_v6, %v6625_v23  ;;  %v1976_v31 = vpop.f32.mrb[99].mxu0  ;;  %v2972_v1 = vmul.f32 %v1982_v24, %v1982_v24  ;;  %v2248_v8 = vpop.f32.mrb[39].mxu1  ;;  %6341 = vst [vmem:[%s7373_s30 + $0x280] sm:$0xff] %v6025_v63  }
 0x1bb   : > { %v3224_v37 = vadd.f32 %v3223_v21, %v2969_v17  ;;  %v2707_v47 = vadd.f32 %v2706_v18, %v1974_v22  ;;  %v2970_v28 = vmul.f32 %v1974_v22, %v1974_v22  ;;  %v1977_v48 = vadd.f32 %v7577_v6, %v1976_v31  ;;  %v6696_v63 = vpop.f32.mrb[40].mxu1 }
 0x1bc   : > { %v5870_v49 = vpack.c.bf16 %v1985_v27, %v1982_v24  ;;  %v7783_v18 = vadd.f32 %v7577_v6, %v6692_v51  ;;  %v7786_v21 = vadd.f32 %v7577_v6, %v6693_v0  ;;  %v7795_v50 = vadd.f32 %v7577_v6, %v2248_v8 }
 0x1bd   : > { %v3225_v52 = vadd.f32 %v3224_v37, %v2970_v28  ;;  %v2708_v53 = vadd.f32 %v2707_v47, %v1977_v48  ;;  %v2971_v58 = vmul.f32 %v1977_v48, %v1977_v48  ;;  %v5865_v59 = vpack.c.bf16 %v1977_v48, %v1974_v22 }
 0x1be   : > { %6310 = vst [vmem:[%s7373_s30 + $0x188] sm:$0xff] %v5870_v49   ;;  %8837 = vst [vmem:[#allocation9_spill] sm:$0xff] %v7783_v18  ;;  %v2973_v22 = vmul.f32 %v1985_v27, %v1985_v27  ;;  %v7792_v49 = vadd.f32 %v7577_v6, %v2245_v60 }
 0x1bf   : > { %v2709_v2 = vadd.f32 %v2708_v53, %v1982_v24  ;;  %v3226_v3 = vadd.f32 %v3225_v52, %v2971_v58  ;;  %6309 = vst [vmem:[%s7373_s30 + $0x180] sm:$0xff] %v5865_v59   ;;  %v6628_v4 = vpop.f32.mrb[100].mxu0  ;;  %8838 = vst [vmem:[#allocation10_spill] sm:$0xff] %v7786_v21  ;;  %v6040_v59 = vpack.c.bf16 %v7786_v21, %v7783_v18 }
 0x1c0   : > { %v1989_v17 = vpop.f32.mrb[101].mxu0  ;;  %v1998_v24 = vadd.f32 %v7577_v6, %v6628_v4  ;;  %8839 = vst [vmem:[#allocation11_spill] sm:$0xff] %v7795_v50  ;;  %v6035_v4 = vpack.c.bf16 %v7795_v50, %v7792_v49 }
 0x1c1   : > { %v2710_v23 = vadd.f32 %v2709_v2, %v1985_v27  ;;  %v3227_v31 = vadd.f32 %v3226_v3, %v2972_v1  ;;  %v1990_v37 = vadd.f32 %v7577_v6, %v1989_v17  ;;  %v6629_v47 = vpop.f32.mrb[102].mxu0  ;;  %v2261_v3 = vpop.f32.mrb[41].mxu1  ;;  %6344 = vst [vmem:[%s7373_s30 + $0x298] sm:$0xff] %v6040_v59  }
 0x1c2   : > { %v2001_v28 = vadd.f32 %v7577_v6, %v6629_v47  ;;  %v1992_v48 = vpop.f32.mrb[103].mxu0  ;;  %v6697_v8 = vpop.f32.mrb[42].mxu1  ;;  %v2976_v17 = vmul.f32 %v1998_v24, %v1998_v24  ;;  %6343 = vst [vmem:[%s7373_s30 + $0x290] sm:$0xff] %v6035_v4  }
 0x1c3   : > { %v3228_v51 = vadd.f32 %v3227_v31, %v2973_v22  ;;  %v2711_v52 = vadd.f32 %v2710_v23, %v1990_v37  ;;  %v2974_v27 = vmul.f32 %v1990_v37, %v1990_v37  ;;  %v1993_v53 = vadd.f32 %v7577_v6, %v1992_v48  ;;  %v2264_v47 = vpop.f32.mrb[43].mxu1 }
 0x1c4   : > { %v5880_v58 = vpack.c.bf16 %v2001_v28, %v1998_v24 }
 0x1c5   : > { %v3229_v0 = vadd.f32 %v3228_v51, %v2974_v27  ;;  %v2712_v1 = vadd.f32 %v2711_v52, %v1993_v53  ;;  %v2975_v2 = vmul.f32 %v1993_v53, %v1993_v53  ;;  %v5875_v60 = vpack.c.bf16 %v1993_v53, %v1990_v37 }
 0x1c6   : > { %6312 = vst [vmem:[%s7373_s30 + $0x198] sm:$0xff] %v5880_v58   ;;  %v7807_v51 = vadd.f32 %v7577_v6, %v6696_v63  ;;  %v7810_v37 = vadd.f32 %v7577_v6, %v6697_v8  ;;  %v2977_v52 = vmul.f32 %v2001_v28, %v2001_v28  ;;  %v7819_v63 = vadd.f32 %v7577_v6, %v2264_v47 }
 0x1c7   : > { %v2713_v22 = vadd.f32 %v2712_v1, %v1998_v24  ;;  %v3230_v23 = vadd.f32 %v3229_v0, %v2975_v2  ;;  %6311 = vst [vmem:[%s7373_s30 + $0x190] sm:$0xff] %v5875_v60   ;;  %v6632_v31 = vpop.f32.mrb[104].mxu0  ;;  %v7816_v2 = vadd.f32 %v7577_v6, %v2261_v3 }
 0x1c8   : > { %v2005_v48 = vpop.f32.mrb[105].mxu0  ;;  %8840 = vst [vmem:[#allocation12_spill] sm:$0xff] %v7807_v51  ;;  %8841 = vst [vmem:[#allocation13_spill] sm:$0xff] %v7810_v37  ;;  %v2014_v24 = vadd.f32 %v7577_v6, %v6632_v31 }
 0x1c9   : > { %v2714_v27 = vadd.f32 %v2713_v22, %v2001_v28  ;;  %v3231_v53 = vadd.f32 %v3230_v23, %v2976_v17  ;;  %v2006_v58 = vadd.f32 %v7577_v6, %v2005_v48  ;;  %v6633_v59 = vpop.f32.mrb[106].mxu0  ;;  %8842 = vst [vmem:[#allocation14_spill] sm:$0xff] %v7816_v2  ;;  %8843 = vst [vmem:[#allocation15_spill] sm:$0xff] %v7819_v63  ;;  %v6700_v23 = vpop.f32.mrb[44].mxu1 }
 0x1ca   : > { %v2017_v0 = vadd.f32 %v7577_v6, %v6633_v59  ;;  %v2008_v1 = vpop.f32.mrb[107].mxu0  ;;  %v6050_v22 = vpack.c.bf16 %v7810_v37, %v7807_v51  ;;  %v2277_v21 = vpop.f32.mrb[45].mxu1  ;;  %v6045_v47 = vpack.c.bf16 %v7819_v63, %v7816_v2 }
 0x1cb   : > { %v3232_v60 = vadd.f32 %v3231_v53, %v2977_v52  ;;  %v2715_v4 = vadd.f32 %v2714_v27, %v2006_v58  ;;  %v2978_v28 = vmul.f32 %v2006_v58, %v2006_v58  ;;  %v2009_v8 = vadd.f32 %v7577_v6, %v2008_v1  ;;  %v6701_v52 = vpop.f32.mrb[46].mxu1 }
 0x1cc   : > { %v5890_v17 = vpack.c.bf16 %v2017_v0, %v2014_v24  ;;  %6346 = vst [vmem:[%s7373_s30 + $0x2a8] sm:$0xff] %v6050_v22   ;;  %v2980_v27 = vmul.f32 %v2014_v24, %v2014_v24  ;;  %v2280_v50 = vpop.f32.mrb[47].mxu1  ;;  %6345 = vst [vmem:[%s7373_s30 + $0x2a0] sm:$0xff] %v6045_v47  }
 0x1cd   : > { %v3233_v31 = vadd.f32 %v3232_v60, %v2978_v28  ;;  %v2716_v48 = vadd.f32 %v2715_v4, %v2009_v8  ;;  %v2979_v59 = vmul.f32 %v2009_v8, %v2009_v8  ;;  %v5885_v3 = vpack.c.bf16 %v2009_v8, %v2006_v58 }
 0x1ce   : > { %6314 = vst [vmem:[%s7373_s30 + $0x1a8] sm:$0xff] %v5890_v17   ;;  %v7831_v60 = vadd.f32 %v7577_v6, %v6700_v23  ;;  %v7834_v58 = vadd.f32 %v7577_v6, %v6701_v52  ;;  %v2981_v4 = vmul.f32 %v2017_v0, %v2017_v0  ;;  %v7843_v23 = vadd.f32 %v7577_v6, %v2280_v50 }
 0x1cf   : > { %v2717_v53 = vadd.f32 %v2716_v48, %v2014_v24  ;;  %v3234_v1 = vadd.f32 %v3233_v31, %v2979_v59  ;;  %6313 = vst [vmem:[%s7373_s30 + $0x1a0] sm:$0xff] %v5885_v3   ;;  %v6636_v18 = vpop.f32.mrb[108].mxu0  ;;  %v7840_v59 = vadd.f32 %v7577_v6, %v2277_v21 }
 0x1d0   : > { %v2021_v37 = vpop.f32.mrb[109].mxu0  ;;  %8844 = vst [vmem:[#allocation16_spill] sm:$0xff] %v7831_v60  ;;  %8845 = vst [vmem:[#allocation17_spill] sm:$0xff] %v7834_v58  ;;  %v2030_v24 = vadd.f32 %v7577_v6, %v6636_v18  ;;  %v6060_v18 = vpack.c.bf16 %v7834_v58, %v7831_v60 }
 0x1d1   : > { %v2718_v28 = vadd.f32 %v2717_v53, %v2017_v0  ;;  %v3235_v8 = vadd.f32 %v3234_v1, %v2980_v27  ;;  %v2022_v17 = vadd.f32 %v7577_v6, %v2021_v37  ;;  %v6637_v22 = vpop.f32.mrb[110].mxu0  ;;  %8846 = vst [vmem:[#allocation18_spill] sm:$0xff] %v7840_v59  ;;  %8847 = vst [vmem:[#allocation19_spill] sm:$0xff] %v7843_v23  ;;  %v6704_v27 = vpop.f32.mrb[48].mxu1 }
 0x1d2   : > { %v2033_v31 = vadd.f32 %v7577_v6, %v6637_v22  ;;  %v2024_v48 = vpop.f32.mrb[111].mxu0  ;;  %v2293_v51 = vpop.f32.mrb[49].mxu1  ;;  %6348 = vst [vmem:[%s7373_s30 + $0x2b8] sm:$0xff] %v6060_v18   ;;  %v6055_v50 = vpack.c.bf16 %v7843_v23, %v7840_v59 }
 0x1d3   : > { %v3236_v3 = vadd.f32 %v3235_v8, %v2981_v4  ;;  %v2719_v47 = vadd.f32 %v2718_v28, %v2022_v17  ;;  %v2982_v0 = vmul.f32 %v2022_v17, %v2022_v17  ;;  %v2025_v52 = vadd.f32 %v7577_v6, %v2024_v48  ;;  %v6705_v4 = vpop.f32.mrb[50].mxu1 }
 0x1d4   : > { %v5900_v37 = vpack.c.bf16 %v2033_v31, %v2030_v24  ;;  %v2984_v28 = vmul.f32 %v2030_v24, %v2030_v24  ;;  %v2296_v2 = vpop.f32.mrb[51].mxu1  ;;  %6347 = vst [vmem:[%s7373_s30 + $0x2b0] sm:$0xff] %v6055_v50  }
 0x1d5   : > { %v3237_v53 = vadd.f32 %v3236_v3, %v2982_v0  ;;  %v2720_v1 = vadd.f32 %v2719_v47, %v2025_v52  ;;  %v2983_v22 = vmul.f32 %v2025_v52, %v2025_v52  ;;  %v5895_v21 = vpack.c.bf16 %v2025_v52, %v2022_v17 }
 0x1d6   : > { %6316 = vst [vmem:[%s7373_s30 + $0x1b8] sm:$0xff] %v5900_v37   ;;  %v7855_v3 = vadd.f32 %v7577_v6, %v6704_v27  ;;  %v7858_v17 = vadd.f32 %v7577_v6, %v6705_v4  ;;  %v2985_v47 = vmul.f32 %v2033_v31, %v2033_v31  ;;  %v7867_v27 = vadd.f32 %v7577_v6, %v2296_v2 }
 0x1d7   : > { %v2721_v8 = vadd.f32 %v2720_v1, %v2030_v24  ;;  %v3238_v48 = vadd.f32 %v3237_v53, %v2983_v22  ;;  %6315 = vst [vmem:[%s7373_s30 + $0x1b0] sm:$0xff] %v5895_v21   ;;  %v6640_v63 = vpop.f32.mrb[112].mxu0  ;;  %v7864_v22 = vadd.f32 %v7577_v6, %v2293_v51 }
 0x1d8   : > { %v2037_v58 = vpop.f32.mrb[113].mxu0  ;;  %8848 = vst [vmem:[#allocation20_spill] sm:$0xff] %v7855_v3  ;;  %8849 = vst [vmem:[#allocation21_spill] sm:$0xff] %v7858_v17  ;;  %v2046_v24 = vadd.f32 %v7577_v6, %v6640_v63  ;;  %v6070_v63 = vpack.c.bf16 %v7858_v17, %v7855_v3 }
 0x1d9   : > { %v2722_v0 = vadd.f32 %v2721_v8, %v2033_v31  ;;  %v3239_v52 = vadd.f32 %v3238_v48, %v2984_v28  ;;  %v2038_v37 = vadd.f32 %v7577_v6, %v2037_v58  ;;  %v6641_v18 = vpop.f32.mrb[114].mxu0  ;;  %8850 = vst [vmem:[#allocation22_spill] sm:$0xff] %v7864_v22  ;;  %8851 = vst [vmem:[#allocation23_spill] sm:$0xff] %v7867_v27  ;;  %v6708_v28 = vpop.f32.mrb[52].mxu1 }
 0x1da   : > { %v2049_v53 = vadd.f32 %v7577_v6, %v6641_v18  ;;  %v2040_v1 = vpop.f32.mrb[115].mxu0  ;;  %v2309_v60 = vpop.f32.mrb[53].mxu1  ;;  %6350 = vst [vmem:[%s7373_s30 + $0x2c8] sm:$0xff] %v6070_v63   ;;  %v6065_v2 = vpack.c.bf16 %v7867_v27, %v7864_v22 }
 0x1db   : > { %v3240_v21 = vadd.f32 %v3239_v52, %v2985_v47  ;;  %v2723_v50 = vadd.f32 %v2722_v0, %v2038_v37  ;;  %v2986_v31 = vmul.f32 %v2038_v37, %v2038_v37  ;;  %v2041_v4 = vadd.f32 %v7577_v6, %v2040_v1  ;;  %v6709_v47 = vpop.f32.mrb[54].mxu1 }
 0x1dc   : > { %v5910_v58 = vpack.c.bf16 %v2049_v53, %v2046_v24  ;;  %v2988_v0 = vmul.f32 %v2046_v24, %v2046_v24  ;;  %v2312_v59 = vpop.f32.mrb[55].mxu1  ;;  %6349 = vst [vmem:[%s7373_s30 + $0x2c0] sm:$0xff] %v6065_v2  }
 0x1dd   : > { %v3241_v8 = vadd.f32 %v3240_v21, %v2986_v31  ;;  %v2724_v48 = vadd.f32 %v2723_v50, %v2041_v4  ;;  %v2987_v18 = vmul.f32 %v2041_v4, %v2041_v4  ;;  %v5905_v51 = vpack.c.bf16 %v2041_v4, %v2038_v37 }
 0x1de   : > { %6318 = vst [vmem:[%s7373_s30 + $0x1c8] sm:$0xff] %v5910_v58   ;;  %v7879_v21 = vadd.f32 %v7577_v6, %v6708_v28  ;;  %v7882_v37 = vadd.f32 %v7577_v6, %v6709_v47  ;;  %v2989_v50 = vmul.f32 %v2049_v53, %v2049_v53  ;;  %v7891_v28 = vadd.f32 %v7577_v6, %v2312_v59 }
 0x1df   : > { %v2725_v52 = vadd.f32 %v2724_v48, %v2046_v24  ;;  %v3242_v1 = vadd.f32 %v3241_v8, %v2987_v18  ;;  %6317 = vst [vmem:[%s7373_s30 + $0x1c0] sm:$0xff] %v5905_v51   ;;  %v6644_v23 = vpop.f32.mrb[116].mxu0  ;;  %v7888_v18 = vadd.f32 %v7577_v6, %v2309_v60 }
 0x1e0   : > { %v2053_v17 = vpop.f32.mrb[117].mxu0  ;;  %8852 = vst [vmem:[#allocation24_spill] sm:$0xff] %v7879_v21  ;;  %8853 = vst [vmem:[#allocation25_spill] sm:$0xff] %v7882_v37  ;;  %v2062_v24 = vadd.f32 %v7577_v6, %v6644_v23  ;;  %v6080_v23 = vpack.c.bf16 %v7882_v37, %v7879_v21 }
 0x1e1   : > { %v2726_v31 = vadd.f32 %v2725_v52, %v2049_v53  ;;  %v3243_v4 = vadd.f32 %v3242_v1, %v2988_v0  ;;  %v2054_v58 = vadd.f32 %v7577_v6, %v2053_v17  ;;  %v6645_v63 = vpop.f32.mrb[118].mxu0  ;;  %8854 = vst [vmem:[#allocation26_spill] sm:$0xff] %v7891_v28  ;;  %v6712_v0 = vpop.f32.mrb[56].mxu1  ;;  %v6075_v59 = vpack.c.bf16 %v7891_v28, %v7888_v18 }
 0x1e2   : > { %v2065_v8 = vadd.f32 %v7577_v6, %v6645_v63  ;;  %v2056_v48 = vpop.f32.mrb[119].mxu0  ;;  %v2325_v3 = vpop.f32.mrb[57].mxu1  ;;  %6352 = vst [vmem:[%s7373_s30 + $0x2d8] sm:$0xff] %v6080_v23  }
 0x1e3   : > { %v3244_v51 = vadd.f32 %v3243_v4, %v2989_v50  ;;  %v2727_v2 = vadd.f32 %v2726_v31, %v2054_v58  ;;  %v2990_v53 = vmul.f32 %v2054_v58, %v2054_v58  ;;  %v2057_v47 = vadd.f32 %v7577_v6, %v2056_v48  ;;  %v6713_v50 = vpop.f32.mrb[58].mxu1  ;;  %6351 = vst [vmem:[%s7373_s30 + $0x2d0] sm:$0xff] %v6075_v59  }
 0x1e4   : > { %v5920_v17 = vpack.c.bf16 %v2065_v8, %v2062_v24  ;;  %v2992_v31 = vmul.f32 %v2062_v24, %v2062_v24  ;;  %v2328_v22 = vpop.f32.mrb[59].mxu1 }
 0x1e5   : > { %v3245_v52 = vadd.f32 %v3244_v51, %v2990_v53  ;;  %v2728_v1 = vadd.f32 %v2727_v2, %v2057_v47  ;;  %v2991_v63 = vmul.f32 %v2057_v47, %v2057_v47  ;;  %v5915_v60 = vpack.c.bf16 %v2057_v47, %v2054_v58 }
 0x1e6   : > { %6320 = vst [vmem:[%s7373_s30 + $0x1d8] sm:$0xff] %v5920_v17   ;;  %v7903_v51 = vadd.f32 %v7577_v6, %v6712_v0  ;;  %v7906_v58 = vadd.f32 %v7577_v6, %v6713_v50  ;;  %v2993_v2 = vmul.f32 %v2065_v8, %v2065_v8  ;;  %v7915_v0 = vadd.f32 %v7577_v6, %v2328_v22 }
 0x1e7   : > { %v2729_v4 = vadd.f32 %v2728_v1, %v2062_v24  ;;  %v3246_v48 = vadd.f32 %v3245_v52, %v2991_v63  ;;  %6319 = vst [vmem:[%s7373_s30 + $0x1d0] sm:$0xff] %v5915_v60   ;;  %v6648_v27 = vpop.f32.mrb[120].mxu0  ;;  %v7912_v63 = vadd.f32 %v7577_v6, %v2325_v3 }
 0x1e8   : > { %v2069_v37 = vpop.f32.mrb[121].mxu0  ;;  %8855 = vst [vmem:[#allocation27_spill] sm:$0xff] %v7903_v51  ;;  %8856 = vst [vmem:[#allocation28_spill] sm:$0xff] %v7906_v58  ;;  %v2078_v24 = vadd.f32 %v7577_v6, %v6648_v27  ;;  %v6090_v27 = vpack.c.bf16 %v7906_v58, %v7903_v51 }
 0x1e9   : > { %v2730_v53 = vadd.f32 %v2729_v4, %v2065_v8  ;;  %v3247_v47 = vadd.f32 %v3246_v48, %v2992_v31  ;;  %v2070_v17 = vadd.f32 %v7577_v6, %v2069_v37  ;;  %v6649_v23 = vpop.f32.mrb[122].mxu0  ;;  %8857 = vst [vmem:[#allocation29_spill] sm:$0xff] %v7912_v63  ;;  %8858 = vst [vmem:[#allocation30_spill] sm:$0xff] %v7915_v0  ;;  %v6716_v31 = vpop.f32.mrb[60].mxu1 }
 0x1ea   : > { %v2081_v52 = vadd.f32 %v7577_v6, %v6649_v23  ;;  %v2072_v1 = vpop.f32.mrb[123].mxu0  ;;  %v2341_v21 = vpop.f32.mrb[61].mxu1  ;;  %6354 = vst [vmem:[%s7373_s30 + $0x2e8] sm:$0xff] %v6090_v27   ;;  %v6085_v22 = vpack.c.bf16 %v7915_v0, %v7912_v63 }
 0x1eb   : > { %v3248_v60 = vadd.f32 %v3247_v47, %v2993_v2  ;;  %v2731_v59 = vadd.f32 %v2730_v53, %v2070_v17  ;;  %v2994_v8 = vmul.f32 %v2070_v17, %v2070_v17  ;;  %v2073_v50 = vadd.f32 %v7577_v6, %v2072_v1  ;;  %v6717_v2 = vpop.f32.mrb[62].mxu1 }
 0x1ec   : > { %v5930_v37 = vpack.c.bf16 %v2081_v52, %v2078_v24  ;;  %v2996_v53 = vmul.f32 %v2078_v24, %v2078_v24  ;;  %v2344_v28 = vpop.f32.mrb[63].mxu1  ;;  %6353 = vst [vmem:[%s7373_s30 + $0x2e0] sm:$0xff] %v6085_v22  }
 0x1ed   : > { %v3249_v4 = vadd.f32 %v3248_v60, %v2994_v8  ;;  %v2732_v48 = vadd.f32 %v2731_v59, %v2073_v50  ;;  %v2995_v23 = vmul.f32 %v2073_v50, %v2073_v50  ;;  %v5925_v3 = vpack.c.bf16 %v2073_v50, %v2070_v17  ;;  %v7929_v60 = vld [vmem:[%s8749_s2] ss:$0 sm:$0xff] }
 0x1ee   : > { %6322 = vst [vmem:[%s7373_s30 + $0x1e8] sm:$0xff] %v5930_v37   ;;  %v7932_v17 = vadd.f32 %v7929_v60, %v6716_v31  ;;  %v7935_v59 = vadd.f32 %v7929_v60, %v6717_v2  ;;  %v2997_v8 = vmul.f32 %v2081_v52, %v2081_v52  ;;  %v7944_v31 = vadd.f32 %v7929_v60, %v2344_v28 }
 0x1ef   : > { %v2733_v6 = vadd.f32 %v2732_v48, %v2078_v24  ;;  %v3250_v47 = vadd.f32 %v3249_v4, %v2995_v23  ;;  %6321 = vst [vmem:[%s7373_s30 + $0x1e0] sm:$0xff] %v5925_v3   ;;  %v6652_v1 = vpop.f32.mrb[124].mxu0  ;;  %v7941_v3 = vadd.f32 %v7929_v60, %v2341_v21 }
 0x1f0   : > { %v2085_v58 = vpop.f32.mrb[125].mxu0  ;;  %8859 = vst [vmem:[#allocation31_spill] sm:$0xff] %v7935_v59  ;;  %v2094_v4 = vadd.f32 %v7929_v60, %v6652_v1 }
 0x1f1   : > { %v2734_v50 = vadd.f32 %v2733_v6, %v2081_v52  ;;  %v3251_v24 = vadd.f32 %v3250_v47, %v2996_v53  ;;  %v2086_v37 = vadd.f32 %v7929_v60, %v2085_v58  ;;  %v6653_v27 = vpop.f32.mrb[126].mxu0  ;;  %v6100_v6 = vpack.c.bf16 %v7935_v59, %v7932_v17  ;;  %v6720_v47 = vpop.f32.mrb[64].mxu1 }
 0x1f2   : > { %v2097_v48 = vadd.f32 %v7929_v60, %v6653_v27  ;;  %v2088_v23 = vpop.f32.mrb[127].mxu0  ;;  %v2357_v0 = vpop.f32.mrb[65].mxu1  ;;  %v6095_v28 = vpack.c.bf16 %v7944_v31, %v7941_v3  ;;  %v7956_v59 = vadd.f32 %v7929_v60, %v6720_v47 }
 0x1f3   : > { %v3252_v22 = vadd.f32 %v3251_v24, %v2997_v8  ;;  %v2735_v2 = vadd.f32 %v2734_v50, %v2086_v37  ;;  %v2998_v52 = vmul.f32 %v2086_v37, %v2086_v37  ;;  %v2089_v53 = vadd.f32 %v7929_v60, %v2088_v23  ;;  %6356 = vst [vmem:[%s7373_s30 + $0x2f8] sm:$0xff] %v6100_v6   ;;  %v6721_v8 = vpop.f32.mrb[66].mxu1 }
 0x1f4   : > { %v5940_v58 = vpack.c.bf16 %v2097_v48, %v2094_v4  ;;  %v3000_v50 = vmul.f32 %v2094_v4, %v2094_v4  ;;  %v2360_v63 = vpop.f32.mrb[67].mxu1  ;;  %6355 = vst [vmem:[%s7373_s30 + $0x2f0] sm:$0xff] %v6095_v28  }
 0x1f5   : > { %v3253_v1 = vadd.f32 %v3252_v22, %v2998_v52  ;;  %v2736_v27 = vadd.f32 %v2735_v2, %v2089_v53  ;;  %v2999_v51 = vmul.f32 %v2089_v53, %v2089_v53  ;;  %v5935_v21 = vpack.c.bf16 %v2089_v53, %v2086_v37 }
 0x1f6   : > { %6324 = vst [vmem:[%s7373_s30 + $0x1f8] sm:$0xff] %v5940_v58   ;;  %v7959_v22 = vadd.f32 %v7929_v60, %v2357_v0  ;;  %v7962_v37 = vadd.f32 %v7929_v60, %v6721_v8  ;;  %v7965_v2 = vadd.f32 %v7929_v60, %v2360_v63  ;;  %v3001_v52 = vmul.f32 %v2097_v48, %v2097_v48 }
 0x1f7   : > { %v2737_v24 = vadd.f32 %v2736_v27, %v2094_v4  ;;  %v3254_v23 = vadd.f32 %v3253_v1, %v2999_v51  ;;  %6323 = vst [vmem:[%s7373_s30 + $0x1f0] sm:$0xff] %v5935_v21   ;;  %v3002_v53 = vmul.f32 %v7555_v45, %v7555_v45  ;;  %v6724_v1 = vpop.f32.mrb[68].mxu1  ;;  %v3004_v8 = vmul.f32 %v7544_v35, %v7544_v35 }
 0x1f8   : > { %v6110_v58 = vpack.c.bf16 %v7962_v37, %v7956_v59  ;;  %v6105_v47 = vpack.c.bf16 %v7965_v2, %v7959_v22  ;;  %v2373_v21 = vpop.f32.mrb[69].mxu1 }
 0x1f9   : > { %v2738_v4 = vadd.f32 %v2737_v24, %v2097_v48  ;;  %v3255_v51 = vadd.f32 %v3254_v23, %v3000_v50  ;;  %v3003_v48 = vmul.f32 %v7558_v46, %v7558_v46  ;;  %v6725_v28 = vpop.f32.mrb[70].mxu1  ;;  %v7983_v23 = vadd.f32 %v7929_v60, %v6724_v1 }
 0x1fa   : > { %6358 = vst [vmem:[%s7373_s30 + $0x308] sm:$0xff] %v6110_v58   ;;  %6357 = vst [vmem:[%s7373_s30 + $0x300] sm:$0xff] %v6105_v47   ;;  %v2376_v24 = vpop.f32.mrb[71].mxu1  ;;  %v3006_v58 = vmul.f32 %v7588_v15, %v7588_v15 }
 0x1fb   : > { %v3256_v6 = vadd.f32 %v3255_v51, %v3001_v52  ;;  %v2739_v0 = vadd.f32 %v2738_v4, %v7555_v45  ;;  %v7986_v52 = vadd.f32 %v7929_v60, %v2373_v21  ;;  %v7992_v4 = vadd.f32 %v7929_v60, %v2376_v24 }
 0x1fc   : > { %v3005_v51 = vmul.f32 %v7547_v36, %v7547_v36 }
 0x1fd   : > { %v3257_v27 = vadd.f32 %v3256_v6, %v3002_v53  ;;  %v2740_v63 = vadd.f32 %v2739_v0, %v7558_v46  ;;  %v7989_v46 = vadd.f32 %v7929_v60, %v6725_v28  ;;  %v6115_v1 = vpack.c.bf16 %v7992_v4, %v7986_v52 }
 0x1ff   : > { %v2741_v45 = vadd.f32 %v2740_v63, %v7544_v35  ;;  %v3258_v50 = vadd.f32 %v3257_v27, %v3003_v48  ;;  %v6120_v6 = vpack.c.bf16 %v7989_v46, %v7983_v23  ;;  %v6728_v27 = vpop.f32.mrb[72].mxu1  ;;  %6359 = vst [vmem:[%s7373_s30 + $0x310] sm:$0xff] %v6115_v1  }
 0x200   : > { %v2389_v21 = vpop.f32.mrb[73].mxu1  ;;  %v8013_v24 = vadd.f32 %v7929_v60, %v6728_v27 }
 0x201   : > { %v2742_v35 = vadd.f32 %v2741_v45, %v7547_v36  ;;  %v3259_v53 = vadd.f32 %v3258_v50, %v3004_v8  ;;  %6360 = vst [vmem:[%s7373_s30 + $0x318] sm:$0xff] %v6120_v6   ;;  %v3007_v36 = vmul.f32 %v7591_v16, %v7591_v16  ;;  %v6729_v28 = vpop.f32.mrb[74].mxu1  ;;  %v3008_v8 = vmul.f32 %v7572_v5, %v7572_v5 }
 0x202   : > { %v2392_v50 = vpop.f32.mrb[75].mxu1  ;;  %v3010_v6 = vmul.f32 %v7616_v54, %v7616_v54 }
 0x203   : > { %v3260_v0 = vadd.f32 %v3259_v53, %v3005_v51  ;;  %v2743_v47 = vadd.f32 %v2742_v35, %v7588_v15  ;;  %v8016_v51 = vadd.f32 %v7929_v60, %v2389_v21  ;;  %v8022_v35 = vadd.f32 %v7929_v60, %v2392_v50 }
 0x204   : > { %v3009_v53 = vmul.f32 %v7580_v7, %v7580_v7 }
 0x205   : > { %v3261_v63 = vadd.f32 %v3260_v0, %v3006_v58  ;;  %v2744_v48 = vadd.f32 %v2743_v47, %v7591_v16  ;;  %v8019_v16 = vadd.f32 %v7929_v60, %v6729_v28  ;;  %v6125_v27 = vpack.c.bf16 %v8022_v35, %v8016_v51 }
 0x207   : > { %v2745_v15 = vadd.f32 %v2744_v48, %v7572_v5  ;;  %v3262_v45 = vadd.f32 %v3261_v63, %v3007_v36  ;;  %v6130_v0 = vpack.c.bf16 %v8019_v16, %v8013_v24  ;;  %v6732_v63 = vpop.f32.mrb[76].mxu1  ;;  %6361 = vst [vmem:[%s7373_s30 + $0x320] sm:$0xff] %v6125_v27  }
 0x208   : > { %v2405_v21 = vpop.f32.mrb[77].mxu1  ;;  %v8043_v50 = vadd.f32 %v7929_v60, %v6732_v63 }
 0x209   : > { %v2746_v5 = vadd.f32 %v2745_v15, %v7580_v7  ;;  %v3263_v58 = vadd.f32 %v3262_v45, %v3008_v8  ;;  %6362 = vst [vmem:[%s7373_s30 + $0x328] sm:$0xff] %v6130_v0   ;;  %v3011_v7 = vmul.f32 %v7619_v55, %v7619_v55  ;;  %v6733_v28 = vpop.f32.mrb[78].mxu1  ;;  %v3012_v8 = vmul.f32 %v7605_v42, %v7605_v42 }
 0x20a   : > { %v2408_v45 = vpop.f32.mrb[79].mxu1  ;;  %v3014_v0 = vmul.f32 %v7644_v29, %v7644_v29 }
 0x20b   : > { %v3264_v47 = vadd.f32 %v3263_v58, %v3009_v53  ;;  %v2747_v1 = vadd.f32 %v2746_v5, %v7616_v54  ;;  %v8046_v53 = vadd.f32 %v7929_v60, %v2405_v21  ;;  %v8052_v5 = vadd.f32 %v7929_v60, %v2408_v45 }
 0x20c   : > { %v3013_v58 = vmul.f32 %v7608_v43, %v7608_v43 }
 0x20d   : > { %v3265_v48 = vadd.f32 %v3264_v47, %v3010_v6  ;;  %v2748_v36 = vadd.f32 %v2747_v1, %v7619_v55  ;;  %v8049_v55 = vadd.f32 %v7929_v60, %v6733_v28  ;;  %v6135_v63 = vpack.c.bf16 %v8052_v5, %v8046_v53 }
 0x20f   : > { %v2749_v54 = vadd.f32 %v2748_v36, %v7605_v42  ;;  %v3266_v15 = vadd.f32 %v3265_v48, %v3011_v7  ;;  %v6140_v47 = vpack.c.bf16 %v8049_v55, %v8043_v50  ;;  %v6736_v48 = vpop.f32.mrb[80].mxu1  ;;  %6363 = vst [vmem:[%s7373_s30 + $0x330] sm:$0xff] %v6135_v63  }
 0x210   : > { %v2421_v21 = vpop.f32.mrb[81].mxu1  ;;  %v8073_v45 = vadd.f32 %v7929_v60, %v6736_v48 }
 0x211   : > { %v2750_v42 = vadd.f32 %v2749_v54, %v7608_v43  ;;  %v3267_v6 = vadd.f32 %v3266_v15, %v3012_v8  ;;  %6364 = vst [vmem:[%s7373_s30 + $0x338] sm:$0xff] %v6140_v47   ;;  %v3015_v43 = vmul.f32 %v7647_v30, %v7647_v30  ;;  %v6737_v28 = vpop.f32.mrb[82].mxu1  ;;  %v3016_v8 = vmul.f32 %v7633_v19, %v7633_v19 }
 0x212   : > { %v2424_v15 = vpop.f32.mrb[83].mxu1  ;;  %v3018_v47 = vmul.f32 %v7672_v10, %v7672_v10 }
 0x213   : > { %v3268_v1 = vadd.f32 %v3267_v6, %v3013_v58  ;;  %v2751_v27 = vadd.f32 %v2750_v42, %v7644_v29  ;;  %v8076_v58 = vadd.f32 %v7929_v60, %v2421_v21  ;;  %v8082_v42 = vadd.f32 %v7929_v60, %v2424_v15 }
 0x214   : > { %v3017_v6 = vmul.f32 %v7636_v20, %v7636_v20 }
 0x215   : > { %v3269_v36 = vadd.f32 %v3268_v1, %v3014_v0  ;;  %v2752_v7 = vadd.f32 %v2751_v27, %v7647_v30  ;;  %v8079_v30 = vadd.f32 %v7929_v60, %v6737_v28  ;;  %v6145_v48 = vpack.c.bf16 %v8082_v42, %v8076_v58 }
 0x217   : > { %v2753_v29 = vadd.f32 %v2752_v7, %v7633_v19  ;;  %v3270_v54 = vadd.f32 %v3269_v36, %v3015_v43  ;;  %v6150_v1 = vpack.c.bf16 %v8079_v30, %v8073_v45  ;;  %v6740_v36 = vpop.f32.mrb[84].mxu1  ;;  %6365 = vst [vmem:[%s7373_s30 + $0x340] sm:$0xff] %v6145_v48  }
 0x218   : > { %v2437_v21 = vpop.f32.mrb[85].mxu1  ;;  %v8103_v15 = vadd.f32 %v7929_v60, %v6740_v36 }
 0x219   : > { %v2754_v19 = vadd.f32 %v2753_v29, %v7636_v20  ;;  %v3271_v0 = vadd.f32 %v3270_v54, %v3016_v8  ;;  %6366 = vst [vmem:[%s7373_s30 + $0x348] sm:$0xff] %v6150_v1   ;;  %v3019_v20 = vmul.f32 %v7675_v11, %v7675_v11  ;;  %v6741_v28 = vpop.f32.mrb[86].mxu1  ;;  %v3020_v8 = vmul.f32 %v7661_v61, %v7661_v61 }
 0x21a   : > { %v2440_v54 = vpop.f32.mrb[87].mxu1  ;;  %v3022_v1 = vmul.f32 %v7696_v56, %v7696_v56 }
 0x21b   : > { %v3272_v27 = vadd.f32 %v3271_v0, %v3017_v6  ;;  %v2755_v63 = vadd.f32 %v2754_v19, %v7672_v10  ;;  %v8106_v6 = vadd.f32 %v7929_v60, %v2437_v21  ;;  %v8112_v19 = vadd.f32 %v7929_v60, %v2440_v54 }
 0x21c   : > { %v3021_v0 = vmul.f32 %v7664_v62, %v7664_v62 }
 0x21d   : > { %v3273_v7 = vadd.f32 %v3272_v27, %v3018_v47  ;;  %v2756_v43 = vadd.f32 %v2755_v63, %v7675_v11  ;;  %v8109_v11 = vadd.f32 %v7929_v60, %v6741_v28  ;;  %v6155_v36 = vpack.c.bf16 %v8112_v19, %v8106_v6 }
 0x21f   : > { %v2757_v10 = vadd.f32 %v2756_v43, %v7661_v61  ;;  %v3274_v29 = vadd.f32 %v3273_v7, %v3019_v20  ;;  %v6160_v27 = vpack.c.bf16 %v8109_v11, %v8103_v15  ;;  %v6744_v7 = vpop.f32.mrb[88].mxu1  ;;  %6367 = vst [vmem:[%s7373_s30 + $0x350] sm:$0xff] %v6155_v36  }
 0x220   : > { %v2453_v21 = vpop.f32.mrb[89].mxu1  ;;  %v8133_v54 = vadd.f32 %v7929_v60, %v6744_v7 }
 0x221   : > { %v2758_v61 = vadd.f32 %v2757_v10, %v7664_v62  ;;  %v3275_v47 = vadd.f32 %v3274_v29, %v3020_v8  ;;  %6368 = vst [vmem:[%s7373_s30 + $0x358] sm:$0xff] %v6160_v27   ;;  %v3023_v62 = vmul.f32 %v7699_v57, %v7699_v57  ;;  %v6745_v28 = vpop.f32.mrb[90].mxu1  ;;  %v3024_v8 = vmul.f32 %v7687_v40, %v7687_v40 }
 0x222   : > { %v2456_v29 = vpop.f32.mrb[91].mxu1  ;;  %v3026_v27 = vmul.f32 %v7720_v39, %v7720_v39 }
 0x223   : > { %v3276_v63 = vadd.f32 %v3275_v47, %v3021_v0  ;;  %v2759_v48 = vadd.f32 %v2758_v61, %v7696_v56  ;;  %v8136_v0 = vadd.f32 %v7929_v60, %v2453_v21  ;;  %v8142_v61 = vadd.f32 %v7929_v60, %v2456_v29 }
 0x224   : > { %v3025_v47 = vmul.f32 %v7690_v41, %v7690_v41 }
 0x225   : > { %v3277_v43 = vadd.f32 %v3276_v63, %v3022_v1  ;;  %v2760_v20 = vadd.f32 %v2759_v48, %v7699_v57  ;;  %v8139_v57 = vadd.f32 %v7929_v60, %v6745_v28  ;;  %v6165_v7 = vpack.c.bf16 %v8142_v61, %v8136_v0 }
 0x227   : > { %v2761_v56 = vadd.f32 %v2760_v20, %v7687_v40  ;;  %v3278_v10 = vadd.f32 %v3277_v43, %v3023_v62  ;;  %v6170_v63 = vpack.c.bf16 %v8139_v57, %v8133_v54  ;;  %v6748_v43 = vpop.f32.mrb[92].mxu1  ;;  %6369 = vst [vmem:[%s7373_s30 + $0x360] sm:$0xff] %v6165_v7  }
 0x228   : > { %v2469_v21 = vpop.f32.mrb[93].mxu1  ;;  %v8163_v29 = vadd.f32 %v7929_v60, %v6748_v43 }
 0x229   : > { %v2762_v40 = vadd.f32 %v2761_v56, %v7690_v41  ;;  %v3279_v1 = vadd.f32 %v3278_v10, %v3024_v8  ;;  %6370 = vst [vmem:[%s7373_s30 + $0x368] sm:$0xff] %v6170_v63   ;;  %v3027_v41 = vmul.f32 %v7723_v44, %v7723_v44  ;;  %v6749_v28 = vpop.f32.mrb[94].mxu1  ;;  %v3028_v8 = vmul.f32 %v7711_v25, %v7711_v25 }
 0x22a   : > { %v2472_v10 = vpop.f32.mrb[95].mxu1  ;;  %v3030_v63 = vmul.f32 %v7744_v32, %v7744_v32 }
 0x22b   : > { %v3280_v48 = vadd.f32 %v3279_v1, %v3025_v47  ;;  %v2763_v36 = vadd.f32 %v2762_v40, %v7720_v39  ;;  %v8166_v47 = vadd.f32 %v7929_v60, %v2469_v21  ;;  %v8172_v40 = vadd.f32 %v7929_v60, %v2472_v10 }
 0x22c   : > { %v3029_v1 = vmul.f32 %v7714_v26, %v7714_v26 }
 0x22d   : > { %v3281_v20 = vadd.f32 %v3280_v48, %v3026_v27  ;;  %v2764_v62 = vadd.f32 %v2763_v36, %v7723_v44  ;;  %v8169_v44 = vadd.f32 %v7929_v60, %v6749_v28  ;;  %v6175_v43 = vpack.c.bf16 %v8172_v40, %v8166_v47 }
 0x22f   : > { %v2765_v39 = vadd.f32 %v2764_v62, %v7711_v25  ;;  %v3282_v56 = vadd.f32 %v3281_v20, %v3027_v41  ;;  %v6180_v48 = vpack.c.bf16 %v8169_v44, %v8163_v29  ;;  %v6752_v20 = vpop.f32.mrb[96].mxu1  ;;  %6371 = vst [vmem:[%s7373_s30 + $0x370] sm:$0xff] %v6175_v43  }
 0x230   : > { %v2485_v21 = vpop.f32.mrb[97].mxu1  ;;  %v8193_v10 = vadd.f32 %v7929_v60, %v6752_v20 }
 0x231   : > { %v2766_v25 = vadd.f32 %v2765_v39, %v7714_v26  ;;  %v3283_v27 = vadd.f32 %v3282_v56, %v3028_v8  ;;  %6372 = vst [vmem:[%s7373_s30 + $0x378] sm:$0xff] %v6180_v48   ;;  %v3031_v26 = vmul.f32 %v7747_v33, %v7747_v33  ;;  %v6753_v28 = vpop.f32.mrb[98].mxu1  ;;  %v3032_v8 = vmul.f32 %v7735_v13, %v7735_v13 }
 0x232   : > { %v2488_v56 = vpop.f32.mrb[99].mxu1  ;;  %v3034_v48 = vmul.f32 %v7768_v34, %v7768_v34 }
 0x233   : > { %v3284_v36 = vadd.f32 %v3283_v27, %v3029_v1  ;;  %v2767_v7 = vadd.f32 %v2766_v25, %v7744_v32  ;;  %v8196_v1 = vadd.f32 %v7929_v60, %v2485_v21  ;;  %v8202_v25 = vadd.f32 %v7929_v60, %v2488_v56 }
 0x234   : > { %v3033_v27 = vmul.f32 %v7738_v14, %v7738_v14 }
 0x235   : > { %v3285_v62 = vadd.f32 %v3284_v36, %v3030_v63  ;;  %v2768_v41 = vadd.f32 %v2767_v7, %v7747_v33  ;;  %v8199_v33 = vadd.f32 %v7929_v60, %v6753_v28  ;;  %v6185_v20 = vpack.c.bf16 %v8202_v25, %v8196_v1 }
 0x237   : > { %v2769_v32 = vadd.f32 %v2768_v41, %v7735_v13  ;;  %v3286_v39 = vadd.f32 %v3285_v62, %v3031_v26  ;;  %v6190_v36 = vpack.c.bf16 %v8199_v33, %v8193_v10  ;;  %v6756_v62 = vpop.f32.mrb[100].mxu1  ;;  %6373 = vst [vmem:[%s7373_s30 + $0x380] sm:$0xff] %v6185_v20  }
 0x238   : > { %v2501_v21 = vpop.f32.mrb[101].mxu1  ;;  %v8223_v56 = vadd.f32 %v7929_v60, %v6756_v62 }
 0x239   : > { %v2770_v13 = vadd.f32 %v2769_v32, %v7738_v14  ;;  %v3287_v63 = vadd.f32 %v3286_v39, %v3032_v8  ;;  %6374 = vst [vmem:[%s7373_s30 + $0x388] sm:$0xff] %v6190_v36   ;;  %v3035_v14 = vmul.f32 %v7771_v38, %v7771_v38  ;;  %v6757_v28 = vpop.f32.mrb[102].mxu1  ;;  %v3036_v8 = vmul.f32 %v7759_v9, %v7759_v9 }
 0x23a   : > { %v2504_v39 = vpop.f32.mrb[103].mxu1  ;;  %8860 = vst [vmem:[#allocation32_spill] sm:$0xff] %v8223_v56  ;;  %v3038_v36 = vmul.f32 %v7792_v49, %v7792_v49 }
 0x23b   : > { %v3288_v7 = vadd.f32 %v3287_v63, %v3033_v27  ;;  %v2771_v43 = vadd.f32 %v2770_v13, %v7768_v34  ;;  %v8226_v27 = vadd.f32 %v7929_v60, %v2501_v21  ;;  %v8232_v13 = vadd.f32 %v7929_v60, %v2504_v39 }
 0x23c   : > { %v3037_v63 = vmul.f32 %v7762_v12, %v7762_v12 }
 0x23d   : > { %v3289_v41 = vadd.f32 %v3288_v7, %v3034_v48  ;;  %v2772_v26 = vadd.f32 %v2771_v43, %v7771_v38  ;;  %v8229_v38 = vadd.f32 %v7929_v60, %v6757_v28  ;;  %v6195_v62 = vpack.c.bf16 %v8232_v13, %v8226_v27 }
 0x23f   : > { %v2773_v34 = vadd.f32 %v2772_v26, %v7759_v9  ;;  %v3290_v32 = vadd.f32 %v3289_v41, %v3035_v14  ;;  %8861 = vst [vmem:[#allocation33_spill] sm:$0xff] %v8229_v38  ;;  %v6200_v7 = vpack.c.bf16 %v8229_v38, %v8223_v56  ;;  %v6760_v41 = vpop.f32.mrb[104].mxu1  ;;  %v8862_v14 = vld [vmem:[#allocation11_spill] sm:$0xff]  ;;  %6375 = vst [vmem:[%s7373_s30 + $0x390] sm:$0xff] %v6195_v62  }
 0x240   : > { %v2517_v28 = vpop.f32.mrb[105].mxu1  ;;  %v8870_v38 = vld [vmem:[#allocation15_spill] sm:$0xff] }
 0x241   : > { %v2774_v9 = vadd.f32 %v2773_v34, %v7762_v12  ;;  %v3291_v48 = vadd.f32 %v3290_v32, %v3036_v8  ;;  %6376 = vst [vmem:[%s7373_s30 + $0x398] sm:$0xff] %v6200_v7   ;;  %v3039_v12 = vmul.f32 %v8862_v14, %v8862_v14  ;;  %v6761_v8 = vpop.f32.mrb[106].mxu1  ;;  %v8863_v34 = vld [vmem:[#allocation9_spill] sm:$0xff] }
 0x242   : > { %v3040_v32 = vmul.f32 %v8863_v34, %v8863_v34 }
 0x243   : > { %v3292_v43 = vadd.f32 %v3291_v48, %v3037_v63  ;;  %v2775_v20 = vadd.f32 %v2774_v9, %v7792_v49  ;;  %v2520_v63 = vpop.f32.mrb[107].mxu1  ;;  %v8253_v9 = vadd.f32 %v7929_v60, %v6760_v41  ;;  %v8256_v48 = vadd.f32 %v7929_v60, %v2517_v28 }
 0x244   : > { %v8262_v7 = vadd.f32 %v7929_v60, %v2520_v63 }
 0x245   : > { %v3293_v26 = vadd.f32 %v3292_v43, %v3038_v36  ;;  %v2776_v21 = vadd.f32 %v2775_v20, %v8862_v14  ;;  %8864 = vst [vmem:[#allocation11_spill] sm:$0xff] %v8253_v9  ;;  %8865 = vst [vmem:[#allocation9_spill] sm:$0xff] %v8256_v48  ;;  %v8259_v36 = vadd.f32 %v7929_v60, %v6761_v8  ;;  %v8868_v43 = vld [vmem:[#allocation10_spill] sm:$0xff] }
 0x246   : > { %8867 = vst [vmem:[#allocation35_spill] sm:$0xff] %v8262_v7  ;;  %v3041_v20 = vmul.f32 %v8868_v43, %v8868_v43  ;;  %v8869_v14 = vld [vmem:[#allocation14_spill] sm:$0xff]  ;;  %v6205_v8 = vpack.c.bf16 %v8262_v7, %v8256_v48  ;;  %v8878_v7 = vld [vmem:[#allocation19_spill] sm:$0xff] }
 0x247   : > { %v2777_v49 = vadd.f32 %v2776_v21, %v8863_v34  ;;  %v3294_v39 = vadd.f32 %v3293_v26, %v3039_v12  ;;  %8866 = vst [vmem:[#allocation34_spill] sm:$0xff] %v8259_v36  ;;  %v3042_v41 = vmul.f32 %v8869_v14, %v8869_v14  ;;  %v6210_v21 = vpack.c.bf16 %v8259_v36, %v8253_v9  ;;  %v6764_v34 = vpop.f32.mrb[108].mxu1 }
 0x248   : > { %6377 = vst [vmem:[%s7373_s30 + $0x3a0] sm:$0xff] %v6205_v8  }
 0x249   : > { %v2778_v62 = vadd.f32 %v2777_v49, %v8868_v43  ;;  %v3295_v26 = vadd.f32 %v3294_v39, %v3040_v32  ;;  %6378 = vst [vmem:[%s7373_s30 + $0x3a8] sm:$0xff] %v6210_v21   ;;  %v3043_v32 = vmul.f32 %v8870_v38, %v8870_v38  ;;  %v2533_v49 = vpop.f32.mrb[109].mxu1  ;;  %v8871_v43 = vld [vmem:[#allocation12_spill] sm:$0xff] }
 0x24a   : > { %v6765_v39 = vpop.f32.mrb[110].mxu1  ;;  %v3044_v36 = vmul.f32 %v8871_v43, %v8871_v43 }
 0x24b   : > { %v3296_v12 = vadd.f32 %v3295_v26, %v3041_v20  ;;  %v2779_v28 = vadd.f32 %v2778_v62, %v8869_v14  ;;  %v2536_v26 = vpop.f32.mrb[111].mxu1  ;;  %v8283_v14 = vadd.f32 %v7929_v60, %v6764_v34 }
 0x24c   : > { %v8292_v21 = vadd.f32 %v7929_v60, %v2536_v26  ;;  %v6768_v26 = vpop.f32.mrb[112].mxu1 }
 0x24d   : > { %v3297_v63 = vadd.f32 %v3296_v12, %v3042_v41  ;;  %v2780_v56 = vadd.f32 %v2779_v28, %v8870_v38  ;;  %8872 = vst [vmem:[#allocation10_spill] sm:$0xff] %v8283_v14  ;;  %v8286_v41 = vadd.f32 %v7929_v60, %v2533_v49  ;;  %v8289_v38 = vadd.f32 %v7929_v60, %v6765_v39  ;;  %v8876_v12 = vld [vmem:[#allocation13_spill] sm:$0xff] }
 0x24e   : > { %8875 = vst [vmem:[#allocation12_spill] sm:$0xff] %v8292_v21  ;;  %v3045_v28 = vmul.f32 %v8876_v12, %v8876_v12 }
 0x24f   : > { %v2781_v20 = vadd.f32 %v2780_v56, %v8871_v43  ;;  %v3298_v62 = vadd.f32 %v3297_v63, %v3043_v32  ;;  %8873 = vst [vmem:[#allocation14_spill] sm:$0xff] %v8286_v41  ;;  %8874 = vst [vmem:[#allocation15_spill] sm:$0xff] %v8289_v38  ;;  %v8877_v63 = vld [vmem:[#allocation18_spill] sm:$0xff]  ;;  %v6220_v32 = vpack.c.bf16 %v8289_v38, %v8283_v14 }
 0x250   : > { %v3046_v34 = vmul.f32 %v8877_v63, %v8877_v63  ;;  %v6215_v39 = vpack.c.bf16 %v8292_v21, %v8286_v41  ;;  %v8885_v21 = vld [vmem:[#allocation23_spill] sm:$0xff] }
 0x251   : > { %v2782_v56 = vadd.f32 %v2781_v20, %v8876_v12  ;;  %v3299_v8 = vadd.f32 %v3298_v62, %v3044_v36  ;;  %6380 = vst [vmem:[%s7373_s30 + $0x3b8] sm:$0xff] %v6220_v32   ;;  %v3047_v36 = vmul.f32 %v8878_v7, %v8878_v7  ;;  %v2549_v20 = vpop.f32.mrb[113].mxu1  ;;  %v8879_v12 = vld [vmem:[#allocation16_spill] sm:$0xff] }
 0x252   : > { %6379 = vst [vmem:[%s7373_s30 + $0x3b0] sm:$0xff] %v6215_v39   ;;  %v6769_v62 = vpop.f32.mrb[114].mxu1  ;;  %v3048_v38 = vmul.f32 %v8879_v12, %v8879_v12  ;;  %v8884_v39 = vld [vmem:[#allocation22_spill] sm:$0xff] }
 0x253   : > { %v3300_v49 = vadd.f32 %v3299_v8, %v3045_v28  ;;  %v2783_v43 = vadd.f32 %v2782_v56, %v8877_v63  ;;  %v2552_v8 = vpop.f32.mrb[115].mxu1  ;;  %v8313_v63 = vadd.f32 %v7929_v60, %v6768_v26  ;;  %v3050_v26 = vmul.f32 %v8884_v39, %v8884_v39 }
 0x254   : > { %v8322_v32 = vadd.f32 %v7929_v60, %v2552_v8  ;;  %v6772_v8 = vpop.f32.mrb[116].mxu1 }
 0x255   : > { %v3301_v9 = vadd.f32 %v3300_v49, %v3046_v34  ;;  %v2784_v48 = vadd.f32 %v2783_v43, %v8878_v7  ;;  %8880 = vst [vmem:[#allocation13_spill] sm:$0xff] %v8313_v63  ;;  %v8316_v34 = vadd.f32 %v7929_v60, %v2549_v20  ;;  %v8319_v7 = vadd.f32 %v7929_v60, %v6769_v62  ;;  %v8883_v49 = vld [vmem:[#allocation17_spill] sm:$0xff] }
 0x256   : > { %8882 = vst [vmem:[#allocation19_spill] sm:$0xff] %v8322_v32  ;;  %v3049_v43 = vmul.f32 %v8883_v49, %v8883_v49 }
 0x257   : > { %v2785_v28 = vadd.f32 %v2784_v48, %v8879_v12  ;;  %v3302_v56 = vadd.f32 %v3301_v9, %v3047_v36  ;;  %8881 = vst [vmem:[#allocation18_spill] sm:$0xff] %v8319_v7  ;;  %v6230_v36 = vpack.c.bf16 %v8319_v7, %v8313_v63  ;;  %v6225_v62 = vpack.c.bf16 %v8322_v32, %v8316_v34  ;;  %v8892_v63 = vld [vmem:[#allocation26_spill] sm:$0xff] }
 0x259   : > { %v2786_v48 = vadd.f32 %v2785_v28, %v8883_v49  ;;  %v3303_v9 = vadd.f32 %v3302_v56, %v3048_v38  ;;  %6382 = vst [vmem:[%s7373_s30 + $0x3c8] sm:$0xff] %v6230_v36   ;;  %v3051_v38 = vmul.f32 %v8885_v21, %v8885_v21  ;;  %6381 = vst [vmem:[%s7373_s30 + $0x3c0] sm:$0xff] %v6225_v62   ;;  %v2565_v28 = vpop.f32.mrb[117].mxu1  ;;  %v8886_v49 = vld [vmem:[#allocation20_spill] sm:$0xff] }
 0x25a   : > { %v6773_v56 = vpop.f32.mrb[118].mxu1  ;;  %v3052_v7 = vmul.f32 %v8886_v49, %v8886_v49  ;;  %v3054_v62 = vmul.f32 %v7888_v18, %v7888_v18 }
 0x25b   : > { %v3304_v20 = vadd.f32 %v3303_v9, %v3049_v43  ;;  %v2787_v12 = vadd.f32 %v2786_v48, %v8884_v39  ;;  %v2568_v9 = vpop.f32.mrb[119].mxu1  ;;  %v8343_v39 = vadd.f32 %v7929_v60, %v6772_v8 }
 0x25c   : > { %v8352_v36 = vadd.f32 %v7929_v60, %v2568_v9 }
 0x25d   : > { %v3305_v14 = vadd.f32 %v3304_v20, %v3050_v26  ;;  %v2788_v41 = vadd.f32 %v2787_v12, %v8885_v21  ;;  %8887 = vst [vmem:[#allocation16_spill] sm:$0xff] %v8343_v39  ;;  %v8346_v26 = vadd.f32 %v7929_v60, %v2565_v28  ;;  %v8349_v21 = vadd.f32 %v7929_v60, %v6773_v56  ;;  %v8891_v20 = vld [vmem:[#allocation21_spill] sm:$0xff] }
 0x25e   : > { %8890 = vst [vmem:[#allocation23_spill] sm:$0xff] %v8352_v36  ;;  %v3053_v12 = vmul.f32 %v8891_v20, %v8891_v20 }
 0x25f   : > { %v2789_v43 = vadd.f32 %v2788_v41, %v8886_v49  ;;  %v3306_v48 = vadd.f32 %v3305_v14, %v3051_v38  ;;  %8888 = vst [vmem:[#allocation17_spill] sm:$0xff] %v8346_v26  ;;  %8889 = vst [vmem:[#allocation22_spill] sm:$0xff] %v8349_v21  ;;  %v6240_v8 = vpack.c.bf16 %v8349_v21, %v8343_v39  ;;  %v6776_v49 = vpop.f32.mrb[120].mxu1 }
 0x260   : > { %v6235_v56 = vpack.c.bf16 %v8352_v36, %v8346_v26  ;;  %v8897_v36 = vld [vmem:[#allocation30_spill] sm:$0xff] }
 0x261   : > { %v2790_v41 = vadd.f32 %v2789_v43, %v8891_v20  ;;  %v3307_v14 = vadd.f32 %v3306_v48, %v3052_v7  ;;  %6384 = vst [vmem:[%s7373_s30 + $0x3d8] sm:$0xff] %v6240_v8   ;;  %v3055_v7 = vmul.f32 %v8892_v63, %v8892_v63  ;;  %v2581_v43 = vpop.f32.mrb[121].mxu1  ;;  %v8893_v20 = vld [vmem:[#allocation24_spill] sm:$0xff] }
 0x262   : > { %6383 = vst [vmem:[%s7373_s30 + $0x3d0] sm:$0xff] %v6235_v56   ;;  %v6777_v48 = vpop.f32.mrb[122].mxu1  ;;  %v3056_v21 = vmul.f32 %v8893_v20, %v8893_v20 }
 0x263   : > { %v3308_v38 = vadd.f32 %v3307_v14, %v3053_v12  ;;  %v2791_v28 = vadd.f32 %v2790_v41, %v7888_v18  ;;  %v2584_v41 = vpop.f32.mrb[123].mxu1  ;;  %v8373_v14 = vadd.f32 %v7929_v60, %v6776_v49 }
 0x264   : > { %v8382_v8 = vadd.f32 %v7929_v60, %v2584_v41  ;;  %v6780_v41 = vpop.f32.mrb[124].mxu1 }
 0x265   : > { %v3309_v9 = vadd.f32 %v3308_v38, %v3054_v62  ;;  %v2792_v32 = vadd.f32 %v2791_v28, %v8892_v63  ;;  %v8376_v62 = vadd.f32 %v7929_v60, %v2581_v43  ;;  %v8379_v63 = vadd.f32 %v7929_v60, %v6777_v48  ;;  %v8895_v38 = vld [vmem:[#allocation25_spill] sm:$0xff] }
 0x266   : > { %v3057_v28 = vmul.f32 %v8895_v38, %v8895_v38 }
 0x267   : > { %v2793_v18 = vadd.f32 %v2792_v32, %v8893_v20  ;;  %v3310_v12 = vadd.f32 %v3309_v9, %v3055_v7  ;;  %8894 = vst [vmem:[#allocation20_spill] sm:$0xff] %v8379_v63  ;;  %v8896_v9 = vld [vmem:[#allocation29_spill] sm:$0xff]  ;;  %v6250_v7 = vpack.c.bf16 %v8379_v63, %v8373_v14  ;;  %v6245_v48 = vpack.c.bf16 %v8382_v8, %v8376_v62 }
 0x268   : > { %v3058_v49 = vmul.f32 %v8896_v9, %v8896_v9 }
 0x269   : > { %v2794_v32 = vadd.f32 %v2793_v18, %v8895_v38  ;;  %v3311_v56 = vadd.f32 %v3310_v12, %v3056_v21  ;;  %6386 = vst [vmem:[%s7373_s30 + $0x3e8] sm:$0xff] %v6250_v7   ;;  %v3059_v21 = vmul.f32 %v8897_v36, %v8897_v36  ;;  %6385 = vst [vmem:[%s7373_s30 + $0x3e0] sm:$0xff] %v6245_v48   ;;  %v2597_v18 = vpop.f32.mrb[125].mxu1  ;;  %v8898_v38 = vld [vmem:[#allocation27_spill] sm:$0xff] }
 0x26a   : > { %v6781_v12 = vpop.f32.mrb[126].mxu1  ;;  %v3060_v63 = vmul.f32 %v8898_v38, %v8898_v38  ;;  %v3062_v48 = vmul.f32 %v7941_v3, %v7941_v3 }
 0x26b   : > { %v3312_v43 = vadd.f32 %v3311_v56, %v3057_v28  ;;  %v2795_v20 = vadd.f32 %v2794_v32, %v8896_v9  ;;  %v2600_v56 = vpop.f32.mrb[127].mxu1  ;;  %v8403_v9 = vadd.f32 %v7929_v60, %v6780_v41 }
 0x26c   : > { %v8412_v7 = vadd.f32 %v7929_v60, %v2600_v56 }
 0x26d   : > { %v3313_v39 = vadd.f32 %v3312_v43, %v3058_v49  ;;  %v2796_v26 = vadd.f32 %v2795_v20, %v8897_v36  ;;  %v8406_v49 = vadd.f32 %v7929_v60, %v2597_v18  ;;  %v8409_v36 = vadd.f32 %v7929_v60, %v6781_v12  ;;  %v8899_v43 = vld [vmem:[#allocation28_spill] sm:$0xff] }
 0x26e   : > { %v3061_v20 = vmul.f32 %v8899_v43, %v8899_v43 }
 0x26f   : > { %v2797_v28 = vadd.f32 %v2796_v26, %v8898_v38  ;;  %v3314_v32 = vadd.f32 %v3313_v39, %v3059_v21  ;;  %v6260_v41 = vpack.c.bf16 %v8409_v36, %v8403_v9  ;;  %v6255_v12 = vpack.c.bf16 %v8412_v7, %v8406_v49 }
 0x271   : > { %v2798_v26 = vadd.f32 %v2797_v28, %v8899_v43  ;;  %v3315_v39 = vadd.f32 %v3314_v32, %v3060_v63  ;;  %6388 = vst [vmem:[%s7373_s30 + $0x3f8] sm:$0xff] %v6260_v41   ;;  %v3063_v28 = vmul.f32 %v7944_v31, %v7944_v31  ;;  %6387 = vst [vmem:[%s7373_s30 + $0x3f0] sm:$0xff] %v6255_v12   ;;  %v8900_v43 = vld [vmem:[#allocation31_spill] sm:$0xff]  ;;  %s6980_s30 = scalar_lea.vmem %s6979_s26, 32768 }
 0x272   : > { %v3064_v63 = vmul.f32 %v7932_v17, %v7932_v17  ;;  %p6982_p1 = scmp.lt.s32.totalorder %s6980_s30, %s6974_s17 }
 0x273   : > { %v3316_v21 = vadd.f32 %v3315_v39, %v3061_v20  ;;  %v2799_v18 = vadd.f32 %v2798_v26, %v7941_v3  ;;  %v3065_v3 = vmul.f32 %v8900_v43, %v8900_v43  ;;  %v3066_v39 = vmul.f32 %v7959_v22, %v7959_v22 }
 0x274   : > { %p6983_p2 = por %p6982_p1, %p6981_p0 }
 0x275   : > { %v3317_v60 = vadd.f32 %v3316_v21, %v3062_v48  ;;  %v2800_v38 = vadd.f32 %v2799_v18, %v7944_v31  ;;  %v3067_v18 = vmul.f32 %v7965_v2, %v7965_v2 }
 0x276   : > { %p6984_p3 = pnand %p6983_p2, %p6977_p13 }
 0x277   : > { %v2801_v32 = vadd.f32 %v2800_v38, %v7932_v17  ;;  %v3318_v56 = vadd.f32 %v3317_v60, %v3063_v28  ;;  %v3068_v17 = vmul.f32 %v7956_v59, %v7956_v59  ;;  %v3069_v38 = vmul.f32 %v7962_v37, %v7962_v37 }
 0x279   : > { %v2802_v20 = vadd.f32 %v2801_v32, %v8900_v43  ;;  %v3319_v26 = vadd.f32 %v3318_v56, %v3064_v63 }
 0x27b   : > { %v3320_v48 = vadd.f32 %v3319_v26, %v3065_v3  ;;  %v2803_v41 = vadd.f32 %v2802_v20, %v7959_v22  ;;  %v3070_v22 = vmul.f32 %v7986_v52, %v7986_v52  ;;  %v3072_v3 = vmul.f32 %v7983_v23, %v7983_v23 }
 0x27c   : > { %v3073_v26 = vmul.f32 %v7989_v46, %v7989_v46 }
 0x27d   : > { %v3321_v31 = vadd.f32 %v3320_v48, %v3066_v39  ;;  %v2804_v21 = vadd.f32 %v2803_v41, %v7965_v2  ;;  %v3074_v48 = vmul.f32 %v8016_v51, %v8016_v51 }
 0x27f   : > { %v2805_v12 = vadd.f32 %v2804_v21, %v7956_v59  ;;  %v3322_v60 = vadd.f32 %v3321_v31, %v3067_v18  ;;  %v3071_v59 = vmul.f32 %v7992_v4, %v7992_v4  ;;  %v3075_v31 = vmul.f32 %v8022_v35, %v8022_v35 }
 0x281   : > { %v3323_v28 = vadd.f32 %v3322_v60, %v3068_v17  ;;  %v2806_v63 = vadd.f32 %v2805_v12, %v7962_v37 }
 0x283   : > { %v2807_v32 = vadd.f32 %v2806_v63, %v7986_v52  ;;  %v3324_v2 = vadd.f32 %v3323_v28, %v3069_v38 }
 0x285   : > { %v3325_v56 = vadd.f32 %v3324_v2, %v3070_v22  ;;  %v2808_v43 = vadd.f32 %v2807_v32, %v7992_v4 }
 0x287   : > { %v2809_v37 = vadd.f32 %v2808_v43, %v7983_v23  ;;  %v3326_v20 = vadd.f32 %v3325_v56, %v3071_v59 }
 0x289   : > { %v3327_v39 = vadd.f32 %v3326_v20, %v3072_v3  ;;  %v2810_v52 = vadd.f32 %v2809_v37, %v7989_v46 }
 0x28b   : > { %v2811_v41 = vadd.f32 %v2810_v52, %v8016_v51  ;;  %v3328_v4 = vadd.f32 %v3327_v39, %v3073_v26 }
 0x28d   : > { %v3329_v23 = vadd.f32 %v3328_v4, %v3074_v48  ;;  %v2812_v46 = vadd.f32 %v2811_v41, %v8022_v35 }
 0x28e   : > { %6987 = shalt.err (!%p6984_p3)
}
 0x28f   : > { %s6988_s6 = scalar_lea.hbm %s8467_s14, 16384  ;;  %s6992_s9 = scalar_lea.hbm %s8750_s3, 32768 }
 0x290   : > { %p6989_p4 = scmp.ne.s32.totalorder %s8467_s14, %s6988_s6  ;;  %p6993_p9 = scmp.lt.u32.totalorder %s8467_s14, %s8750_s3 }
 0x291   : > { %p6994_p10 = scmp.lt.u32.totalorder %s6992_s9, %s6988_s6  ;;  %p6996_p12 = scmp.lt.u32.totalorder %s6988_s6, %s8467_s14 }
 0x292   : > { %p6990_p7 = pnand %p6989_p4, %p7173_p5 }
 0x293   : > { %p6995_p11 = por %p6994_p10, %p6993_p9 }
 0x294   : > { %p6991_p8 = pneg %p6990_p7 }
 0x295   : > { %p6997_p13 = por %p6996_p12, %p6995_p11 }
 0x297   : > { %p6998_p0 = pnand %p6997_p13, %p6991_p8 }
 0x299   : > { %7001 = shalt.err (!%p6998_p0)
}
 0x29a   : > { %s7099_s13 = smov 64   ;;  %s7100_s17 = smov 4   ;;  %v3076_v51 = vmul.f32 %v8013_v24, %v8013_v24  ;;  %v2813_v35 = vadd.f32 %v2812_v46, %v8013_v24  ;;  %v3330_v21 = vadd.f32 %v3329_v23, %v3075_v31  ;;  %v3077_v18 = vmul.f32 %v8019_v16, %v8019_v16 }
 0x29b   : > { %6790 = dma.vmem_to_hbm [thread:$0]  (%p7173_p5), %s8469_s11, 16384, %s8467_s14, %s4673_s15, %s7099_s13, %s7099_s13, %s7100_s17   ;;  %v3078_v60 = vmul.f32 %v8046_v53, %v8046_v53  ;;  %v3079_v32 = vmul.f32 %v8052_v5, %v8052_v5  ;;  %v3080_v24 = vmul.f32 %v8043_v50, %v8043_v50  ;;  %v3083_v26 = vmul.f32 %v8082_v42, %v8082_v42 }
 0x29c   : > { %v3331_v17 = vadd.f32 %v3330_v21, %v3076_v51  ;;  %v2814_v12 = vadd.f32 %v2813_v35, %v8019_v16  ;;  %v3081_v16 = vmul.f32 %v8049_v55, %v8049_v55  ;;  %v3087_v31 = vmul.f32 %v8112_v19, %v8112_v19  ;;  %s4677_s11 = sand.u32 1, %s7154_s22   ;;  %s5361_s14 = sshll.u32 %s7154_s22, 4 }
 0x29d   : > { %s228_s15 = scalar_lea.vmem [#allocation4], %s7352_s16  ;;  %s234_s26 = scalar_lea.vmem [#allocation6], %s7352_s16 }
 0x29e   : > { %v2815_v38 = vadd.f32 %v2814_v12, %v8046_v53  ;;  %v3332_v28 = vadd.f32 %v3331_v17, %v3077_v18  ;;  %v3082_v53 = vmul.f32 %v8076_v58, %v8076_v58  ;;  %s4710_s25 = sshll.u32 %s228_s15, 4  ;;  %s4723_s30 = sshll.u32 %s234_s26, 4  ;;  %s8671_s25 = int_to_ptr.vmem [resolvable:$true] %s4710_s25  ;;  %s8678_s30 = int_to_ptr.vmem [resolvable:$true] %s4723_s30 }
 0x29f   : > { %s8669_s8 = scalar_lea.hbm %s8751_s4, %s5361_s14  ;;  %s8676_s10 = scalar_lea.hbm %s8752_s5, %s5361_s14 }
 0x2a0   : > { %v3333_v63 = vadd.f32 %v3332_v28, %v3078_v60  ;;  %v2816_v22 = vadd.f32 %v2815_v38, %v8052_v5  ;;  %v3091_v38 = vmul.f32 %v8142_v61, %v8142_v61  ;;  %s8680_s12 = scalar_lea.sflag [#allocation5], %s4677_s11  ;;  %s7002_s13 = scalar_lea.vmem %s8671_s25, 16 }
 0x2a1   : > { %p7003_p1 = scmp.ne.s32.totalorder %s8671_s25, %s7002_s13  ;;  %s7101_s17 = smov [#allocation4]  }
 0x2a2   : > { %v2817_v2 = vadd.f32 %v2816_v22, %v8043_v50  ;;  %v3334_v56 = vadd.f32 %v3333_v63, %v3079_v32  ;;  %v3084_v50 = vmul.f32 %v8073_v45, %v8073_v45  ;;  %s7006_s6 = sshll.u32 %s7101_s17, 4  ;;  %s7007_s6 = int_to_ptr.vmem [resolvable:$false] %s7006_s6 }
 0x2a3   : > { %p7004_p2 = pnand %p7003_p1, %p7173_p5  ;;  %s7008_s7 = scalar_lea.vmem %s7007_s6, 32 }
 0x2a4   : > { %v3335_v43 = vadd.f32 %v3334_v56, %v3080_v24  ;;  %v2818_v59 = vadd.f32 %v2817_v2, %v8049_v55  ;;  %v3085_v55 = vmul.f32 %v8079_v30, %v8079_v30  ;;  %p7009_p4 = scmp.lt.s32.totalorder %s8671_s25, %s7007_s6  ;;  %p7010_p7 = scmp.lt.s32.totalorder %s7008_s7, %s7002_s13 }
 0x2a5   : > { %p7005_p3 = pneg %p7004_p2 }
 0x2a6   : > { %v2819_v3 = vadd.f32 %v2818_v59, %v8076_v58  ;;  %v3336_v37 = vadd.f32 %v3335_v43, %v3081_v16  ;;  %v3086_v58 = vmul.f32 %v8106_v6, %v8106_v6  ;;  %v3095_v16 = vmul.f32 %v8172_v40, %v8172_v40  ;;  %p7011_p8 = por %p7010_p7, %p7009_p4 }
 0x2a8   : > { %v3337_v20 = vadd.f32 %v3336_v37, %v3082_v53  ;;  %v2820_v5 = vadd.f32 %v2819_v3, %v8082_v42  ;;  %p7012_p9 = pnand %p7011_p8, %p7005_p3 }
 0x2aa   : > { %v2821_v39 = vadd.f32 %v2820_v5, %v8073_v45  ;;  %v3338_v52 = vadd.f32 %v3337_v20, %v3083_v26  ;;  %v3088_v45 = vmul.f32 %v8103_v15, %v8103_v15  ;;  %v3099_v26 = vmul.f32 %v8202_v25, %v8202_v25 }
 0x2ac   : > { %v3339_v48 = vadd.f32 %v3338_v52, %v3084_v50  ;;  %v2822_v41 = vadd.f32 %v2821_v39, %v8079_v30  ;;  %v3089_v30 = vmul.f32 %v8109_v11, %v8109_v11 }
 0x2ae   : > { %v2823_v4 = vadd.f32 %v2822_v41, %v8106_v6  ;;  %v3340_v23 = vadd.f32 %v3339_v48, %v3085_v55  ;;  %v3090_v6 = vmul.f32 %v8136_v0, %v8136_v0 }
 0x2b0   : > { %v3341_v46 = vadd.f32 %v3340_v23, %v3086_v58  ;;  %v2824_v42 = vadd.f32 %v2823_v4, %v8112_v19  ;;  %v3103_v4 = vmul.f32 %v8232_v13, %v8232_v13 }
 0x2b2   : > { %v2825_v51 = vadd.f32 %v2824_v42, %v8103_v15  ;;  %v3342_v35 = vadd.f32 %v3341_v46, %v3087_v31  ;;  %v3092_v15 = vmul.f32 %v8133_v54, %v8133_v54  ;;  %v8902_v31 = vld [vmem:[#allocation33_spill] sm:$0xff] }
 0x2b4   : > { %v3343_v21 = vadd.f32 %v3342_v35, %v3088_v45  ;;  %v2826_v18 = vadd.f32 %v2825_v51, %v8109_v11  ;;  %v3093_v11 = vmul.f32 %v8139_v57, %v8139_v57 }
 0x2b6   : > { %v2827_v17 = vadd.f32 %v2826_v18, %v8136_v0  ;;  %v3344_v12 = vadd.f32 %v3343_v21, %v3089_v30  ;;  %v3094_v0 = vmul.f32 %v8166_v47, %v8166_v47 }
 0x2b8   : > { %v3345_v60 = vadd.f32 %v3344_v12, %v3090_v6  ;;  %v2828_v19 = vadd.f32 %v2827_v17, %v8142_v61  ;;  %v8905_v12 = vld [vmem:[#allocation11_spill] sm:$0xff] }
 0x2ba   : > { %v2829_v28 = vadd.f32 %v2828_v19, %v8133_v54  ;;  %v3346_v63 = vadd.f32 %v3345_v60, %v3091_v38  ;;  %v3096_v54 = vmul.f32 %v8163_v29, %v8163_v29  ;;  %v3108_v60 = vmul.f32 %v8905_v12, %v8905_v12 }
 0x2bc   : > { %v3347_v22 = vadd.f32 %v3346_v63, %v3092_v15  ;;  %v2830_v32 = vadd.f32 %v2829_v28, %v8139_v57  ;;  %v3097_v57 = vmul.f32 %v8169_v44, %v8169_v44  ;;  %v8906_v15 = vld [vmem:[#allocation34_spill] sm:$0xff] }
 0x2bd   : > { %v3109_v28 = vmul.f32 %v8906_v15, %v8906_v15 }
 0x2be   : > { %v2831_v24 = vadd.f32 %v2830_v32, %v8166_v47  ;;  %v3348_v2 = vadd.f32 %v3347_v22, %v3093_v11  ;;  %v3098_v47 = vmul.f32 %v8196_v1, %v8196_v1  ;;  %v8907_v22 = vld [vmem:[#allocation14_spill] sm:$0xff] }
 0x2bf   : > { %v3110_v32 = vmul.f32 %v8907_v22, %v8907_v22 }
 0x2c0   : > { %v3349_v56 = vadd.f32 %v3348_v2, %v3094_v0  ;;  %v2832_v61 = vadd.f32 %v2831_v24, %v8172_v40 }
 0x2c2   : > { %v2833_v43 = vadd.f32 %v2832_v61, %v8163_v29  ;;  %v3350_v59 = vadd.f32 %v3349_v56, %v3095_v16  ;;  %v3100_v29 = vmul.f32 %v8193_v10, %v8193_v10  ;;  %v8908_v56 = vld [vmem:[#allocation12_spill] sm:$0xff] }
 0x2c3   : > { %v3111_v16 = vmul.f32 %v8908_v56, %v8908_v56 }
 0x2c4   : > { %v3351_v53 = vadd.f32 %v3350_v59, %v3096_v54  ;;  %v2834_v3 = vadd.f32 %v2833_v43, %v8169_v44  ;;  %v3101_v44 = vmul.f32 %v8199_v33, %v8199_v33  ;;  %v8909_v54 = vld [vmem:[#allocation10_spill] sm:$0xff] }
 0x2c5   : > { %v3112_v43 = vmul.f32 %v8909_v54, %v8909_v54 }
 0x2c6   : > { %v2835_v37 = vadd.f32 %v2834_v3, %v8196_v1  ;;  %v3352_v20 = vadd.f32 %v3351_v53, %v3097_v57  ;;  %v3102_v1 = vmul.f32 %v8226_v27, %v8226_v27  ;;  %v8910_v53 = vld [vmem:[#allocation15_spill] sm:$0xff] }
 0x2c7   : > { %v3113_v3 = vmul.f32 %v8910_v53, %v8910_v53 }
 0x2c8   : > { %v3353_v5 = vadd.f32 %v3352_v20, %v3098_v47  ;;  %v2836_v40 = vadd.f32 %v2835_v37, %v8202_v25  ;;  %v3114_v20 = vmul.f32 %v8316_v34, %v8316_v34 }
 0x2ca   : > { %v2837_v50 = vadd.f32 %v2836_v40, %v8193_v10  ;;  %v3354_v39 = vadd.f32 %v3353_v5, %v3099_v26  ;;  %v8901_v10 = vld [vmem:[#allocation32_spill] sm:$0xff] }
 0x2cb   : > { %v3104_v23 = vmul.f32 %v8901_v10, %v8901_v10 }
 0x2cc   : > { %v3355_v52 = vadd.f32 %v3354_v39, %v3100_v29  ;;  %v2838_v55 = vadd.f32 %v2837_v50, %v8199_v33  ;;  %v3105_v33 = vmul.f32 %v8902_v31, %v8902_v31  ;;  %v8911_v29 = vld [vmem:[#allocation19_spill] sm:$0xff] }
 0x2cd   : > { %v3115_v39 = vmul.f32 %v8911_v29, %v8911_v29 }
 0x2ce   : > { %v2839_v48 = vadd.f32 %v2838_v55, %v8226_v27  ;;  %v3356_v41 = vadd.f32 %v3355_v52, %v3101_v44  ;;  %v8903_v27 = vld [vmem:[#allocation9_spill] sm:$0xff] }
 0x2cf   : > { %v3106_v35 = vmul.f32 %v8903_v27, %v8903_v27  ;;  %v8912_v44 = vld [vmem:[#allocation13_spill] sm:$0xff] }
 0x2d0   : > { %v3357_v58 = vadd.f32 %v3356_v41, %v3102_v1  ;;  %v2840_v25 = vadd.f32 %v2839_v48, %v8232_v13  ;;  %v8904_v13 = vld [vmem:[#allocation35_spill] sm:$0xff]  ;;  %v3116_v52 = vmul.f32 %v8912_v44, %v8912_v44  ;;  %v8913_v48 = vld [vmem:[#allocation18_spill] sm:$0xff] }
 0x2d1   : > { %v3107_v17 = vmul.f32 %v8904_v13, %v8904_v13  ;;  %v3117_v41 = vmul.f32 %v8913_v48, %v8913_v48 }
 0x2d2   : > { %v2841_v46 = vadd.f32 %v2840_v25, %v8901_v10  ;;  %v3358_v42 = vadd.f32 %v3357_v58, %v3103_v4 }
 0x2d4   : > { %v3359_v45 = vadd.f32 %v3358_v42, %v3104_v23  ;;  %v2842_v51 = vadd.f32 %v2841_v46, %v8902_v31  ;;  %v8915_v42 = vld [vmem:[#allocation23_spill] sm:$0xff] }
 0x2d6   : > { %v2843_v30 = vadd.f32 %v2842_v51, %v8903_v27  ;;  %v3360_v21 = vadd.f32 %v3359_v45, %v3105_v33  ;;  %v3119_v33 = vmul.f32 %v8915_v42, %v8915_v42  ;;  %v8916_v45 = vld [vmem:[#allocation16_spill] sm:$0xff] }
 0x2d7   : > { %v3120_v51 = vmul.f32 %v8916_v45, %v8916_v45 }
 0x2d8   : > { %v3361_v18 = vadd.f32 %v3360_v21, %v3106_v35  ;;  %v2844_v6 = vadd.f32 %v2843_v30, %v8904_v13  ;;  %v8917_v30 = vld [vmem:[#allocation22_spill] sm:$0xff] }
 0x2d9   : > { %v3121_v21 = vmul.f32 %v8917_v30, %v8917_v30 }
 0x2da   : > { %v2845_v19 = vadd.f32 %v2844_v6, %v8905_v12  ;;  %v3362_v38 = vadd.f32 %v3361_v18, %v3107_v17  ;;  %v3122_v6 = vmul.f32 %v8376_v62, %v8376_v62 }
 0x2dc   : > { %v3363_v63 = vadd.f32 %v3362_v38, %v3108_v60  ;;  %v2846_v11 = vadd.f32 %v2845_v19, %v8906_v15  ;;  %v3123_v38 = vmul.f32 %v8382_v8, %v8382_v8  ;;  %v3124_v15 = vmul.f32 %v8373_v14, %v8373_v14 }
 0x2de   : > { %v2847_v0 = vadd.f32 %v2846_v11, %v8907_v22  ;;  %v3364_v24 = vadd.f32 %v3363_v63, %v3109_v28  ;;  %v8918_v11 = vld [vmem:[#allocation20_spill] sm:$0xff] }
 0x2df   : > { %v3125_v22 = vmul.f32 %v8918_v11, %v8918_v11 }
 0x2e0   : > { %v3365_v2 = vadd.f32 %v3364_v24, %v3110_v32  ;;  %v2848_v61 = vadd.f32 %v2847_v0, %v8908_v56 }
 0x2e2   : > { %v2849_v59 = vadd.f32 %v2848_v61, %v8909_v54  ;;  %v3366_v57 = vadd.f32 %v3365_v2, %v3111_v16  ;;  %v3128_v61 = vmul.f32 %v8403_v9, %v8403_v9 }
 0x2e4   : > { %v3367_v47 = vadd.f32 %v3366_v57, %v3112_v43  ;;  %v2850_v37 = vadd.f32 %v2849_v59, %v8910_v53  ;;  %v3129_v43 = vmul.f32 %v8409_v36, %v8409_v36 }
 0x2e6   : > { %v2851_v5 = vadd.f32 %v2850_v37, %v8316_v34  ;;  %v3368_v40 = vadd.f32 %v3367_v47, %v3113_v3  ;;  %v8914_v34 = vld [vmem:[#allocation17_spill] sm:$0xff] }
 0x2e7   : > { %v3118_v4 = vmul.f32 %v8914_v34, %v8914_v34 }
 0x2e8   : > { %v3369_v26 = vadd.f32 %v3368_v40, %v3114_v20  ;;  %v2852_v50 = vadd.f32 %v2851_v5, %v8911_v29 }
 0x2ea   : > { %v2853_v55 = vadd.f32 %v2852_v50, %v8912_v44  ;;  %v3370_v1 = vadd.f32 %v3369_v26, %v3115_v39 }
 0x2ec   : > { %v3371_v58 = vadd.f32 %v3370_v1, %v3116_v52  ;;  %v2854_v25 = vadd.f32 %v2853_v55, %v8913_v48 }
 0x2ee   : > { %v2855_v10 = vadd.f32 %v2854_v25, %v8914_v34  ;;  %v3372_v23 = vadd.f32 %v3371_v58, %v3117_v41 }
 0x2f0   : > { %v3373_v46 = vadd.f32 %v3372_v23, %v3118_v4  ;;  %v2856_v31 = vadd.f32 %v2855_v10, %v8915_v42 }
 0x2f2   : > { %v2857_v27 = vadd.f32 %v2856_v31, %v8916_v45  ;;  %v3374_v35 = vadd.f32 %v3373_v46, %v3119_v33 }
 0x2f4   : > { %v3375_v18 = vadd.f32 %v3374_v35, %v3120_v51  ;;  %v2858_v13 = vadd.f32 %v2857_v27, %v8917_v30 }
 0x2f6   : > { %v2859_v17 = vadd.f32 %v2858_v13, %v8376_v62  ;;  %v3376_v12 = vadd.f32 %v3375_v18, %v3121_v21  ;;  %v3126_v62 = vmul.f32 %v8406_v49, %v8406_v49 }
 0x2f8   : > { %v3377_v60 = vadd.f32 %v3376_v12, %v3122_v6  ;;  %v2860_v19 = vadd.f32 %v2859_v17, %v8382_v8 }
 0x2fa   : > { %v2861_v28 = vadd.f32 %v2860_v19, %v8373_v14  ;;  %v3378_v63 = vadd.f32 %v3377_v60, %v3123_v38  ;;  %v3127_v14 = vmul.f32 %v8412_v7, %v8412_v7 }
 0x2fc   : > { %v3379_v32 = vadd.f32 %v3378_v63, %v3124_v15  ;;  %v2862_v0 = vadd.f32 %v2861_v28, %v8918_v11 }
 0x2fe   : > { %v2863_v24 = vadd.f32 %v2862_v0, %v8406_v49  ;;  %v3380_v2 = vadd.f32 %v3379_v32, %v3125_v22 }
 0x300   : > { %v3381_v56 = vadd.f32 %v3380_v2, %v3126_v62  ;;  %v2864_v8 = vadd.f32 %v2863_v24, %v8412_v7 }
 0x302   : > { %v2865_v16 = vadd.f32 %v2864_v8, %v8403_v9  ;;  %v3382_v54 = vadd.f32 %v3381_v56, %v3127_v14 }
 0x304   : > { %v2866_v49 = vadd.f32 %v2865_v16, %v8409_v36  ;;  %v3383_v59 = vadd.f32 %v3382_v54, %v3128_v61 }
 0x306   : > { %v2867_v57 = vrot.slane %v2866_v49, 4  ;;  %v3384_v53 = vadd.f32 %v3383_v59, %v3129_v43 }
 0x308   : > { %v3385_v3 = vrot.slane %v3384_v53, 4  ;;  %v2868_v7 = vadd.f32 %v2867_v57, %v2866_v49 }
 0x30a   : > { %v2869_v47 = vrot.slane %v2868_v7, 2  ;;  %v3386_v37 = vadd.f32 %v3385_v3, %v3384_v53 }
 0x30c   : > { %v2870_v20 = vadd.f32 %v2869_v47, %v2868_v7  ;;  %v3387_v5 = vrot.slane %v3386_v37, 2 }
 0x30e   : > { %v2871_v9 = vrot.slane %v2870_v20, 1  ;;  %v3388_v40 = vadd.f32 %v3387_v5, %v3386_v37 }
 0x310   : > { %v2872_v36 = vadd.f32 %v2871_v9, %v2870_v20  ;;  %v3389_v26 = vrot.slane %v3388_v40, 1 }
 0x312   : > { %2873 = vst [vmem:[%s228_s15] sm:$0x1] %v2872_v36  ;;  %v3390_v29 = vadd.f32 %v3389_v26, %v3388_v40 }
 0x313   : > { %7015 = shalt.err (!%p7012_p9)
}
 0x314   : > { %s7016_s11 = scalar_lea.hbm %s8669_s8, 16  ;;  %s7020_s22 = scalar_lea.hbm %s8751_s4, 32 }
 0x315   : > { %p7017_p10 = scmp.ne.s32.totalorder %s8669_s8, %s7016_s11  ;;  %p7021_p13 = scmp.lt.u32.totalorder %s8669_s8, %s8751_s4 }
 0x316   : > { %p7022_p0 = scmp.lt.u32.totalorder %s7020_s22, %s7016_s11  ;;  %p7024_p2 = scmp.lt.u32.totalorder %s7016_s11, %s8669_s8 }
 0x317   : > { %p7018_p11 = pnand %p7017_p10, %p7173_p5 }
 0x318   : > { %p7023_p1 = por %p7022_p0, %p7021_p13 }
 0x319   : > { %p7019_p12 = pneg %p7018_p11 }
 0x31a   : > { %p7025_p3 = por %p7024_p2, %p7023_p1 }
 0x31c   : > { %p7026_p4 = pnand %p7025_p3, %p7019_p12 }
 0x31e   : > { %7029 = shalt.err (!%p7026_p4)
}
 0x31f   : > { %6791 = dma.vmem_to_hbm [thread:$0]  (%p7173_p5), %s8671_s25, 16, %s8669_s8, %s8680_s12   ;;  %3391 = vst [vmem:[%s234_s26] sm:$0x1] %v3390_v29 }
 0x320   : > { %s7030_s13 = scalar_lea.vmem %s8678_s30, 16  ;;  %s7102_s6 = smov [#allocation6]  }
 0x321   : > { %p7031_p7 = scmp.ne.s32.totalorder %s8678_s30, %s7030_s13  ;;  %s7034_s7 = sshll.u32 %s7102_s6, 4  ;;  %s7035_s7 = int_to_ptr.vmem [resolvable:$false] %s7034_s7 }
 0x322   : > { %s7036_s11 = scalar_lea.vmem %s7035_s7, 32  ;;  %p7037_p10 = scmp.lt.s32.totalorder %s8678_s30, %s7035_s7 }
 0x323   : > { %p7032_p8 = pnand %p7031_p7, %p7173_p5  ;;  %p7038_p11 = scmp.lt.s32.totalorder %s7036_s11, %s7030_s13 }
 0x325   : > { %p7033_p9 = pneg %p7032_p8  ;;  %p7039_p12 = por %p7038_p11, %p7037_p10 }
 0x327   : > { %p7040_p13 = pnand %p7039_p12, %p7033_p9 }
 0x329   : > { %7043 = shalt.err (!%p7040_p13)
}
 0x32a   : > { %s7044_s16 = scalar_lea.hbm %s8676_s10, 16  ;;  %s7048_s8 = scalar_lea.hbm %s8752_s5, 32 }
 0x32b   : > { %p7045_p0 = scmp.ne.s32.totalorder %s8676_s10, %s7044_s16  ;;  %p7049_p3 = scmp.lt.u32.totalorder %s8676_s10, %s8752_s5 }
 0x32c   : > { %p7050_p4 = scmp.lt.u32.totalorder %s7048_s8, %s7044_s16  ;;  %p7052_p8 = scmp.lt.u32.totalorder %s7044_s16, %s8676_s10 }
 0x32d   : > { %p7046_p1 = pnand %p7045_p0, %p7173_p5 }
 0x32e   : > { %p7051_p7 = por %p7050_p4, %p7049_p3 }
 0x32f   : > { %p7047_p2 = pneg %p7046_p1 }
 0x330   : > { %p7053_p9 = por %p7052_p8, %p7051_p7 }
 0x332   : > { %p7054_p10 = pnand %p7053_p9, %p7047_p2 }
 0x334   : > { %7057 = shalt.err (!%p7054_p10)
}
 0x335   : > { %6792 = dma.vmem_to_hbm [thread:$0]  (%p7173_p5), %s8678_s30, 16, %s8676_s10, %s8680_s12  }
 0x336 PF: > { %p6806_p11 = scmp.ge.s32.totalorder %s7096_s21, 2  ;;  %s4735_s22 = sand.u32 1, %s7084_s18  }
 0x337   : > { %s4736_s9 = scalar_lea.sflag [#allocation3], %s4735_s22 }
 0x338   : > { %p6797_p12 = pnand %p6806_p11, %p7177_p6 }
 0x33a   : > { %7075 = dma.done.wait (!%p6797_p12), %s4736_s9, 16384  }
 0x33b   : > { %7077 = vsyncadd (!%p6797_p12), %s4736_s9, 4294950912  ;;  %s4744_s17 = sand.u32 1, %s4835_s23  }
 0x33c   : > { %s4745_s13 = scalar_lea.sflag [#allocation5], %s4744_s17 }
 0x33d   : > { %7079 = dma.done.wait (!%p6797_p12), %s4745_s13, 32  }
 0x33e   : > { %7081 = vsyncadd (!%p6797_p12), %s4745_s13, 4294967264  ;;  %p19_p5 = scmp.ge.s32.totalorder %s7158_s24, 4   ;;  %s8919_s18 = smov %s7088_s19 }
 0x33f   : > { %s8920_s19 = smov %s7092_s20  ;;  %s8921_s20 = smov %s7171_s27 }
 0x340   : > { %s8922_s21 = smov %s7158_s24  ;;  %21 = sbr.rel (!%p19_p5) target bundleno = 5 (0x5), region = 99 }
 0x347   :  { %4757 = vsyncpa [#allocation3], 1 }
 0x348   :  { %4759 = vsyncpa [#allocation3 + $0x1], 1 }
 0x349   :  { %4760 = vsyncpa [#allocation5], 1 }
 0x34a   :  { %4762 = vsyncpa [#allocation5 + $0x1], 1 }

</bundles_post_ra>
